<compile_context>
chip_gen: v7x
topology: tpu7x:2x2x1
jax: 0.10.0
libtpu: 0.0.40
codegen_flags: <defaults>
</compile_context>

<pallas_src>
import functools

import numpy as np
import jax
import jax.numpy as jnp
from jax.experimental import pallas as pl
from jax.experimental.pallas import tpu as pltpu

_BN_EPS = 1e-5          # nn.BatchNorm2d default
_TAPS = [(dh, dw) for dh in range(3) for dw in range(3)]


# -----------------------------------------------------------------------------
# Fused Pallas kernel: the entire wide_basic block for one image.
# -----------------------------------------------------------------------------
def _wide_basic_kernel(*refs, H, W, Cin, P, has_proj):
    if has_proj:
        (x_ref, s1_ref, b1_ref, w1_ref, cb1_ref,
         s2_ref, b2_ref, w2_ref, cb2_ref, wsc_ref, bsc_ref,
         o_ref, pad1, pad2) = refs
    else:
        (x_ref, s1_ref, b1_ref, w1_ref, cb1_ref,
         s2_ref, b2_ref, w2_ref, cb2_ref,
         o_ref, pad1, pad2) = refs
        wsc_ref = bsc_ref = None

    # Zero the padded scratch tiles every step (cheap VPU memset).  The conv
    # zero-padding applies AFTER bn+relu, so the halo must be exactly 0; we do
    # not pre-pad x in HBM (avoids an extra HBM round trip).
    pad1[...] = jnp.zeros(pad1.shape, pad1.dtype)
    pad2[...] = jnp.zeros(pad2.shape, pad2.dtype)

    x = x_ref[0].astype(jnp.float32)                       # (H, W, Cin)

    # ---- bn1 -> relu, write interior of the padded VMEM tile -------------
    act1 = jnp.maximum(x * s1_ref[...] + b1_ref[...], 0.0)
    pad1[1:H + 1, 1:W + 1, :] = act1
    # TODO(synk): dropout after conv1 is identity (eval mode).

    # ---- conv1: 9 tap-shifted MXU matmuls accumulated in f32 -------------
    ap1 = pad1[...].astype(jnp.bfloat16)                   # (H+2, W+2, Cin)
    acc1 = jnp.zeros((H * W, P), jnp.float32)
    for t, (dh, dw) in enumerate(_TAPS):
        a_tap = ap1[dh:dh + H, dw:dw + W, :].reshape(H * W, Cin)
        acc1 = acc1 + jnp.dot(a_tap, w1_ref[t],
                              preferred_element_type=jnp.float32)
    y1 = acc1 + cb1_ref[...]                               # (H*W, P)

    # ---- bn2 -> relu ------------------------------------------------------
    act2 = jnp.maximum(y1 * s2_ref[...] + b2_ref[...], 0.0)
    pad2[1:H + 1, 1:W + 1, :] = act2.reshape(H, W, P)

    # ---- conv2 ------------------------------------------------------------
    ap2 = pad2[...].astype(jnp.bfloat16)                   # (H+2, W+2, P)
    acc2 = jnp.zeros((H * W, P), jnp.float32)
    for t, (dh, dw) in enumerate(_TAPS):
        a_tap = ap2[dh:dh + H, dw:dw + W, :].reshape(H * W, P)
        acc2 = acc2 + jnp.dot(a_tap, w2_ref[t],
                              preferred_element_type=jnp.float32)
    y2 = acc2 + cb2_ref[...]

    # ---- shortcut (identity or fused 1x1 projection) + residual add ------
    if has_proj:
        sc = jnp.dot(x.astype(jnp.bfloat16).reshape(H * W, Cin), wsc_ref[...],
                     preferred_element_type=jnp.float32) + bsc_ref[...]
    else:
        sc = x.reshape(H * W, Cin)                         # Cin == P, f32 add
    out = y2 + sc

    o_ref[0] = out.reshape(H, W, P).astype(o_ref.dtype)


# -----------------------------------------------------------------------------
# Wrapper: NCHW in/out, parameter folding, pallas_call plumbing.
# -----------------------------------------------------------------------------
def wide_basic_forward(x_nchw, params):
    if params["stride"] != 1:
        # TODO(synk): stride != 1 path not implemented in the Pallas kernel.
        raise NotImplementedError("stride != 1 not implemented")

    x = jnp.transpose(x_nchw, (0, 2, 3, 1)).astype(jnp.float32)   # NCHW->NHWC
    N, H, W, Cin = x.shape
    w1 = params["conv1_w"]                                        # (3,3,Cin,P)
    P = w1.shape[-1]
    has_proj = "sc_w" in params

    # Fold BN (eval running stats) into per-channel scale / bias.
    s1 = params["bn1_gamma"] / jnp.sqrt(params["bn1_var"] + _BN_EPS)
    b1 = params["bn1_beta"] - params["bn1_mean"] * s1
    s2 = params["bn2_gamma"] / jnp.sqrt(params["bn2_var"] + _BN_EPS)
    b2 = params["bn2_beta"] - params["bn2_mean"] * s2

    w1b = w1.reshape(9, Cin, P).astype(jnp.bfloat16)              # tap-major
    w2b = params["conv2_w"].reshape(9, P, P).astype(jnp.bfloat16)
    cb1 = params["conv1_b"].reshape(1, P).astype(jnp.float32)
    cb2 = params["conv2_b"].reshape(1, P).astype(jnp.float32)
    s1 = s1.reshape(1, Cin).astype(jnp.float32)
    b1 = b1.reshape(1, Cin).astype(jnp.float32)
    s2 = s2.reshape(1, P).astype(jnp.float32)
    b2 = b2.reshape(1, P).astype(jnp.float32)

    inputs = [x, s1, b1, w1b, cb1, s2, b2, w2b, cb2]
    in_specs = [
        pl.BlockSpec((1, H, W, Cin), lambda n: (n, 0, 0, 0)),
        pl.BlockSpec((1, Cin), lambda n: (0, 0)),
        pl.BlockSpec((1, Cin), lambda n: (0, 0)),
        pl.BlockSpec((9, Cin, P), lambda n: (0, 0, 0)),
        pl.BlockSpec((1, P), lambda n: (0, 0)),
        pl.BlockSpec((1, P), lambda n: (0, 0)),
        pl.BlockSpec((1, P), lambda n: (0, 0)),
        pl.BlockSpec((9, P, P), lambda n: (0, 0, 0)),
        pl.BlockSpec((1, P), lambda n: (0, 0)),
    ]
    if has_proj:
        wsc = params["sc_w"].reshape(Cin, P).astype(jnp.bfloat16)
        bsc = params["sc_b"].reshape(1, P).astype(jnp.float32)
        inputs += [wsc, bsc]
        in_specs += [pl.BlockSpec((Cin, P), lambda n: (0, 0)),
                     pl.BlockSpec((1, P), lambda n: (0, 0))]

    kernel = functools.partial(_wide_basic_kernel, H=H, W=W, Cin=Cin, P=P,
                               has_proj=has_proj)
    out = pl.pallas_call(
        kernel,
        out_shape=jax.ShapeDtypeStruct((N, H, W, P), jnp.float32),
        grid=(N,),
        in_specs=in_specs,
        out_specs=pl.BlockSpec((1, H, W, P), lambda n: (n, 0, 0, 0)),
        scratch_shapes=[pltpu.VMEM((H + 2, W + 2, Cin), jnp.float32),
                        pltpu.VMEM((H + 2, W + 2, P), jnp.float32)],
        compiler_params=pltpu.CompilerParams(
            dimension_semantics=("parallel",)),
    )(*inputs)
    return jnp.transpose(out, (0, 3, 1, 2))                       # NHWC->NCHW


# -----------------------------------------------------------------------------
# Parameter init (HWIO conv weights) and pure-JAX f32 reference.
# -----------------------------------------------------------------------------
def init_wide_basic(key, in_planes, planes, stride=1):
    ks = jax.random.split(key, 8)

    def bn_params(k, c, pre, d):
        k1, k2, k3, k4 = jax.random.split(k, 4)
        d[pre + "_gamma"] = 1.0 + 0.1 * jax.random.normal(k1, (c,), jnp.float32)
        d[pre + "_beta"] = 0.1 * jax.random.normal(k2, (c,), jnp.float32)
        d[pre + "_mean"] = 0.1 * jax.random.normal(k3, (c,), jnp.float32)
        d[pre + "_var"] = jnp.abs(jax.random.normal(k4, (c,), jnp.float32)) + 0.5

    p = {"stride": stride}
    bn_params(ks[0], in_planes, "bn1", p)
    bn_params(ks[1], planes, "bn2", p)
    p["conv1_w"] = (jax.random.normal(ks[2], (3, 3, in_planes, planes),
                                      jnp.float32) / np.sqrt(9 * in_planes))
    p["conv1_b"] = 0.1 * jax.random.normal(ks[3], (planes,), jnp.float32)
    p["conv2_w"] = (jax.random.normal(ks[4], (3, 3, planes, planes),
                                      jnp.float32) / np.sqrt(9 * planes))
    p["conv2_b"] = 0.1 * jax.random.normal(ks[5], (planes,), jnp.float32)
    if stride != 1 or in_planes != planes:
        p["sc_w"] = (jax.random.normal(ks[6], (1, 1, in_planes, planes),
                                       jnp.float32) / np.sqrt(in_planes))
        p["sc_b"] = 0.1 * jax.random.normal(ks[7], (planes,), jnp.float32)
    return p


def _ref_forward(x_nchw, params):
    x = jnp.transpose(x_nchw, (0, 2, 3, 1)).astype(jnp.float32)

    def bn(v, pre):
        g, b = params[pre + "_gamma"], params[pre + "_beta"]
        m, var = params[pre + "_mean"], params[pre + "_var"]
        return (v - m) * (g / jnp.sqrt(var + _BN_EPS)) + b

    def conv(v, w, bias, pad):
        y = jax.lax.conv_general_dilated(
            v, w, window_strides=(1, 1), padding=[(pad, pad), (pad, pad)],
            dimension_numbers=("NHWC", "HWIO", "NHWC"),
            precision=jax.lax.Precision.HIGHEST)
        return y + bias

    a1 = jnp.maximum(bn(x, "bn1"), 0.0)
    y1 = conv(a1, params["conv1_w"], params["conv1_b"], 1)
    a2 = jnp.maximum(bn(y1, "bn2"), 0.0)
    y2 = conv(a2, params["conv2_w"], params["conv2_b"], 1)
    if "sc_w" in params:
        sc = conv(x, params["sc_w"], params["sc_b"], 0)
    else:
        sc = x
    return jnp.transpose(y2 + sc, (0, 3, 1, 2))


# -----------------------------------------------------------------------------
if __name__ == "__main__":
    key = jax.random.PRNGKey(0)
    k1, k2, k3, k4 = jax.random.split(key, 4)

    N, H, W = 2, 16, 16

    # Case 1: identity shortcut (stride=1, in_planes == planes)
    C, planes = 16, 16
    x1 = jax.random.normal(k1, (N, C, H, W), jnp.float32)
    p1 = init_wide_basic(k2, C, planes)
    out1 = jax.block_until_ready(wide_basic_forward(x1, p1))
    assert out1.shape == (N, planes, H, W), out1.shape
    ref1 = jax.block_until_ready(_ref_forward(x1, p1))
    np.testing.assert_allclose(np.asarray(out1), np.asarray(ref1),
                               rtol=3e-2, atol=3e-2)

    # Case 2: 1x1 projection shortcut (in_planes != planes)
    C2, planes2 = 4, 32
    x2 = jax.random.normal(k3, (N, C2, H, W), jnp.float32)
    p2 = init_wide_basic(k4, C2, planes2)
    out2 = jax.block_until_ready(wide_basic_forward(x2, p2))
    assert out2.shape == (N, planes2, H, W), out2.shape
    ref2 = jax.block_until_ready(_ref_forward(x2, p2))
    np.testing.assert_allclose(np.asarray(out2), np.asarray(ref2),
                               rtol=3e-2, atol=3e-2)

    print("KERNEL_OK")
</pallas_src>

<mosaic_0001>
module attributes {stable_mosaic.version = 11 : i64} {
  func.func @_wide_basic_kernel(%arg0: i32, %arg1: memref<1x16x16x16xf32, #tpu.memory_space<vmem>>, %arg2: memref<1x16xf32, #tpu.memory_space<vmem>>, %arg3: memref<1x16xf32, #tpu.memory_space<vmem>>, %arg4: memref<9x16x16xbf16, #tpu.memory_space<vmem>>, %arg5: memref<1x16xf32, #tpu.memory_space<vmem>>, %arg6: memref<1x16xf32, #tpu.memory_space<vmem>>, %arg7: memref<1x16xf32, #tpu.memory_space<vmem>>, %arg8: memref<9x16x16xbf16, #tpu.memory_space<vmem>>, %arg9: memref<1x16xf32, #tpu.memory_space<vmem>>, %arg10: memref<1x16x16x16xf32, #tpu.memory_space<vmem>>, %arg11: memref<18x18x16xf32, #tpu.memory_space<vmem>>, %arg12: memref<18x18x16xf32, #tpu.memory_space<vmem>>) attributes {dimension_semantics = [#tpu.dimension_semantics<parallel>], iteration_bounds = array<i64: 2>, scalar_prefetch = 0 : i64, scratch_operands = 2 : i64, tpu.core_type = #tpu.core_type<tc>, window_params = [{transform_indices = @transform_0, window_bounds = array<i64: 1, 16, 16, 16>}, {pipeline_mode = #tpu.pipeline_mode<synchronous>, transform_indices = @transform_1, window_bounds = array<i64: 1, 16>}, {pipeline_mode = #tpu.pipeline_mode<synchronous>, transform_indices = @transform_2, window_bounds = array<i64: 1, 16>}, {pipeline_mode = #tpu.pipeline_mode<synchronous>, transform_indices = @transform_3, window_bounds = array<i64: 9, 16, 16>}, {pipeline_mode = #tpu.pipeline_mode<synchronous>, transform_indices = @transform_4, window_bounds = array<i64: 1, 16>}, {pipeline_mode = #tpu.pipeline_mode<synchronous>, transform_indices = @transform_5, window_bounds = array<i64: 1, 16>}, {pipeline_mode = #tpu.pipeline_mode<synchronous>, transform_indices = @transform_6, window_bounds = array<i64: 1, 16>}, {pipeline_mode = #tpu.pipeline_mode<synchronous>, transform_indices = @transform_7, window_bounds = array<i64: 9, 16, 16>}, {pipeline_mode = #tpu.pipeline_mode<synchronous>, transform_indices = @transform_8, window_bounds = array<i64: 1, 16>}, {transform_indices = @transform_9, window_bounds = array<i64: 1, 16, 16, 16>}]} {
    %cst = arith.constant 0.000000e+00 : f32
    %0 = vector.broadcast %cst : f32 to vector<18x18x16xf32>
    %c0 = arith.constant 0 : index
    %c0_0 = arith.constant 0 : index
    %c0_1 = arith.constant 0 : index
    %1 = vector.load %arg11[%c0, %c0_0, %c0_1] : memref<18x18x16xf32, #tpu.memory_space<vmem>>, vector<18x18x16xf32>
    tpu.vector_store %arg11[%c0, %c0_0, %c0_1], %0 {strides = array<i32>} : memref<18x18x16xf32, #tpu.memory_space<vmem>>, vector<18x18x16xf32>,
    %cst_2 = arith.constant 0.000000e+00 : f32
    %2 = vector.broadcast %cst_2 : f32 to vector<18x18x16xf32>
    %c0_3 = arith.constant 0 : index
    %c0_4 = arith.constant 0 : index
    %c0_5 = arith.constant 0 : index
    %3 = vector.load %arg12[%c0_3, %c0_4, %c0_5] : memref<18x18x16xf32, #tpu.memory_space<vmem>>, vector<18x18x16xf32>
    tpu.vector_store %arg12[%c0_3, %c0_4, %c0_5], %2 {strides = array<i32>} : memref<18x18x16xf32, #tpu.memory_space<vmem>>, vector<18x18x16xf32>,
    %c0_6 = arith.constant 0 : index
    %c0_7 = arith.constant 0 : index
    %c0_8 = arith.constant 0 : index
    %c0_9 = arith.constant 0 : index
    %4 = vector.load %arg1[%c0_6, %c0_7, %c0_8, %c0_9] : memref<1x16x16x16xf32, #tpu.memory_space<vmem>>, vector<1x16x16x16xf32>
    %5 = vector.shape_cast %4 : vector<1x16x16x16xf32> to vector<16x16x16xf32>
    %c0_10 = arith.constant 0 : index
    %c0_11 = arith.constant 0 : index
    %6 = vector.load %arg2[%c0_10, %c0_11] : memref<1x16xf32, #tpu.memory_space<vmem>>, vector<1x16xf32>
    %7 = vector.shape_cast %6 : vector<1x16xf32> to vector<1x1x16xf32>
    %8 = vector.broadcast %7 : vector<1x1x16xf32> to vector<16x16x16xf32>
    %9 = arith.mulf %5, %8 : vector<16x16x16xf32>
    %c0_12 = arith.constant 0 : index
    %c0_13 = arith.constant 0 : index
    %10 = vector.load %arg3[%c0_12, %c0_13] : memref<1x16xf32, #tpu.memory_space<vmem>>, vector<1x16xf32>
    %11 = vector.shape_cast %10 : vector<1x16xf32> to vector<1x1x16xf32>
    %12 = vector.broadcast %11 : vector<1x1x16xf32> to vector<16x16x16xf32>
    %13 = arith.addf %9, %12 : vector<16x16x16xf32>
    %cst_14 = arith.constant 0.000000e+00 : f32
    %14 = vector.broadcast %cst_14 : f32 to vector<16x16x16xf32>
    %15 = arith.maximumf %13, %14 : vector<16x16x16xf32>
    %c1 = arith.constant 1 : index
    %c1_15 = arith.constant 1 : index
    %c0_16 = arith.constant 0 : index
    %16 = vector.load %arg11[%c1, %c1_15, %c0_16] : memref<18x18x16xf32, #tpu.memory_space<vmem>>, vector<16x16x16xf32>
    tpu.vector_store %arg11[%c1, %c1_15, %c0_16], %15 {strides = array<i32>} : memref<18x18x16xf32, #tpu.memory_space<vmem>>, vector<16x16x16xf32>,
    %c0_17 = arith.constant 0 : index
    %c0_18 = arith.constant 0 : index
    %c0_19 = arith.constant 0 : index
    %17 = vector.load %arg11[%c0_17, %c0_18, %c0_19] : memref<18x18x16xf32, #tpu.memory_space<vmem>>, vector<18x18x16xf32>
    %18 = arith.truncf %17 : vector<18x18x16xf32> to vector<18x18x16xbf16>
    %cst_20 = arith.constant 0.000000e+00 : f32
    %19 = vector.broadcast %cst_20 : f32 to vector<256x16xf32>
    %20 = vector.extract_strided_slice %18 {offsets = [0, 0, 0], sizes = [16, 16, 16], strides = [1, 1, 1]} : vector<18x18x16xbf16> to vector<16x16x16xbf16>
    %21 = vector.shape_cast %20 : vector<16x16x16xbf16> to vector<256x16xbf16>
    %c0_21 = arith.constant 0 : index
    %c0_22 = arith.constant 0 : index
    %c0_23 = arith.constant 0 : index
    %22 = vector.load %arg4[%c0_21, %c0_22, %c0_23] : memref<9x16x16xbf16, #tpu.memory_space<vmem>>, vector<1x16x16xbf16>
    %23 = vector.shape_cast %22 : vector<1x16x16xbf16> to vector<16x16xbf16>
    %cst_24 = arith.constant dense<0.000000e+00> : vector<256x16xf32>
    %24 = tpu.matmul %21, %23, %cst_24 {dimension_numbers = #tpu.dot_dimension_numbers<[1], [0], [0], [1], [0, 0, 1, 1], [], []>} : vector<256x16xbf16>, vector<16x16xbf16>, vector<256x16xf32> -> vector<256x16xf32>
    %25 = arith.addf %19, %24 : vector<256x16xf32>
    %26 = vector.extract_strided_slice %18 {offsets = [0, 1, 0], sizes = [16, 16, 16], strides = [1, 1, 1]} : vector<18x18x16xbf16> to vector<16x16x16xbf16>
    %27 = vector.shape_cast %26 : vector<16x16x16xbf16> to vector<256x16xbf16>
    %c1_25 = arith.constant 1 : index
    %c0_26 = arith.constant 0 : index
    %c0_27 = arith.constant 0 : index
    %28 = vector.load %arg4[%c1_25, %c0_26, %c0_27] : memref<9x16x16xbf16, #tpu.memory_space<vmem>>, vector<1x16x16xbf16>
    %29 = vector.shape_cast %28 : vector<1x16x16xbf16> to vector<16x16xbf16>
    %cst_28 = arith.constant dense<0.000000e+00> : vector<256x16xf32>
    %30 = tpu.matmul %27, %29, %cst_28 {dimension_numbers = #tpu.dot_dimension_numbers<[1], [0], [0], [1], [0, 0, 1, 1], [], []>} : vector<256x16xbf16>, vector<16x16xbf16>, vector<256x16xf32> -> vector<256x16xf32>
    %31 = arith.addf %25, %30 : vector<256x16xf32>
    %32 = vector.extract_strided_slice %18 {offsets = [0, 2, 0], sizes = [16, 16, 16], strides = [1, 1, 1]} : vector<18x18x16xbf16> to vector<16x16x16xbf16>
    %33 = vector.shape_cast %32 : vector<16x16x16xbf16> to vector<256x16xbf16>
    %c2 = arith.constant 2 : index
    %c0_29 = arith.constant 0 : index
    %c0_30 = arith.constant 0 : index
    %34 = vector.load %arg4[%c2, %c0_29, %c0_30] : memref<9x16x16xbf16, #tpu.memory_space<vmem>>, vector<1x16x16xbf16>
    %35 = vector.shape_cast %34 : vector<1x16x16xbf16> to vector<16x16xbf16>
    %cst_31 = arith.constant dense<0.000000e+00> : vector<256x16xf32>
    %36 = tpu.matmul %33, %35, %cst_31 {dimension_numbers = #tpu.dot_dimension_numbers<[1], [0], [0], [1], [0, 0, 1, 1], [], []>} : vector<256x16xbf16>, vector<16x16xbf16>, vector<256x16xf32> -> vector<256x16xf32>
    %37 = arith.addf %31, %36 : vector<256x16xf32>
    %38 = vector.extract_strided_slice %18 {offsets = [1, 0, 0], sizes = [16, 16, 16], strides = [1, 1, 1]} : vector<18x18x16xbf16> to vector<16x16x16xbf16>
    %39 = vector.shape_cast %38 : vector<16x16x16xbf16> to vector<256x16xbf16>
    %c3 = arith.constant 3 : index
    %c0_32 = arith.constant 0 : index
    %c0_33 = arith.constant 0 : index
    %40 = vector.load %arg4[%c3, %c0_32, %c0_33] : memref<9x16x16xbf16, #tpu.memory_space<vmem>>, vector<1x16x16xbf16>
    %41 = vector.shape_cast %40 : vector<1x16x16xbf16> to vector<16x16xbf16>
    %cst_34 = arith.constant dense<0.000000e+00> : vector<256x16xf32>
    %42 = tpu.matmul %39, %41, %cst_34 {dimension_numbers = #tpu.dot_dimension_numbers<[1], [0], [0], [1], [0, 0, 1, 1], [], []>} : vector<256x16xbf16>, vector<16x16xbf16>, vector<256x16xf32> -> vector<256x16xf32>
    %43 = arith.addf %37, %42 : vector<256x16xf32>
    %44 = vector.extract_strided_slice %18 {offsets = [1, 1, 0], sizes = [16, 16, 16], strides = [1, 1, 1]} : vector<18x18x16xbf16> to vector<16x16x16xbf16>
    %45 = vector.shape_cast %44 : vector<16x16x16xbf16> to vector<256x16xbf16>
    %c4 = arith.constant 4 : index
    %c0_35 = arith.constant 0 : index
    %c0_36 = arith.constant 0 : index
    %46 = vector.load %arg4[%c4, %c0_35, %c0_36] : memref<9x16x16xbf16, #tpu.memory_space<vmem>>, vector<1x16x16xbf16>
    %47 = vector.shape_cast %46 : vector<1x16x16xbf16> to vector<16x16xbf16>
    %cst_37 = arith.constant dense<0.000000e+00> : vector<256x16xf32>
    %48 = tpu.matmul %45, %47, %cst_37 {dimension_numbers = #tpu.dot_dimension_numbers<[1], [0], [0], [1], [0, 0, 1, 1], [], []>} : vector<256x16xbf16>, vector<16x16xbf16>, vector<256x16xf32> -> vector<256x16xf32>
    %49 = arith.addf %43, %48 : vector<256x16xf32>
    %50 = vector.extract_strided_slice %18 {offsets = [1, 2, 0], sizes = [16, 16, 16], strides = [1, 1, 1]} : vector<18x18x16xbf16> to vector<16x16x16xbf16>
    %51 = vector.shape_cast %50 : vector<16x16x16xbf16> to vector<256x16xbf16>
    %c5 = arith.constant 5 : index
    %c0_38 = arith.constant 0 : index
    %c0_39 = arith.constant 0 : index
    %52 = vector.load %arg4[%c5, %c0_38, %c0_39] : memref<9x16x16xbf16, #tpu.memory_space<vmem>>, vector<1x16x16xbf16>
    %53 = vector.shape_cast %52 : vector<1x16x16xbf16> to vector<16x16xbf16>
    %cst_40 = arith.constant dense<0.000000e+00> : vector<256x16xf32>
    %54 = tpu.matmul %51, %53, %cst_40 {dimension_numbers = #tpu.dot_dimension_numbers<[1], [0], [0], [1], [0, 0, 1, 1], [], []>} : vector<256x16xbf16>, vector<16x16xbf16>, vector<256x16xf32> -> vector<256x16xf32>
    %55 = arith.addf %49, %54 : vector<256x16xf32>
    %56 = vector.extract_strided_slice %18 {offsets = [2, 0, 0], sizes = [16, 16, 16], strides = [1, 1, 1]} : vector<18x18x16xbf16> to vector<16x16x16xbf16>
    %57 = vector.shape_cast %56 : vector<16x16x16xbf16> to vector<256x16xbf16>
    %c6 = arith.constant 6 : index
    %c0_41 = arith.constant 0 : index
    %c0_42 = arith.constant 0 : index
    %58 = vector.load %arg4[%c6, %c0_41, %c0_42] : memref<9x16x16xbf16, #tpu.memory_space<vmem>>, vector<1x16x16xbf16>
    %59 = vector.shape_cast %58 : vector<1x16x16xbf16> to vector<16x16xbf16>
    %cst_43 = arith.constant dense<0.000000e+00> : vector<256x16xf32>
    %60 = tpu.matmul %57, %59, %cst_43 {dimension_numbers = #tpu.dot_dimension_numbers<[1], [0], [0], [1], [0, 0, 1, 1], [], []>} : vector<256x16xbf16>, vector<16x16xbf16>, vector<256x16xf32> -> vector<256x16xf32>
    %61 = arith.addf %55, %60 : vector<256x16xf32>
    %62 = vector.extract_strided_slice %18 {offsets = [2, 1, 0], sizes = [16, 16, 16], strides = [1, 1, 1]} : vector<18x18x16xbf16> to vector<16x16x16xbf16>
    %63 = vector.shape_cast %62 : vector<16x16x16xbf16> to vector<256x16xbf16>
    %c7 = arith.constant 7 : index
    %c0_44 = arith.constant 0 : index
    %c0_45 = arith.constant 0 : index
    %64 = vector.load %arg4[%c7, %c0_44, %c0_45] : memref<9x16x16xbf16, #tpu.memory_space<vmem>>, vector<1x16x16xbf16>
    %65 = vector.shape_cast %64 : vector<1x16x16xbf16> to vector<16x16xbf16>
    %cst_46 = arith.constant dense<0.000000e+00> : vector<256x16xf32>
    %66 = tpu.matmul %63, %65, %cst_46 {dimension_numbers = #tpu.dot_dimension_numbers<[1], [0], [0], [1], [0, 0, 1, 1], [], []>} : vector<256x16xbf16>, vector<16x16xbf16>, vector<256x16xf32> -> vector<256x16xf32>
    %67 = arith.addf %61, %66 : vector<256x16xf32>
    %68 = vector.extract_strided_slice %18 {offsets = [2, 2, 0], sizes = [16, 16, 16], strides = [1, 1, 1]} : vector<18x18x16xbf16> to vector<16x16x16xbf16>
    %69 = vector.shape_cast %68 : vector<16x16x16xbf16> to vector<256x16xbf16>
    %c8 = arith.constant 8 : index
    %c0_47 = arith.constant 0 : index
    %c0_48 = arith.constant 0 : index
    %70 = vector.load %arg4[%c8, %c0_47, %c0_48] : memref<9x16x16xbf16, #tpu.memory_space<vmem>>, vector<1x16x16xbf16>
    %71 = vector.shape_cast %70 : vector<1x16x16xbf16> to vector<16x16xbf16>
    %cst_49 = arith.constant dense<0.000000e+00> : vector<256x16xf32>
    %72 = tpu.matmul %69, %71, %cst_49 {dimension_numbers = #tpu.dot_dimension_numbers<[1], [0], [0], [1], [0, 0, 1, 1], [], []>} : vector<256x16xbf16>, vector<16x16xbf16>, vector<256x16xf32> -> vector<256x16xf32>
    %73 = arith.addf %67, %72 : vector<256x16xf32>
    %c0_50 = arith.constant 0 : index
    %c0_51 = arith.constant 0 : index
    %74 = vector.load %arg5[%c0_50, %c0_51] : memref<1x16xf32, #tpu.memory_space<vmem>>, vector<1x16xf32>
    %75 = vector.broadcast %74 : vector<1x16xf32> to vector<256x16xf32>
    %76 = arith.addf %73, %75 : vector<256x16xf32>
    %c0_52 = arith.constant 0 : index
    %c0_53 = arith.constant 0 : index
    %77 = vector.load %arg6[%c0_52, %c0_53] : memref<1x16xf32, #tpu.memory_space<vmem>>, vector<1x16xf32>
    %78 = vector.broadcast %77 : vector<1x16xf32> to vector<256x16xf32>
    %79 = arith.mulf %76, %78 : vector<256x16xf32>
    %c0_54 = arith.constant 0 : index
    %c0_55 = arith.constant 0 : index
    %80 = vector.load %arg7[%c0_54, %c0_55] : memref<1x16xf32, #tpu.memory_space<vmem>>, vector<1x16xf32>
    %81 = vector.broadcast %80 : vector<1x16xf32> to vector<256x16xf32>
    %82 = arith.addf %79, %81 : vector<256x16xf32>
    %cst_56 = arith.constant 0.000000e+00 : f32
    %83 = vector.broadcast %cst_56 : f32 to vector<256x16xf32>
    %84 = arith.maximumf %82, %83 : vector<256x16xf32>
    %85 = vector.shape_cast %84 : vector<256x16xf32> to vector<16x16x16xf32>
    %c1_57 = arith.constant 1 : index
    %c1_58 = arith.constant 1 : index
    %c0_59 = arith.constant 0 : index
    %86 = vector.load %arg12[%c1_57, %c1_58, %c0_59] : memref<18x18x16xf32, #tpu.memory_space<vmem>>, vector<16x16x16xf32>
    tpu.vector_store %arg12[%c1_57, %c1_58, %c0_59], %85 {strides = array<i32>} : memref<18x18x16xf32, #tpu.memory_space<vmem>>, vector<16x16x16xf32>,
    %c0_60 = arith.constant 0 : index
    %c0_61 = arith.constant 0 : index
    %c0_62 = arith.constant 0 : index
    %87 = vector.load %arg12[%c0_60, %c0_61, %c0_62] : memref<18x18x16xf32, #tpu.memory_space<vmem>>, vector<18x18x16xf32>
    %88 = arith.truncf %87 : vector<18x18x16xf32> to vector<18x18x16xbf16>
    %cst_63 = arith.constant 0.000000e+00 : f32
    %89 = vector.broadcast %cst_63 : f32 to vector<256x16xf32>
    %90 = vector.extract_strided_slice %88 {offsets = [0, 0, 0], sizes = [16, 16, 16], strides = [1, 1, 1]} : vector<18x18x16xbf16> to vector<16x16x16xbf16>
    %91 = vector.shape_cast %90 : vector<16x16x16xbf16> to vector<256x16xbf16>
    %c0_64 = arith.constant 0 : index
    %c0_65 = arith.constant 0 : index
    %c0_66 = arith.constant 0 : index
    %92 = vector.load %arg8[%c0_64, %c0_65, %c0_66] : memref<9x16x16xbf16, #tpu.memory_space<vmem>>, vector<1x16x16xbf16>
    %93 = vector.shape_cast %92 : vector<1x16x16xbf16> to vector<16x16xbf16>
    %cst_67 = arith.constant dense<0.000000e+00> : vector<256x16xf32>
    %94 = tpu.matmul %91, %93, %cst_67 {dimension_numbers = #tpu.dot_dimension_numbers<[1], [0], [0], [1], [0, 0, 1, 1], [], []>} : vector<256x16xbf16>, vector<16x16xbf16>, vector<256x16xf32> -> vector<256x16xf32>
    %95 = arith.addf %89, %94 : vector<256x16xf32>
    %96 = vector.extract_strided_slice %88 {offsets = [0, 1, 0], sizes = [16, 16, 16], strides = [1, 1, 1]} : vector<18x18x16xbf16> to vector<16x16x16xbf16>
    %97 = vector.shape_cast %96 : vector<16x16x16xbf16> to vector<256x16xbf16>
    %c1_68 = arith.constant 1 : index
    %c0_69 = arith.constant 0 : index
    %c0_70 = arith.constant 0 : index
    %98 = vector.load %arg8[%c1_68, %c0_69, %c0_70] : memref<9x16x16xbf16, #tpu.memory_space<vmem>>, vector<1x16x16xbf16>
    %99 = vector.shape_cast %98 : vector<1x16x16xbf16> to vector<16x16xbf16>
    %cst_71 = arith.constant dense<0.000000e+00> : vector<256x16xf32>
    %100 = tpu.matmul %97, %99, %cst_71 {dimension_numbers = #tpu.dot_dimension_numbers<[1], [0], [0], [1], [0, 0, 1, 1], [], []>} : vector<256x16xbf16>, vector<16x16xbf16>, vector<256x16xf32> -> vector<256x16xf32>
    %101 = arith.addf %95, %100 : vector<256x16xf32>
    %102 = vector.extract_strided_slice %88 {offsets = [0, 2, 0], sizes = [16, 16, 16], strides = [1, 1, 1]} : vector<18x18x16xbf16> to vector<16x16x16xbf16>
    %103 = vector.shape_cast %102 : vector<16x16x16xbf16> to vector<256x16xbf16>
    %c2_72 = arith.constant 2 : index
    %c0_73 = arith.constant 0 : index
    %c0_74 = arith.constant 0 : index
    %104 = vector.load %arg8[%c2_72, %c0_73, %c0_74] : memref<9x16x16xbf16, #tpu.memory_space<vmem>>, vector<1x16x16xbf16>
    %105 = vector.shape_cast %104 : vector<1x16x16xbf16> to vector<16x16xbf16>
    %cst_75 = arith.constant dense<0.000000e+00> : vector<256x16xf32>
    %106 = tpu.matmul %103, %105, %cst_75 {dimension_numbers = #tpu.dot_dimension_numbers<[1], [0], [0], [1], [0, 0, 1, 1], [], []>} : vector<256x16xbf16>, vector<16x16xbf16>, vector<256x16xf32> -> vector<256x16xf32>
    %107 = arith.addf %101, %106 : vector<256x16xf32>
    %108 = vector.extract_strided_slice %88 {offsets = [1, 0, 0], sizes = [16, 16, 16], strides = [1, 1, 1]} : vector<18x18x16xbf16> to vector<16x16x16xbf16>
    %109 = vector.shape_cast %108 : vector<16x16x16xbf16> to vector<256x16xbf16>
    %c3_76 = arith.constant 3 : index
    %c0_77 = arith.constant 0 : index
    %c0_78 = arith.constant 0 : index
    %110 = vector.load %arg8[%c3_76, %c0_77, %c0_78] : memref<9x16x16xbf16, #tpu.memory_space<vmem>>, vector<1x16x16xbf16>
    %111 = vector.shape_cast %110 : vector<1x16x16xbf16> to vector<16x16xbf16>
    %cst_79 = arith.constant dense<0.000000e+00> : vector<256x16xf32>
    %112 = tpu.matmul %109, %111, %cst_79 {dimension_numbers = #tpu.dot_dimension_numbers<[1], [0], [0], [1], [0, 0, 1, 1], [], []>} : vector<256x16xbf16>, vector<16x16xbf16>, vector<256x16xf32> -> vector<256x16xf32>
    %113 = arith.addf %107, %112 : vector<256x16xf32>
    %114 = vector.extract_strided_slice %88 {offsets = [1, 1, 0], sizes = [16, 16, 16], strides = [1, 1, 1]} : vector<18x18x16xbf16> to vector<16x16x16xbf16>
    %115 = vector.shape_cast %114 : vector<16x16x16xbf16> to vector<256x16xbf16>
    %c4_80 = arith.constant 4 : index
    %c0_81 = arith.constant 0 : index
    %c0_82 = arith.constant 0 : index
    %116 = vector.load %arg8[%c4_80, %c0_81, %c0_82] : memref<9x16x16xbf16, #tpu.memory_space<vmem>>, vector<1x16x16xbf16>
    %117 = vector.shape_cast %116 : vector<1x16x16xbf16> to vector<16x16xbf16>
    %cst_83 = arith.constant dense<0.000000e+00> : vector<256x16xf32>
    %118 = tpu.matmul %115, %117, %cst_83 {dimension_numbers = #tpu.dot_dimension_numbers<[1], [0], [0], [1], [0, 0, 1, 1], [], []>} : vector<256x16xbf16>, vector<16x16xbf16>, vector<256x16xf32> -> vector<256x16xf32>
    %119 = arith.addf %113, %118 : vector<256x16xf32>
    %120 = vector.extract_strided_slice %88 {offsets = [1, 2, 0], sizes = [16, 16, 16], strides = [1, 1, 1]} : vector<18x18x16xbf16> to vector<16x16x16xbf16>
    %121 = vector.shape_cast %120 : vector<16x16x16xbf16> to vector<256x16xbf16>
    %c5_84 = arith.constant 5 : index
    %c0_85 = arith.constant 0 : index
    %c0_86 = arith.constant 0 : index
    %122 = vector.load %arg8[%c5_84, %c0_85, %c0_86] : memref<9x16x16xbf16, #tpu.memory_space<vmem>>, vector<1x16x16xbf16>
    %123 = vector.shape_cast %122 : vector<1x16x16xbf16> to vector<16x16xbf16>
    %cst_87 = arith.constant dense<0.000000e+00> : vector<256x16xf32>
    %124 = tpu.matmul %121, %123, %cst_87 {dimension_numbers = #tpu.dot_dimension_numbers<[1], [0], [0], [1], [0, 0, 1, 1], [], []>} : vector<256x16xbf16>, vector<16x16xbf16>, vector<256x16xf32> -> vector<256x16xf32>
    %125 = arith.addf %119, %124 : vector<256x16xf32>
    %126 = vector.extract_strided_slice %88 {offsets = [2, 0, 0], sizes = [16, 16, 16], strides = [1, 1, 1]} : vector<18x18x16xbf16> to vector<16x16x16xbf16>
    %127 = vector.shape_cast %126 : vector<16x16x16xbf16> to vector<256x16xbf16>
    %c6_88 = arith.constant 6 : index
    %c0_89 = arith.constant 0 : index
    %c0_90 = arith.constant 0 : index
    %128 = vector.load %arg8[%c6_88, %c0_89, %c0_90] : memref<9x16x16xbf16, #tpu.memory_space<vmem>>, vector<1x16x16xbf16>
    %129 = vector.shape_cast %128 : vector<1x16x16xbf16> to vector<16x16xbf16>
    %cst_91 = arith.constant dense<0.000000e+00> : vector<256x16xf32>
    %130 = tpu.matmul %127, %129, %cst_91 {dimension_numbers = #tpu.dot_dimension_numbers<[1], [0], [0], [1], [0, 0, 1, 1], [], []>} : vector<256x16xbf16>, vector<16x16xbf16>, vector<256x16xf32> -> vector<256x16xf32>
    %131 = arith.addf %125, %130 : vector<256x16xf32>
    %132 = vector.extract_strided_slice %88 {offsets = [2, 1, 0], sizes = [16, 16, 16], strides = [1, 1, 1]} : vector<18x18x16xbf16> to vector<16x16x16xbf16>
    %133 = vector.shape_cast %132 : vector<16x16x16xbf16> to vector<256x16xbf16>
    %c7_92 = arith.constant 7 : index
    %c0_93 = arith.constant 0 : index
    %c0_94 = arith.constant 0 : index
    %134 = vector.load %arg8[%c7_92, %c0_93, %c0_94] : memref<9x16x16xbf16, #tpu.memory_space<vmem>>, vector<1x16x16xbf16>
    %135 = vector.shape_cast %134 : vector<1x16x16xbf16> to vector<16x16xbf16>
    %cst_95 = arith.constant dense<0.000000e+00> : vector<256x16xf32>
    %136 = tpu.matmul %133, %135, %cst_95 {dimension_numbers = #tpu.dot_dimension_numbers<[1], [0], [0], [1], [0, 0, 1, 1], [], []>} : vector<256x16xbf16>, vector<16x16xbf16>, vector<256x16xf32> -> vector<256x16xf32>
    %137 = arith.addf %131, %136 : vector<256x16xf32>
    %138 = vector.extract_strided_slice %88 {offsets = [2, 2, 0], sizes = [16, 16, 16], strides = [1, 1, 1]} : vector<18x18x16xbf16> to vector<16x16x16xbf16>
    %139 = vector.shape_cast %138 : vector<16x16x16xbf16> to vector<256x16xbf16>
    %c8_96 = arith.constant 8 : index
    %c0_97 = arith.constant 0 : index
    %c0_98 = arith.constant 0 : index
    %140 = vector.load %arg8[%c8_96, %c0_97, %c0_98] : memref<9x16x16xbf16, #tpu.memory_space<vmem>>, vector<1x16x16xbf16>
    %141 = vector.shape_cast %140 : vector<1x16x16xbf16> to vector<16x16xbf16>
    %cst_99 = arith.constant dense<0.000000e+00> : vector<256x16xf32>
    %142 = tpu.matmul %139, %141, %cst_99 {dimension_numbers = #tpu.dot_dimension_numbers<[1], [0], [0], [1], [0, 0, 1, 1], [], []>} : vector<256x16xbf16>, vector<16x16xbf16>, vector<256x16xf32> -> vector<256x16xf32>
    %143 = arith.addf %137, %142 : vector<256x16xf32>
    %c0_100 = arith.constant 0 : index
    %c0_101 = arith.constant 0 : index
    %144 = vector.load %arg9[%c0_100, %c0_101] : memref<1x16xf32, #tpu.memory_space<vmem>>, vector<1x16xf32>
    %145 = vector.broadcast %144 : vector<1x16xf32> to vector<256x16xf32>
    %146 = arith.addf %143, %145 : vector<256x16xf32>
    %147 = vector.shape_cast %5 : vector<16x16x16xf32> to vector<256x16xf32>
    %148 = arith.addf %146, %147 : vector<256x16xf32>
    %149 = vector.shape_cast %148 : vector<256x16xf32> to vector<16x16x16xf32>
    %c0_102 = arith.constant 0 : index
    %c0_103 = arith.constant 0 : index
    %c0_104 = arith.constant 0 : index
    %c0_105 = arith.constant 0 : index
    %150 = vector.load %arg10[%c0_102, %c0_103, %c0_104, %c0_105] : memref<1x16x16x16xf32, #tpu.memory_space<vmem>>, vector<1x16x16x16xf32>
    %151 = vector.shape_cast %150 : vector<1x16x16x16xf32> to vector<16x16x16xf32>
    %152 = vector.shape_cast %149 : vector<16x16x16xf32> to vector<1x16x16x16xf32>
    tpu.vector_store %arg10[%c0_102, %c0_103, %c0_104, %c0_105], %152 {strides = array<i32>} : memref<1x16x16x16xf32, #tpu.memory_space<vmem>>, vector<1x16x16x16xf32>,
    return
  }
  func.func @transform_0(%arg0: i32) -> (i32, i32, i32, i32) {
    %c0_i32 = arith.constant 0 : i32
    %c0_i32_0 = arith.constant 0 : i32
    %c0_i32_1 = arith.constant 0 : i32
    %c0_i32_2 = arith.constant 0 : i32
    return %arg0, %c0_i32, %c0_i32_0, %c0_i32_1 : i32, i32, i32, i32
  }
  func.func @transform_1(%arg0: i32) -> (i32, i32) {
    %c0_i32 = arith.constant 0 : i32
    %c0_i32_0 = arith.constant 0 : i32
    %c0_i32_1 = arith.constant 0 : i32
    return %c0_i32, %c0_i32_0 : i32, i32
  }
  func.func @transform_2(%arg0: i32) -> (i32, i32) {
    %c0_i32 = arith.constant 0 : i32
    %c0_i32_0 = arith.constant 0 : i32
    %c0_i32_1 = arith.constant 0 : i32
    return %c0_i32, %c0_i32_0 : i32, i32
  }
  func.func @transform_3(%arg0: i32) -> (i32, i32, i32) {
    %c0_i32 = arith.constant 0 : i32
    %c0_i32_0 = arith.constant 0 : i32
    %c0_i32_1 = arith.constant 0 : i32
    %c0_i32_2 = arith.constant 0 : i32
    return %c0_i32, %c0_i32_0, %c0_i32_1 : i32, i32, i32
  }
  func.func @transform_4(%arg0: i32) -> (i32, i32) {
    %c0_i32 = arith.constant 0 : i32
    %c0_i32_0 = arith.constant 0 : i32
    %c0_i32_1 = arith.constant 0 : i32
    return %c0_i32, %c0_i32_0 : i32, i32
  }
  func.func @transform_5(%arg0: i32) -> (i32, i32) {
    %c0_i32 = arith.constant 0 : i32
    %c0_i32_0 = arith.constant 0 : i32
    %c0_i32_1 = arith.constant 0 : i32
    return %c0_i32, %c0_i32_0 : i32, i32
  }
  func.func @transform_6(%arg0: i32) -> (i32, i32) {
    %c0_i32 = arith.constant 0 : i32
    %c0_i32_0 = arith.constant 0 : i32
    %c0_i32_1 = arith.constant 0 : i32
    return %c0_i32, %c0_i32_0 : i32, i32
  }
  func.func @transform_7(%arg0: i32) -> (i32, i32, i32) {
    %c0_i32 = arith.constant 0 : i32
    %c0_i32_0 = arith.constant 0 : i32
    %c0_i32_1 = arith.constant 0 : i32
    %c0_i32_2 = arith.constant 0 : i32
    return %c0_i32, %c0_i32_0, %c0_i32_1 : i32, i32, i32
  }
  func.func @transform_8(%arg0: i32) -> (i32, i32) {
    %c0_i32 = arith.constant 0 : i32
    %c0_i32_0 = arith.constant 0 : i32
    %c0_i32_1 = arith.constant 0 : i32
    return %c0_i32, %c0_i32_0 : i32, i32
  }
  func.func @transform_9(%arg0: i32) -> (i32, i32, i32, i32) {
    %c0_i32 = arith.constant 0 : i32
    %c0_i32_0 = arith.constant 0 : i32
    %c0_i32_1 = arith.constant 0 : i32
    %c0_i32_2 = arith.constant 0 : i32
    return %arg0, %c0_i32, %c0_i32_0, %c0_i32_1 : i32, i32, i32, i32
  }
}

</mosaic_0001>

<bundles_post_ra>
// kernel: tpu_custom_call.1
= control target key start
LH: loop header
LB: loop body
LE: loop exit
PB: predicated region body
PF: predicated region fallthrough
CT: control target
= control target key end

     0   :  { %14 = vsyncpa [#allocation5], 0  ;;  %s9712_s0 = inlined_call_operand.hbm [shape: f32[2,16,16,16], index: 0, kind: input, shape index: {}]   ;;  %s9713_s1 = inlined_call_operand.vmem [shape: f32[1,16], index: 1, kind: input, shape index: {}]   ;;  %s9714_s2 = inlined_call_operand.vmem [shape: f32[1,16], index: 2, kind: input, shape index: {}]   ;;  %s9715_s3 = inlined_call_operand.hbm [shape: bf16[9,16,16], index: 3, kind: input, shape index: {}]   ;;  %s9716_s4 = inlined_call_operand.vmem [shape: f32[1,16], index: 4, kind: input, shape index: {}]   ;;  %s9717_s5 = inlined_call_operand.vmem [shape: f32[1,16], index: 5, kind: input, shape index: {}]   ;;  %s9718_s6 = inlined_call_operand.vmem [shape: f32[1,16], index: 6, kind: input, shape index: {}]   ;;  %s9719_s7 = inlined_call_operand.hbm [shape: bf16[9,16,16], index: 7, kind: input, shape index: {}]   ;;  %s9720_s8 = inlined_call_operand.vmem [shape: f32[1,16], index: 8, kind: input, shape index: {}]   ;;  %s9721_s9 = inlined_call_operand.hbm [shape: f32[2,16,16,16], index: 9, kind: output, shape index: {}]  }
   0x1   :  { %16 = vsyncpa [#allocation5 + $0x1], 0 }
   0x2   :  { %17 = vsyncpa [#allocation8], 0 }
   0x3   :  { %18 = vsyncpa [#allocation6], 0 }
   0x4   :  { %20 = vsyncpa [#allocation6 + $0x1], 0  ;;  %s7750_s30 = smov 0   ;;  %s7752_s10 = smov 0  }
   0x5   :  { %s7754_s11 = smov 0   ;;  %s7756_s12 = smov 0  }
   0x6 LB: > { %s7771_s13 = sadd.s32 4294967295, %s7687_s12   ;;  %s5645_s14 = sadd.s32 4294967294, %s7687_s12   ;;  %s7687_s12 = sphi %s7756_s12, %s9744_s12   ;;  %s7683_s11 = sphi %s7754_s11, %s9743_s11   ;;  %s7679_s10 = sphi %s7752_s10, %s9742_s10   ;;  %s7675_s30 = sphi %s7750_s30, %s9741_s30  }
   0x7   : > { %p46_p0 = scmp.ne.s32.totalorder %s7679_s10, %s7675_s30  ;;  %p9722_p1 = scmp.eq.s32.totalorder %s7771_s13, 0 }
   0x8   : > { %p244_p3 = scmp.eq.s32.totalorder %s5645_s14, 1  ;;  %p5646_p5 = scmp.ge.s32.totalorder %s7687_s12, 1 }
   0x9   : > { %p7780_p4 = por %p9722_p1, %p46_p0  ;;  %p251_p7 = scmp.lt.s32.totalorder %s7687_s12, 3 }
   0xa   : > { %p7785_p6 = por %p244_p3, %p46_p0  ;;  %s7689_s18 = smov [#allocation7]  }
   0xb   : > { %s9726_s15 = scalar_select %p7780_p4, 1, 0 }
   0xc   : > { %s9727_s16 = scalar_select %p7785_p6, 1, 0 }
   0xd   : > { %p7790_p8 = pnand %p5646_p5, %p251_p7  ;;  %s269_s19 = sshll.u32 %s7689_s18, 4  ;;  %s7794_s19 = int_to_ptr.vmem [resolvable:$true] %s269_s19 }
   0xe   : > { %9728 = sst [smem:[#allocation14_spill]] %s9727_s16  ;;  %s7690_s21 = smov [#allocation9]  }
   0xf   : > { %p7419_p9 = pneg %p7790_p8  ;;  %s291_s22 = sshll.u32 %s7690_s21, 4  ;;  %s7805_s22 = int_to_ptr.vmem [resolvable:$true] %s291_s22 }
  0x10   : > { %s7531_s25 = scalar_lea.hbm %s9715_s3, 1152 }
  0x11   : > { %p7801_p11 = pnand %p7419_p9, %p9722_p1  ;;  %p7532_p12 = scmp.ne.s32.totalorder %s9715_s3, %s7531_s25 }
  0x12   : > { %p7538_p5 = scmp.lt.u32.totalorder %s7531_s25, %s9715_s3 }
  0x13   : > { %p7533_p13 = pneg %p7801_p11 }
  0x15   : > { %p7534_p0 = pnand %p7533_p13, %p7532_p12 }
  0x17   : > { %p7535_p3 = pneg %p7534_p0 }
  0x19   : > { %p7540_p7 = pnand %p7538_p5, %p7535_p3 }
  0x1b   : > { %7543 = shalt.err (!%p7540_p7)
}
  0x1c   : > { %s7544_s14 = scalar_lea.vmem %s7794_s19, 1152  ;;  %p7552_p2 = scmp.lt.s32.totalorder %s7794_s19, %s7794_s19 }
  0x1d   : > { %p7545_p9 = scmp.ne.s32.totalorder %s7794_s19, %s7544_s14  ;;  %p7553_p12 = scmp.lt.s32.totalorder %s7544_s14, %s7544_s14 }
  0x1f   : > { %p7547_p10 = pnand %p7545_p9, %p7533_p13  ;;  %p7554_p0 = por %p7553_p12, %p7552_p2 }
  0x21   : > { %p7548_p1 = pneg %p7547_p10 }
  0x23   : > { %p7555_p6 = pnand %p7554_p0, %p7548_p1 }
  0x25   : > { %7558 = shalt.err (!%p7555_p6)
}
  0x26   : > { %s7691_s18 = smov 64   ;;  %s7692_s21 = smov 4  }
  0x27   : > { %7422 = dma.hbm_to_vmem [thread:$0]  (!%p7801_p11), %s9715_s3, 1152, %s7794_s19, [#allocation8], %s7691_s18, %s7691_s18, %s7692_s21  }
  0x28   : > { %s7559_s27 = scalar_lea.hbm %s9719_s7, 1152 }
  0x29   : > { %p7560_p2 = scmp.ne.s32.totalorder %s9719_s7, %s7559_s27  ;;  %p7566_p10 = scmp.lt.u32.totalorder %s7559_s27, %s9719_s7 }
  0x2b   : > { %p7562_p1 = pnand %p7560_p2, %p7533_p13 }
  0x2d   : > { %p7563_p6 = pneg %p7562_p1 }
  0x2f   : > { %p7568_p3 = pnand %p7566_p10, %p7563_p6 }
  0x31   : > { %7571 = shalt.err (!%p7568_p3)
}
  0x32   : > { %s7572_s19 = scalar_lea.vmem %s7805_s22, 1152  ;;  %p7580_p12 = scmp.lt.s32.totalorder %s7805_s22, %s7805_s22 }
  0x33   : > { %p7573_p5 = scmp.ne.s32.totalorder %s7805_s22, %s7572_s19  ;;  %p7581_p0 = scmp.lt.s32.totalorder %s7572_s19, %s7572_s19 }
  0x35   : > { %p7575_p7 = pnand %p7573_p5, %p7533_p13  ;;  %p7582_p2 = por %p7581_p0, %p7580_p12 }
  0x37   : > { %p7576_p9 = pneg %p7575_p7 }
  0x39   : > { %p7583_p1 = pnand %p7582_p2, %p7576_p9 }
  0x3b   : > { %7586 = shalt.err (!%p7583_p1)
}
  0x3c   : > { %7425 = dma.hbm_to_vmem [thread:$0]  (!%p7801_p11), %s9719_s7, 1152, %s7805_s22, [#allocation8], %s7691_s18, %s7691_s18, %s7692_s21  }
  0x3d   : > { %s7860_s24 = sadd.s32 1, %s7687_s12   ;;  %s33_s20 = sadd.s32 1, %s7683_s11 }
  0x3e   : > { %s30_s25 = ssub.s32 %s7687_s12, %s7860_s24  ;;  %p40_p13 = scmp.ne.s32.totalorder %s7683_s11, %s7679_s10 }
  0x3f   : > { %p31_p6 = scmp.eq.s32.totalorder %s30_s25, 0  ;;  %p41_p10 = scmp.eq.s32.totalorder %s7687_s12, 0 }
  0x40   : > { %p9731_p3 = scmp.eq.s32.totalorder %s7771_s13, 1  ;;  %p7436_p7 = scmp.lt.s32.totalorder %s7687_s12, 2 }
  0x41   : > { %s7876_s27 = scalar_select %p31_p6, %s7683_s11, %s33_s20  }
  0x42   : > { %p7870_p5 = por %p9731_p3, %p40_p13  ;;  %p42_p9 = por %p41_p10, %p40_p13 }
  0x43   : > { %s308_s28 = sand.u32 1, %s7683_s11   ;;  %s5975_s22 = sshll.u32 %s7687_s12, 12 }
  0x44   : > { %s9732_s26 = scalar_select %p7870_p5, 1, 0 }
  0x45   : > { %s5650_s29 = sshll.u32 %s308_s28, 8  ;;  %s7883_s14 = scalar_lea.hbm %s9712_s0, %s5975_s22 }
  0x46   : > { %s312_s19 = scalar_lea.vmem [#allocation4], %s5650_s29  ;;  %p7887_p11 = pnand %p7436_p7, %p42_p9 }
  0x47   : > { %s319_s16 = sshll.u32 %s312_s19, 4  ;;  %s7891_s20 = scalar_lea.sflag [#allocation5], %s308_s28  ;;  %s7885_s16 = int_to_ptr.vmem [resolvable:$true] %s319_s16 }
  0x48   : > { %s7587_s25 = scalar_lea.hbm %s7883_s14, 4096  ;;  %p7589_p0 = pneg %p7887_p11 }
  0x49   : > { %p7588_p12 = scmp.ne.s32.totalorder %s7883_s14, %s7587_s25  ;;  %s7592_s18 = scalar_lea.hbm %s9712_s0, 8192 }
  0x4a   : > { %p7593_p13 = scmp.lt.u32.totalorder %s7883_s14, %s9712_s0  ;;  %p7594_p6 = scmp.lt.u32.totalorder %s7592_s18, %s7587_s25 }
  0x4b   : > { %p7590_p2 = pnand %p7589_p0, %p7588_p12  ;;  %p7596_p3 = scmp.lt.u32.totalorder %s7587_s25, %s7883_s14 }
  0x4c   : > { %p7595_p10 = por %p7594_p6, %p7593_p13 }
  0x4d   : > { %p7591_p1 = pneg %p7590_p2 }
  0x4e   : > { %p7597_p7 = por %p7596_p3, %p7595_p10 }
  0x50   : > { %p7598_p9 = pnand %p7597_p7, %p7591_p1 }
  0x52   : > { %7601 = shalt.err (!%p7598_p9)
}
  0x53   : > { %s7602_s28 = scalar_lea.vmem %s7885_s16, 4096  ;;  %s7693_s29 = smov [#allocation4]  }
  0x54   : > { %p7603_p12 = scmp.ne.s32.totalorder %s7885_s16, %s7602_s28  ;;  %s7607_s22 = sshll.u32 %s7693_s29, 4  ;;  %s7608_s22 = int_to_ptr.vmem [resolvable:$false] %s7607_s22 }
  0x55   : > { %s7609_s21 = scalar_lea.vmem %s7608_s22, 8192  ;;  %p7610_p4 = scmp.lt.s32.totalorder %s7885_s16, %s7608_s22 }
  0x56   : > { %p7605_p2 = pnand %p7603_p12, %p7589_p0  ;;  %p7611_p13 = scmp.lt.s32.totalorder %s7609_s21, %s7602_s28 }
  0x58   : > { %p7606_p5 = pneg %p7605_p2  ;;  %p7612_p6 = por %p7611_p13, %p7610_p4 }
  0x5a   : > { %p7613_p10 = pnand %p7612_p6, %p7606_p5 }
  0x5c   : > { %7616 = shalt.err (!%p7613_p10)
}
  0x5d   : > { %s7694_s25 = smov 128   ;;  %s7695_s18 = smov 8  }
  0x5e   : > { %7429 = dma.hbm_to_vmem [thread:$0]  (!%p7887_p11), %s7883_s14, 4096, %s7885_s16, %s7891_s20, %s7694_s25, %s7694_s25, %s7695_s18  }
  0x5f   : > { %331 = sbr.rel (%p7790_p8) target bundleno = 1736 (0x6c8), region = 56  ;;  %s7922_s19 = sand.u32 (!%p7790_p8), 1, %s7679_s10  }
  0x60   : > { %s5654_s28 = sshll.u32 (!%p7790_p8), %s7922_s19, 8  ;;  %s334_s29 = scalar_lea.sflag (!%p7790_p8), [#allocation5], %s7922_s19 }
  0x61   : > { %s7928_s22 = scalar_lea.vmem (!%p7790_p8), [#allocation4], %s5654_s28  ;;  %p9734_p4 = scmp.ne.s32.totalorder (!%p7790_p8), %s9726_s15, 0 }
  0x66   : > { %7662 = dma.done.wait (%p9734_p4), %s334_s29, 4096  }
  0x67   : > { %7664 = vsyncadd (%p9734_p4), %s334_s29, 4294963200  ;;  %p9735_p5 = scmp.eq.s32.totalorder %s7771_s13, 0 }
  0x69   : > { %7666 = dma.done.wait (%p9735_p5), [#allocation8], 2304   ;;  %p9736_p8 = pmov %p9735_p5 }
  0x6a   : > { %vm381_vm0 = vcmask 130048   ;;  %vm384_vm1 = vcmask 123904   ;;  %v7696_v0 = vmov 0.0   ;;  %v7481_v1 = vld [vmem:[#allocation7 + $0x8] sm:$0xff]   ;;  %v8158_v7 = vld [vmem:[#allocation7] sm:$0xff]   ;;  %v493_v16 = vld [vmem:[%s7928_s22 + $0x10] sm:$0xff] }
  0x6b   : > { %7668 = vsyncadd (%p9736_p8), [#allocation8], 4294964992  ;;  %382 = vst.msk [vmem:[#allocation2] sm:$0xff] %vm381_vm0, %v7696_v0  ;;  %6283 = vmatprep.subr.bf16.mxu0 %v7481_v1  ;;  %v491_v8 = vld [vmem:[%s7928_s22] sm:$0xff]  ;;  %v492_v9 = vld [vmem:[%s7928_s22 + $0x8] sm:$0xff]  ;;  %vm1400_vm3 = vcmask 1046528  }
  0x6c   : > { %383 = vst.msk [vmem:[#allocation2 + $0x8] sm:$0xff] %vm381_vm0, %v7696_v0  ;;  %386 = vst.msk [vmem:[#allocation2 + $0x18] sm:$0xff] %vm381_vm0, %v7696_v0  ;;  %6284 = vmatpush3.bf16.msra.mxu0 %v7481_v1  ;;  %v8165_v10 = vld [vmem:[%s9713_s1] ss:$0 sm:$0xff]  ;;  %vm758_vm2 = vsmask.f32 7424 }
  0x6d   : > { %385 = vst.msk [vmem:[#allocation2 + $0x10] sm:$0x3] %vm384_vm1, %v7696_v0  ;;  %388 = vst.msk [vmem:[#allocation2 + $0x28] sm:$0x3] %vm384_vm1, %v7696_v0  ;;  %6317 = vmatprep.subr.bf16.mxu0 %v8158_v7  ;;  %v530_v14 = vmul.f32 %v8165_v10, %v491_v8  ;;  %v8175_v15 = vld [vmem:[%s9714_s2] ss:$0 sm:$0xff]  ;;  %v531_v17 = vmul.f32 %v8165_v10, %v492_v9  ;;  %v532_v19 = vmul.f32 %v8165_v10, %v493_v16 }
  0x6e   : > { %387 = vst.msk [vmem:[#allocation2 + $0x20] sm:$0xff] %vm381_vm0, %v7696_v0  ;;  %389 = vst.msk [vmem:[#allocation2 + $0x30] sm:$0xff] %vm381_vm0, %v7696_v0  ;;  %v494_v18 = vld [vmem:[%s7928_s22 + $0x18] sm:$0xff]  ;;  %v495_v20 = vld [vmem:[%s7928_s22 + $0x20] sm:$0xff]  ;;  %s9537_s14 = scalar_lea.vmem [#allocation10], %s5654_s28  ;;  %s5976_s28 = sshll.u32 %s7771_s13, 12 }
  0x6f   : > { %390 = vst.msk [vmem:[#allocation2 + $0x38] sm:$0xff] %vm381_vm0, %v7696_v0  ;;  %392 = vst.msk [vmem:[#allocation2 + $0x48] sm:$0xff] %vm381_vm0, %v7696_v0  ;;  %v496_v21 = vld [vmem:[%s7928_s22 + $0x28] sm:$0xff]  ;;  %v569_v24 = vadd.f32 %v8175_v15, %v530_v14  ;;  %v533_v25 = vmul.f32 %v8165_v10, %v494_v18  ;;  %v497_v26 = vld [vmem:[%s7928_s22 + $0x30] sm:$0xff]  ;;  %v570_v27 = vadd.f32 %v8175_v15, %v531_v17  ;;  %s5553_s16 = sshll.u32 %s9537_s14, 4  ;;  %s9659_s20 = scalar_lea.hbm %s9721_s9, %s5976_s28  ;;  %s9661_s16 = int_to_ptr.vmem [resolvable:$true] %s5553_s16 }
  0x70   : > { %391 = vst.msk [vmem:[#allocation2 + $0x40] sm:$0x3] %vm384_vm1, %v7696_v0  ;;  %394 = vst.msk [vmem:[#allocation2 + $0x58] sm:$0x3] %vm384_vm1, %v7696_v0  ;;  %v571_v28 = vadd.f32 %v8175_v15, %v532_v19  ;;  %v534_v29 = vmul.f32 %v8165_v10, %v495_v20  ;;  %v535_v30 = vmul.f32 %v8165_v10, %v496_v21  ;;  %v498_v31 = vld [vmem:[%s7928_s22 + $0x38] sm:$0xff]  ;;  %v499_v36 = vld [vmem:[%s7928_s22 + $0x40] sm:$0xff] }
  0x71   : > { %393 = vst.msk [vmem:[#allocation2 + $0x50] sm:$0xff] %vm381_vm0, %v7696_v0  ;;  %395 = vst.msk [vmem:[#allocation2 + $0x60] sm:$0xff] %vm381_vm0, %v7696_v0  ;;  %v601_v33 = vmax.f32 %v569_v24, 0.0  ;;  %v572_v34 = vadd.f32 %v8175_v15, %v533_v25  ;;  %v536_v35 = vmul.f32 %v8165_v10, %v497_v26  ;;  %v500_v37 = vld [vmem:[%s7928_s22 + $0x48] sm:$0xff]  ;;  %v602_v38 = vmax.f32 %v570_v27, 0.0  ;;  %v501_v42 = vld [vmem:[%s7928_s22 + $0x50] sm:$0xff] }
  0x72   : > { %396 = vst.msk [vmem:[#allocation2 + $0x68] sm:$0xff] %vm381_vm0, %v7696_v0  ;;  %398 = vst.msk [vmem:[#allocation2 + $0x78] sm:$0xff] %vm381_vm0, %v7696_v0  ;;  %v666_v2 = vld [vmem:[#allocation2] sm:$0xff]  ;;  %v603_v39 = vmax.f32 %v571_v28, 0.0  ;;  %v573_v40 = vadd.f32 %v8175_v15, %v534_v29  ;;  %v574_v41 = vadd.f32 %v8175_v15, %v535_v30  ;;  %v502_v43 = vld [vmem:[%s7928_s22 + $0x58] sm:$0xff]  ;;  %v537_v46 = vmul.f32 %v8165_v10, %v498_v31  ;;  %s5540_s21 = scalar_lea.sflag [#allocation6], %s7922_s19 }
  0x73   : > { %397 = vst.msk [vmem:[#allocation2 + $0x70] sm:$0x3] %vm384_vm1, %v7696_v0  ;;  %400 = vst.msk [vmem:[#allocation2 + $0x88] sm:$0x3] %vm384_vm1, %v7696_v0  ;;  %v667_v3 = vld [vmem:[#allocation2 + $0x8] sm:$0xff]  ;;  %v604_v45 = vmax.f32 %v572_v34, 0.0  ;;  %v575_v47 = vadd.f32 %v8175_v15, %v536_v35  ;;  %v538_v52 = vmul.f32 %v8165_v10, %v499_v36  ;;  %v539_v53 = vmul.f32 %v8165_v10, %v500_v37 }
  0x74   : > { %399 = vst.msk [vmem:[#allocation2 + $0x80] sm:$0xff] %vm381_vm0, %v7696_v0  ;;  %401 = vst.msk [vmem:[#allocation2 + $0x90] sm:$0xff] %vm381_vm0, %v7696_v0  ;;  %v668_v4 = vld [vmem:[#allocation2 + $0x10] sm:$0x3]  ;;  %v8154_v5 = vpack.c.bf16 %v667_v3, %v666_v2  ;;  %v503_v48 = vld [vmem:[%s7928_s22 + $0x60] sm:$0xff]  ;;  %v605_v50 = vmax.f32 %v573_v40, 0.0  ;;  %v576_v55 = vadd.f32 %v8175_v15, %v537_v46  ;;  %v540_v57 = vmul.f32 %v8165_v10, %v501_v42 }
  0x75   : > { %402 = vst.msk [vmem:[#allocation2 + $0x98] sm:$0xff] %vm381_vm0, %v7696_v0  ;;  %404 = vst.msk [vmem:[#allocation2 + $0xa8] sm:$0xff] %vm381_vm0, %v7696_v0  ;;  %v8156_v6 = vpack.c.bf16 %v668_v4, %v668_v4  ;;  %v504_v49 = vld [vmem:[%s7928_s22 + $0x68] sm:$0xff]  ;;  %v606_v51 = vmax.f32 %v574_v41, 0.0  ;;  %v505_v54 = vld [vmem:[%s7928_s22 + $0x70] sm:$0xff]  ;;  %v607_v56 = vmax.f32 %v575_v47, 0.0  ;;  %v541_v58 = vmul.f32 %v8165_v10, %v502_v43 }
  0x76   : > { %403 = vst.msk [vmem:[#allocation2 + $0xa0] sm:$0x3] %vm384_vm1, %v7696_v0  ;;  %406 = vst.msk [vmem:[#allocation2 + $0xb8] sm:$0x3] %vm384_vm1, %v7696_v0  ;;  %v760_v11 = vshrl.u32 %v8154_v5, 16  ;;  %v762_v12 = vshll.u32 %v8154_v5, 16  ;;  %v577_v59 = vadd.f32 %v8175_v15, %v538_v52  ;;  %v578_v60 = vadd.f32 %v8175_v15, %v539_v53 }
  0x77   : > { %405 = vst.msk [vmem:[#allocation2 + $0xb0] sm:$0xff] %vm381_vm0, %v7696_v0  ;;  %407 = vst.msk [vmem:[#allocation2 + $0xc0] sm:$0xff] %vm381_vm0, %v7696_v0  ;;  %v767_v13 = vshll.u32 %v8156_v6, 16  ;;  %v542_v61 = vmul.f32 %v8165_v10, %v503_v48  ;;  %v543_v62 = vmul.f32 %v8165_v10, %v504_v49  ;;  %v506_v63 = vld [vmem:[%s7928_s22 + $0x78] sm:$0xff]  ;;  %v608_v1 = vmax.f32 %v576_v55, 0.0  ;;  %v508_v8 = vld [vmem:[%s7928_s22 + $0x88] sm:$0xff] }
  0x78   : > { %408 = vst.msk [vmem:[#allocation2 + $0xc8] sm:$0xff] %vm381_vm0, %v7696_v0  ;;  %410 = vst.msk [vmem:[#allocation2 + $0xd8] sm:$0xff] %vm381_vm0, %v7696_v0  ;;  %v764_v22 = vrot.slane %v762_v12, 1  ;;  %v579_v2 = vadd.f32 %v8175_v15, %v540_v57  ;;  %v580_v3 = vadd.f32 %v8175_v15, %v541_v58  ;;  %v544_v4 = vmul.f32 %v8165_v10, %v505_v54  ;;  %v509_v14 = vld [vmem:[%s7928_s22 + $0x90] sm:$0xff]  ;;  %v510_v24 = vld [vmem:[%s7928_s22 + $0x98] sm:$0xff]  ;;  %s7617_s25 = scalar_lea.vmem %s9661_s16, 4096 }
  0x79   : > { %409 = vst.msk [vmem:[#allocation2 + $0xd0] sm:$0x3] %vm384_vm1, %v7696_v0  ;;  %412 = vst.msk [vmem:[#allocation2 + $0xe8] sm:$0x3] %vm384_vm1, %v7696_v0  ;;  %v769_v23 = vrot.slane %v767_v13, 1  ;;  %v609_v9 = vmax.f32 %v577_v59, 0.0  ;;  %v581_v12 = vadd.f32 %v8175_v15, %v542_v61  ;;  %v582_v13 = vadd.f32 %v8175_v15, %v543_v62  ;;  %p7618_p11 = scmp.ne.s32.totalorder %s9661_s16, %s7617_s25 }
  0x7a   : > { %411 = vst.msk [vmem:[#allocation2 + $0xe0] sm:$0xff] %vm381_vm0, %v7696_v0  ;;  %413 = vst.msk [vmem:[#allocation2 + $0xf0] sm:$0xff] %vm381_vm0, %v7696_v0  ;;  %v765_v32 = vor.u32 %v764_v22, %v760_v11  ;;  %v610_v11 = vmax.f32 %v578_v60, 0.0  ;;  %v611_v16 = vmax.f32 %v579_v2, 0.0  ;;  %v612_v17 = vmax.f32 %v580_v3, 0.0  ;;  %p9737_p0 = scmp.ne.s32.totalorder %s9732_s26, 0 }
  0x7b   : > { %414 = vst.msk [vmem:[#allocation2 + $0xf8] sm:$0xff] %vm381_vm0, %v7696_v0  ;;  %416 = vst.msk [vmem:[#allocation2 + $0x108] sm:$0xff] %vm381_vm0, %v7696_v0  ;;  %v545_v18 = vmul.f32 %v8165_v10, %v506_v63  ;;  %v583_v19 = vadd.f32 %v8175_v15, %v544_v4  ;;  %v613_v21 = vmax.f32 %v581_v12, 0.0  ;;  %v614_v22 = vmax.f32 %v582_v13, 0.0  ;;  %s7697_s18 = smov [#allocation10]  }
  0x7c   : > { %415 = vst.msk [vmem:[#allocation2 + $0x100] sm:$0x3] %vm384_vm1, %v7696_v0  ;;  %418 = vst.msk [vmem:[#allocation2 + $0x118] sm:$0x3] %vm384_vm1, %v7696_v0  ;;  %v770_v44 = vsel %vm758_vm2, %v765_v32, %v769_v23  ;;  %v8248_v34 = vmul.f32 %v8165_v10, %v508_v8  ;;  %v8257_v42 = vmul.f32 %v8165_v10, %v509_v14  ;;  %v8281_v8 = vld [vmem:[#allocation7 + $0x10] sm:$0xff]   ;;  %p7619_p1 = pnand %p7618_p11, %p9737_p0  ;;  %s7621_s29 = sshll.u32 %s7697_s18, 4  ;;  %s7622_s29 = int_to_ptr.vmem [resolvable:$false] %s7621_s29 }
  0x7d   : > { %417 = vst.msk [vmem:[#allocation2 + $0x110] sm:$0xff] %vm381_vm0, %v7696_v0  ;;  %419 = vst.msk [vmem:[#allocation2 + $0x120] sm:$0xff] %vm381_vm0, %v7696_v0  ;;  %6285 = vmatprep.mubr.msk.bf16.mxu0 %vm381_vm0, %v770_v44  ;;  %v584_v28 = vadd.f32 %v8175_v15, %v545_v18  ;;  %v615_v29 = vmax.f32 %v583_v19, 0.0  ;;  %v8263_v46 = vmul.f32 %v8165_v10, %v510_v24  ;;  %s7623_s15 = scalar_lea.vmem %s7622_s29, 8192  ;;  %p7624_p7 = scmp.lt.s32.totalorder %s9661_s16, %s7622_s29 }
  0x7e   : > { %420 = vst.msk [vmem:[#allocation2 + $0x128] sm:$0xff] %vm381_vm0, %v7696_v0  ;;  %422 = vst.msk [vmem:[#allocation2 + $0x138] sm:$0xff] %vm381_vm0, %v7696_v0  ;;  %p7620_p3 = pneg %p7619_p1  ;;  %p7625_p9 = scmp.lt.s32.totalorder %s7623_s15, %s7617_s25 }
  0x7f   : > { %421 = vst.msk [vmem:[#allocation2 + $0x130] sm:$0x3] %vm384_vm1, %v7696_v0  ;;  %424 = vst.msk [vmem:[#allocation2 + $0x148] sm:$0x3] %vm384_vm1, %v7696_v0  ;;  %v616_v41 = vmax.f32 %v584_v28, 0.0 }
  0x80   : > { %423 = vst.msk [vmem:[#allocation2 + $0x140] sm:$0xff] %vm381_vm0, %v7696_v0  ;;  %425 = vst.msk [vmem:[#allocation2 + $0x150] sm:$0xff] %vm381_vm0, %v7696_v0  ;;  %p7626_p12 = por %p7625_p9, %p7624_p7 }
  0x81   : > { %426 = vst.msk [vmem:[#allocation2 + $0x158] sm:$0xff] %vm381_vm0, %v7696_v0  ;;  %428 = vst.msk [vmem:[#allocation2 + $0x168] sm:$0xff] %vm381_vm0, %v7696_v0 }
  0x82   : > { %427 = vst.msk [vmem:[#allocation2 + $0x160] sm:$0x3] %vm384_vm1, %v7696_v0  ;;  %430 = vst.msk [vmem:[#allocation2 + $0x178] sm:$0x3] %vm384_vm1, %v7696_v0  ;;  %p7627_p2 = pnand %p7626_p12, %p7620_p3 }
  0x83   : > { %429 = vst.msk [vmem:[#allocation2 + $0x170] sm:$0xff] %vm381_vm0, %v7696_v0  ;;  %431 = vst.msk [vmem:[#allocation2 + $0x180] sm:$0xff] %vm381_vm0, %v7696_v0 }
  0x84   : > { %432 = vst.msk [vmem:[#allocation2 + $0x188] sm:$0xff] %vm381_vm0, %v7696_v0  ;;  %434 = vst.msk [vmem:[#allocation2 + $0x198] sm:$0xff] %vm381_vm0, %v7696_v0 }
  0x85   : > { %433 = vst.msk [vmem:[#allocation2 + $0x190] sm:$0x3] %vm384_vm1, %v7696_v0  ;;  %436 = vst.msk [vmem:[#allocation2 + $0x1a8] sm:$0x3] %vm384_vm1, %v7696_v0 }
  0x86   : > { %435 = vst.msk [vmem:[#allocation2 + $0x1a0] sm:$0xff] %vm381_vm0, %v7696_v0  ;;  %437 = vst.msk [vmem:[#allocation3] sm:$0xff] %vm381_vm0, %v7696_v0 }
  0x87   : > { %438 = vst.msk [vmem:[#allocation3 + $0x8] sm:$0xff] %vm381_vm0, %v7696_v0  ;;  %440 = vst.msk [vmem:[#allocation3 + $0x18] sm:$0xff] %vm381_vm0, %v7696_v0 }
  0x88   : > { %439 = vst.msk [vmem:[#allocation3 + $0x10] sm:$0x3] %vm384_vm1, %v7696_v0  ;;  %442 = vst.msk [vmem:[#allocation3 + $0x28] sm:$0x3] %vm384_vm1, %v7696_v0 }
  0x89   : > { %441 = vst.msk [vmem:[#allocation3 + $0x20] sm:$0xff] %vm381_vm0, %v7696_v0  ;;  %443 = vst.msk [vmem:[#allocation3 + $0x30] sm:$0xff] %vm381_vm0, %v7696_v0 }
  0x8a   : > { %444 = vst.msk [vmem:[#allocation3 + $0x38] sm:$0xff] %vm381_vm0, %v7696_v0  ;;  %446 = vst.msk [vmem:[#allocation3 + $0x48] sm:$0xff] %vm381_vm0, %v7696_v0 }
  0x8b   : > { %445 = vst.msk [vmem:[#allocation3 + $0x40] sm:$0x3] %vm384_vm1, %v7696_v0  ;;  %448 = vst.msk [vmem:[#allocation3 + $0x58] sm:$0x3] %vm384_vm1, %v7696_v0 }
  0x8c   : > { %447 = vst.msk [vmem:[#allocation3 + $0x50] sm:$0xff] %vm381_vm0, %v7696_v0  ;;  %449 = vst.msk [vmem:[#allocation3 + $0x60] sm:$0xff] %vm381_vm0, %v7696_v0 }
  0x8d   : > { %450 = vst.msk [vmem:[#allocation3 + $0x68] sm:$0xff] %vm381_vm0, %v7696_v0  ;;  %452 = vst.msk [vmem:[#allocation3 + $0x78] sm:$0xff] %vm381_vm0, %v7696_v0 }
  0x8e   : > { %451 = vst.msk [vmem:[#allocation3 + $0x70] sm:$0x3] %vm384_vm1, %v7696_v0  ;;  %454 = vst.msk [vmem:[#allocation3 + $0x88] sm:$0x3] %vm384_vm1, %v7696_v0 }
  0x8f   : > { %453 = vst.msk [vmem:[#allocation3 + $0x80] sm:$0xff] %vm381_vm0, %v7696_v0  ;;  %455 = vst.msk [vmem:[#allocation3 + $0x90] sm:$0xff] %vm381_vm0, %v7696_v0 }
  0x90   : > { %456 = vst.msk [vmem:[#allocation3 + $0x98] sm:$0xff] %vm381_vm0, %v7696_v0  ;;  %458 = vst.msk [vmem:[#allocation3 + $0xa8] sm:$0xff] %vm381_vm0, %v7696_v0 }
  0x91   : > { %457 = vst.msk [vmem:[#allocation3 + $0xa0] sm:$0x3] %vm384_vm1, %v7696_v0  ;;  %460 = vst.msk [vmem:[#allocation3 + $0xb8] sm:$0x3] %vm384_vm1, %v7696_v0 }
  0x92   : > { %459 = vst.msk [vmem:[#allocation3 + $0xb0] sm:$0xff] %vm381_vm0, %v7696_v0  ;;  %461 = vst.msk [vmem:[#allocation3 + $0xc0] sm:$0xff] %vm381_vm0, %v7696_v0 }
  0x93   : > { %462 = vst.msk [vmem:[#allocation3 + $0xc8] sm:$0xff] %vm381_vm0, %v7696_v0  ;;  %464 = vst.msk [vmem:[#allocation3 + $0xd8] sm:$0xff] %vm381_vm0, %v7696_v0 }
  0x94   : > { %463 = vst.msk [vmem:[#allocation3 + $0xd0] sm:$0x3] %vm384_vm1, %v7696_v0  ;;  %466 = vst.msk [vmem:[#allocation3 + $0xe8] sm:$0x3] %vm384_vm1, %v7696_v0 }
  0x95   : > { %465 = vst.msk [vmem:[#allocation3 + $0xe0] sm:$0xff] %vm381_vm0, %v7696_v0  ;;  %467 = vst.msk [vmem:[#allocation3 + $0xf0] sm:$0xff] %vm381_vm0, %v7696_v0 }
  0x96   : > { %468 = vst.msk [vmem:[#allocation3 + $0xf8] sm:$0xff] %vm381_vm0, %v7696_v0  ;;  %470 = vst.msk [vmem:[#allocation3 + $0x108] sm:$0xff] %vm381_vm0, %v7696_v0 }
  0x97   : > { %469 = vst.msk [vmem:[#allocation3 + $0x100] sm:$0x3] %vm384_vm1, %v7696_v0  ;;  %472 = vst.msk [vmem:[#allocation3 + $0x118] sm:$0x3] %vm384_vm1, %v7696_v0 }
  0x98   : > { %471 = vst.msk [vmem:[#allocation3 + $0x110] sm:$0xff] %vm381_vm0, %v7696_v0  ;;  %473 = vst.msk [vmem:[#allocation3 + $0x120] sm:$0xff] %vm381_vm0, %v7696_v0 }
  0x99   : > { %474 = vst.msk [vmem:[#allocation3 + $0x128] sm:$0xff] %vm381_vm0, %v7696_v0  ;;  %476 = vst.msk [vmem:[#allocation3 + $0x138] sm:$0xff] %vm381_vm0, %v7696_v0 }
  0x9a   : > { %475 = vst.msk [vmem:[#allocation3 + $0x130] sm:$0x3] %vm384_vm1, %v7696_v0  ;;  %478 = vst.msk [vmem:[#allocation3 + $0x148] sm:$0x3] %vm384_vm1, %v7696_v0 }
  0x9b   : > { %477 = vst.msk [vmem:[#allocation3 + $0x140] sm:$0xff] %vm381_vm0, %v7696_v0  ;;  %479 = vst.msk [vmem:[#allocation3 + $0x150] sm:$0xff] %vm381_vm0, %v7696_v0 }
  0x9c   : > { %480 = vst.msk [vmem:[#allocation3 + $0x158] sm:$0xff] %vm381_vm0, %v7696_v0  ;;  %482 = vst.msk [vmem:[#allocation3 + $0x168] sm:$0xff] %vm381_vm0, %v7696_v0 }
  0x9d   : > { %481 = vst.msk [vmem:[#allocation3 + $0x160] sm:$0x3] %vm384_vm1, %v7696_v0  ;;  %484 = vst.msk [vmem:[#allocation3 + $0x178] sm:$0x3] %vm384_vm1, %v7696_v0 }
  0x9e   : > { %483 = vst.msk [vmem:[#allocation3 + $0x170] sm:$0xff] %vm381_vm0, %v7696_v0  ;;  %485 = vst.msk [vmem:[#allocation3 + $0x180] sm:$0xff] %vm381_vm0, %v7696_v0 }
  0x9f   : > { %486 = vst.msk [vmem:[#allocation3 + $0x188] sm:$0xff] %vm381_vm0, %v7696_v0  ;;  %488 = vst.msk [vmem:[#allocation3 + $0x198] sm:$0xff] %vm381_vm0, %v7696_v0 }
  0xa0   : > { %487 = vst.msk [vmem:[#allocation3 + $0x190] sm:$0x3] %vm384_vm1, %v7696_v0  ;;  %490 = vst.msk [vmem:[#allocation3 + $0x1a8] sm:$0x3] %vm384_vm1, %v7696_v0 }
  0xa1   : > { %489 = vst.msk [vmem:[#allocation3 + $0x1a0] sm:$0xff] %vm381_vm0, %v7696_v0  ;;  %634 = vst.msk [vmem:[#allocation2 + $0x19] sm:$0xff] %vm381_vm0, %v601_v33  ;;  %v507_v0 = vld [vmem:[%s7928_s22 + $0x80] sm:$0xff] }
  0xa2   : > { %635 = vst.msk [vmem:[#allocation2 + $0x21] sm:$0xff] %vm381_vm0, %v602_v38  ;;  %636 = vst.msk [vmem:[#allocation2 + $0x31] sm:$0xff] %vm381_vm0, %v603_v39  ;;  %v546_v23 = vmul.f32 %v8165_v10, %v507_v0 }
  0xa3   : > { %637 = vst.msk [vmem:[#allocation2 + $0x39] sm:$0xff] %vm381_vm0, %v604_v45  ;;  %638 = vst.msk [vmem:[#allocation2 + $0x49] sm:$0xff] %vm381_vm0, %v605_v50 }
  0xa4   : > { %639 = vst.msk [vmem:[#allocation2 + $0x51] sm:$0xff] %vm381_vm0, %v606_v51  ;;  %640 = vst.msk [vmem:[#allocation2 + $0x61] sm:$0xff] %vm381_vm0, %v607_v56  ;;  %v585_v35 = vadd.f32 %v8175_v15, %v546_v23 }
  0xa5   : > { %641 = vst.msk [vmem:[#allocation2 + $0x69] sm:$0xff] %vm381_vm0, %v608_v1  ;;  %642 = vst.msk [vmem:[#allocation2 + $0x79] sm:$0xff] %vm381_vm0, %v609_v9 }
  0xa6   : > { %643 = vst.msk [vmem:[#allocation2 + $0x81] sm:$0xff] %vm381_vm0, %v610_v11  ;;  %644 = vst.msk [vmem:[#allocation2 + $0x91] sm:$0xff] %vm381_vm0, %v611_v16  ;;  %v617_v57 = vmax.f32 %v585_v35, 0.0 }
  0xa7   : > { %645 = vst.msk [vmem:[#allocation2 + $0x99] sm:$0xff] %vm381_vm0, %v612_v17  ;;  %646 = vst.msk [vmem:[#allocation2 + $0xa9] sm:$0xff] %vm381_vm0, %v613_v21 }
  0xa8   : > { %v669_v20 = vld [vmem:[#allocation2 + $0x18] sm:$0xff]  ;;  %647 = vst.msk [vmem:[#allocation2 + $0xb1] sm:$0xff] %vm381_vm0, %v614_v22  ;;  %648 = vst.msk [vmem:[#allocation2 + $0xc1] sm:$0xff] %vm381_vm0, %v615_v29 }
  0xa9   : > { %v670_v25 = vld [vmem:[#allocation2 + $0x20] sm:$0xff]  ;;  %v671_v26 = vld [vmem:[#allocation2 + $0x28] sm:$0x3]  ;;  %v672_v27 = vld [vmem:[#allocation2 + $0x30] sm:$0xff]  ;;  %649 = vst.msk [vmem:[#allocation2 + $0xc9] sm:$0xff] %vm381_vm0, %v616_v41 }
  0xaa   : > { %v8241_v30 = vpack.c.bf16 %v670_v25, %v669_v20  ;;  %v8243_v31 = vpack.c.bf16 %v671_v26, %v671_v26  ;;  %v673_v32 = vld [vmem:[#allocation2 + $0x38] sm:$0xff]  ;;  %v674_v33 = vld [vmem:[#allocation2 + $0x40] sm:$0x3]  ;;  %v675_v38 = vld [vmem:[#allocation2 + $0x48] sm:$0xff]  ;;  %650 = vst.msk [vmem:[#allocation2 + $0xd9] sm:$0xff] %vm381_vm0, %v617_v57 }
  0xab   : > { %v8251_v36 = vpack.c.bf16 %v673_v32, %v672_v27  ;;  %v8253_v37 = vpack.c.bf16 %v674_v33, %v674_v33  ;;  %v676_v39 = vld [vmem:[#allocation2 + $0x50] sm:$0xff]  ;;  %v677_v40 = vld [vmem:[#allocation2 + $0x58] sm:$0x3]  ;;  %v678_v51 = vld [vmem:[#allocation2 + $0x60] sm:$0xff] }
  0xac   : > { %v772_v43 = vshrl.u32 %v8241_v30, 16  ;;  %v774_v44 = vshll.u32 %v8241_v30, 16  ;;  %v779_v45 = vshll.u32 %v8243_v31, 16  ;;  %v8268_v50 = vpack.c.bf16 %v676_v39, %v675_v38  ;;  %v679_v55 = vld [vmem:[#allocation2 + $0x68] sm:$0xff]  ;;  %v680_v56 = vld [vmem:[#allocation2 + $0x70] sm:$0x3] }
  0xad   : > { %v784_v47 = vshrl.u32 %v8251_v36, 16  ;;  %v786_v48 = vshll.u32 %v8251_v36, 16  ;;  %v791_v49 = vshll.u32 %v8253_v37, 16  ;;  %v8271_v54 = vpack.c.bf16 %v677_v40, %v677_v40  ;;  %v681_v62 = vld [vmem:[#allocation2 + $0x78] sm:$0xff]  ;;  %v682_v63 = vld [vmem:[#allocation2 + $0x80] sm:$0xff]  ;;  %v684_v14 = vld [vmem:[#allocation2 + $0x90] sm:$0xff] }
  0xae   : > { %v776_v52 = vrot.slane %v774_v44, 1  ;;  %v781_v53 = vrot.slane %v779_v45, 1  ;;  %v796_v60 = vshrl.u32 %v8268_v50, 16  ;;  %v798_v61 = vshll.u32 %v8268_v50, 16  ;;  %v683_v4 = vld [vmem:[#allocation2 + $0x88] sm:$0x3] }
  0xaf   : > { %v788_v58 = vrot.slane %v786_v48, 1  ;;  %v793_v59 = vrot.slane %v791_v49, 1  ;;  %v803_v1 = vshll.u32 %v8271_v54, 16  ;;  %v8276_v2 = vpack.c.bf16 %v679_v55, %v678_v51  ;;  %v685_v16 = vld [vmem:[#allocation2 + $0x98] sm:$0xff]  ;;  %v686_v17 = vld [vmem:[#allocation2 + $0xa0] sm:$0x3] }
  0xb0   : > { %v777_v0 = vor.u32 %v776_v52, %v772_v43  ;;  %v8278_v3 = vpack.c.bf16 %v680_v56, %v680_v56  ;;  %v800_v11 = vrot.slane %v798_v61, 1  ;;  %v8283_v12 = vpack.c.bf16 %v682_v63, %v681_v62  ;;  %v687_v22 = vld [vmem:[#allocation2 + $0xa8] sm:$0xff]  ;;  %v688_v23 = vld [vmem:[#allocation2 + $0xb0] sm:$0xff]  ;;  %v689_v35 = vld [vmem:[#allocation2 + $0xb8] sm:$0x3] }
  0xb1   : > { %v789_v9 = vor.u32 %v788_v58, %v784_v47  ;;  %v8285_v13 = vpack.c.bf16 %v683_v4, %v683_v4  ;;  %v805_v19 = vrot.slane %v803_v1, 1  ;;  %v808_v20 = vshrl.u32 %v8276_v2, 16  ;;  %v690_v38 = vld [vmem:[#allocation2 + $0xc0] sm:$0xff]  ;;  %v691_v43 = vld [vmem:[#allocation2 + $0xc8] sm:$0xff]  ;;  %v692_v48 = vld [vmem:[#allocation2 + $0xd0] sm:$0x3] }
  0xb2   : > { %v8288_v18 = vsel %vm758_vm2, %v777_v0, %v781_v53  ;;  %v810_v21 = vshll.u32 %v8276_v2, 16  ;;  %v801_v25 = vor.u32 %v800_v11, %v796_v60  ;;  %v815_v26 = vshll.u32 %v8278_v3, 16  ;;  %v512_v63 = vld [vmem:[%s7928_s22 + $0xa8] sm:$0xff]  ;;  %v513_v0 = vld [vmem:[%s7928_s22 + $0xb0] sm:$0xff]  ;;  %v514_v11 = vld [vmem:[%s7928_s22 + $0xb8] sm:$0xff] }
  0xb3   : > { %6286 = vmatmul.mubr.msk.bf16.vlgmr.msra.gmra.mrb[0].mxu0 %vm381_vm0, %v8288_v18  ;;  %v8295_v24 = vsel %vm758_vm2, %v789_v9, %v793_v59  ;;  %v820_v27 = vshrl.u32 %v8283_v12, 16  ;;  %v822_v29 = vshll.u32 %v8283_v12, 16  ;;  %v827_v32 = vshll.u32 %v8285_v13, 16  ;;  %v511_v59 = vld [vmem:[%s7928_s22 + $0xa0] sm:$0xff] }
  0xb4   : > { %6318 = vmatpush3.bf16.msra.mxu0 %v8158_v7  ;;  %6289 = vmatprep.mubr.msk.bf16.mxu0 %vm381_vm0, %v8295_v24  ;;  %v812_v28 = vrot.slane %v810_v21, 1  ;;  %v8304_v33 = vpack.c.bf16 %v685_v16, %v684_v14  ;;  %v817_v39 = vrot.slane %v815_v26, 1  ;;  %v8306_v40 = vpack.c.bf16 %v686_v17, %v686_v17  ;;  %v515_v14 = vld [vmem:[%s7928_s22 + $0xc0] sm:$0xff]  ;;  %v516_v21 = vld [vmem:[%s7928_s22 + $0xc8] sm:$0xff] }
  0xb5   : > { %v8308_v41 = vpack.c.bf16 %v688_v23, %v687_v22  ;;  %v586_v7 = vadd.f32 %v8175_v15, %v8248_v34  ;;  %6351 = vmatprep.subr.bf16.mxu0 %v8281_v8  ;;  %v8314_v44 = vsel %vm758_vm2, %v801_v25, %v805_v19  ;;  %v824_v47 = vrot.slane %v822_v29, 1  ;;  %v517_v22 = vld [vmem:[%s7928_s22 + $0xd0] sm:$0xff] }
  0xb6   : > { %v813_v45 = vor.u32 %v812_v28, %v808_v20  ;;  %v587_v49 = vadd.f32 %v8175_v15, %v8257_v42  ;;  %v829_v51 = vrot.slane %v827_v32, 1  ;;  %v834_v52 = vshll.u32 %v8304_v33, 16 }
  0xb7   : > { %v839_v53 = vshll.u32 %v8306_v40, 16  ;;  %v8320_v34 = vpack.c.bf16 %v689_v35, %v689_v35  ;;  %v825_v55 = vor.u32 %v824_v47, %v820_v27  ;;  %v832_v56 = vshrl.u32 %v8304_v33, 16  ;;  %v519_v47 = vld [vmem:[%s7928_s22 + $0xe0] sm:$0xff] }
  0xb8   : > { %v846_v57 = vshll.u32 %v8308_v41, 16  ;;  %v8324_v58 = vpack.c.bf16 %v691_v43, %v690_v38  ;;  %v8328_v60 = vsel %vm758_vm2, %v813_v45, %v817_v39  ;;  %v836_v42 = vrot.slane %v834_v52, 1  ;;  %v518_v38 = vld [vmem:[%s7928_s22 + $0xd8] sm:$0xff] }
  0xb9   : > { %v851_v61 = vshll.u32 %v8320_v34, 16  ;;  %v8331_v62 = vpack.c.bf16 %v692_v48, %v692_v48  ;;  %v844_v1 = vshrl.u32 %v8308_v41, 16  ;;  %v8342_v16 = vsel %vm758_vm2, %v825_v55, %v829_v51  ;;  %v520_v48 = vld [vmem:[%s7928_s22 + $0xe8] sm:$0xff] }
  0xba   : > { %v848_v4 = vrot.slane %v846_v57, 1  ;;  %v858_v9 = vshll.u32 %v8324_v58, 16  ;;  %v841_v17 = vrot.slane %v839_v53, 1  ;;  %v618_v20 = vmax.f32 %v586_v7, 0.0 }
  0xbb   : > { %6290 = vmatmul.mubr.msk.bf16.gmra.mrb[4].mxu0 %vm381_vm0, %v8314_v44  ;;  %v863_v19 = vshll.u32 %v8331_v62, 16  ;;  %v837_v23 = vor.u32 %v836_v42, %v832_v56  ;;  %v856_v25 = vshrl.u32 %v8324_v58, 16  ;;  %v588_v26 = vadd.f32 %v8175_v15, %v8263_v46 }
  0xbc   : > { %6293 = vmatprep.mubr.msk.bf16.mxu0 %vm381_vm0, %v8328_v60  ;;  %v619_v27 = vmax.f32 %v587_v49, 0.0  ;;  %v853_v28 = vrot.slane %v851_v61, 1  ;;  %v860_v29 = vrot.slane %v858_v9, 1  ;;  %651 = vst.msk [vmem:[#allocation2 + $0xe1] sm:$0xff] %vm381_vm0, %v618_v20  ;;  %v550_v32 = vmul.f32 %v8165_v10, %v511_v59 }
  0xbd   : > { %v551_v35 = vmul.f32 %v8165_v10, %v512_v63  ;;  %v849_v39 = vor.u32 %v848_v4, %v844_v1  ;;  %v865_v43 = vrot.slane %v863_v19, 1  ;;  %v620_v7 = vmax.f32 %v588_v26, 0.0 }
  0xbe   : > { %652 = vst.msk [vmem:[#allocation2 + $0xf1] sm:$0xff] %vm381_vm0, %v619_v27  ;;  %v552_v45 = vmul.f32 %v8165_v10, %v513_v0  ;;  %v589_v46 = vadd.f32 %v8175_v15, %v550_v32  ;;  %v553_v51 = vmul.f32 %v8165_v10, %v514_v11  ;;  %v554_v52 = vmul.f32 %v8165_v10, %v515_v14  ;;  %v693_v0 = vld [vmem:[#allocation2 + $0xd8] sm:$0xff] }
  0xbf   : > { %v590_v49 = vadd.f32 %v8175_v15, %v551_v35  ;;  %v8365_v53 = vsel %vm758_vm2, %v837_v23, %v841_v17  ;;  %653 = vst.msk [vmem:[#allocation2 + $0xf9] sm:$0xff] %vm381_vm0, %v620_v7  ;;  %v555_v56 = vmul.f32 %v8165_v10, %v516_v21  ;;  %v556_v57 = vmul.f32 %v8165_v10, %v517_v22 }
  0xc0   : > { %v591_v55 = vadd.f32 %v8175_v15, %v552_v45  ;;  %v621_v59 = vmax.f32 %v589_v46, 0.0  ;;  %v592_v61 = vadd.f32 %v8175_v15, %v553_v51  ;;  %v593_v63 = vadd.f32 %v8175_v15, %v554_v52 }
  0xc1   : > { %v622_v42 = vmax.f32 %v590_v49, 0.0  ;;  %v594_v4 = vadd.f32 %v8175_v15, %v555_v56  ;;  %v557_v9 = vmul.f32 %v8165_v10, %v518_v38  ;;  %v595_v11 = vadd.f32 %v8175_v15, %v556_v57 }
  0xc2   : > { %v623_v1 = vmax.f32 %v591_v55, 0.0  ;;  %654 = vst.msk [vmem:[#allocation2 + $0x109] sm:$0xff] %vm381_vm0, %v621_v59  ;;  %v624_v14 = vmax.f32 %v592_v61, 0.0  ;;  %v625_v17 = vmax.f32 %v593_v63, 0.0  ;;  %v558_v19 = vmul.f32 %v8165_v10, %v519_v47 }
  0xc3   : > { %6294 = vmatmul.mubr.msk.bf16.gmra.mrb[8].mxu0 %vm381_vm0, %v8342_v16  ;;  %655 = vst.msk [vmem:[#allocation2 + $0x111] sm:$0xff] %vm381_vm0, %v622_v42  ;;  %v559_v20 = vmul.f32 %v8165_v10, %v520_v48  ;;  %v861_v21 = vor.u32 %v860_v29, %v856_v25  ;;  %v694_v22 = vld [vmem:[#allocation2 + $0xe0] sm:$0xff]  ;;  %v695_v23 = vld [vmem:[#allocation2 + $0xe8] sm:$0x3]  ;;  %v626_v26 = vmax.f32 %v594_v4, 0.0  ;;  %v596_v27 = vadd.f32 %v8175_v15, %v557_v9 }
  0xc4   : > { %6297 = vmatprep.mubr.msk.bf16.mxu0 %vm381_vm0, %v8365_v53  ;;  %656 = vst.msk [vmem:[#allocation2 + $0x121] sm:$0xff] %vm381_vm0, %v623_v1  ;;  %v627_v32 = vmax.f32 %v595_v11, 0.0  ;;  %v8386_v35 = vpack.c.bf16 %v694_v22, %v693_v0  ;;  %v8388_v38 = vpack.c.bf16 %v695_v23, %v695_v23  ;;  %657 = vst.msk [vmem:[#allocation2 + $0x129] sm:$0xff] %vm381_vm0, %v624_v14 }
  0xc5   : > { %v696_v7 = vld [vmem:[#allocation2 + $0xf0] sm:$0xff]  ;;  %658 = vst.msk [vmem:[#allocation2 + $0x139] sm:$0xff] %vm381_vm0, %v625_v17  ;;  %v597_v45 = vadd.f32 %v8175_v15, %v558_v19  ;;  %v598_v25 = vadd.f32 %v8175_v15, %v559_v20  ;;  %659 = vst.msk [vmem:[#allocation2 + $0x141] sm:$0xff] %vm381_vm0, %v626_v26  ;;  %v628_v29 = vmax.f32 %v596_v27, 0.0  ;;  %v8397_v47 = vsel %vm758_vm2, %v849_v39, %v853_v28 }
  0xc6   : > { %660 = vst.msk [vmem:[#allocation2 + $0x151] sm:$0xff] %vm381_vm0, %v627_v32  ;;  %v868_v48 = vshrl.u32 %v8386_v35, 16  ;;  %v870_v46 = vshll.u32 %v8386_v35, 16  ;;  %v875_v49 = vshll.u32 %v8388_v38, 16  ;;  %v697_v51 = vld [vmem:[#allocation2 + $0xf8] sm:$0xff]  ;;  %v8408_v42 = vsel %vm758_vm2, %v861_v21, %v865_v43 }
  0xc7   : > { %v698_v52 = vld [vmem:[#allocation2 + $0x100] sm:$0x3]  ;;  %v8402_v55 = vpack.c.bf16 %v697_v51, %v696_v7  ;;  %661 = vst.msk [vmem:[#allocation2 + $0x159] sm:$0xff] %vm381_vm0, %v628_v29  ;;  %v629_v57 = vmax.f32 %v597_v45, 0.0  ;;  %v630_v59 = vmax.f32 %v598_v25, 0.0 }
  0xc8   : > { %v8404_v56 = vpack.c.bf16 %v698_v52, %v698_v52  ;;  %v872_v28 = vrot.slane %v870_v46, 1  ;;  %v877_v9 = vrot.slane %v875_v49, 1 }
  0xc9   : > { %v880_v39 = vshrl.u32 %v8402_v55, 16  ;;  %v882_v61 = vshll.u32 %v8402_v55, 16  ;;  %v699_v0 = vld [vmem:[#allocation2 + $0x108] sm:$0xff]  ;;  %662 = vst.msk [vmem:[#allocation2 + $0x169] sm:$0xff] %vm381_vm0, %v629_v57  ;;  %663 = vst.msk [vmem:[#allocation2 + $0x171] sm:$0xff] %vm381_vm0, %v630_v59 }
  0xca   : > { %v887_v63 = vshll.u32 %v8404_v56, 16  ;;  %v700_v1 = vld [vmem:[#allocation2 + $0x110] sm:$0xff]  ;;  %v873_v4 = vor.u32 %v872_v28, %v868_v48  ;;  %v701_v43 = vld [vmem:[#allocation2 + $0x118] sm:$0x3] }
  0xcb   : > { %6298 = vmatmul.mubr.msk.bf16.gmra.mrb[12].mxu0 %vm381_vm0, %v8397_v47  ;;  %v8417_v11 = vpack.c.bf16 %v700_v1, %v699_v0  ;;  %v702_v14 = vld [vmem:[#allocation2 + $0x120] sm:$0xff]  ;;  %v884_v17 = vrot.slane %v882_v61, 1  ;;  %v8421_v19 = vpack.c.bf16 %v701_v43, %v701_v43  ;;  %v703_v20 = vld [vmem:[#allocation2 + $0x128] sm:$0xff]  ;;  %v704_v21 = vld [vmem:[#allocation2 + $0x130] sm:$0x3] }
  0xcc   : > { %6301 = vmatprep.mubr.msk.bf16.mxu0 %vm381_vm0, %v8408_v42  ;;  %v889_v22 = vrot.slane %v887_v63, 1  ;;  %v8424_v26 = vpack.c.bf16 %v703_v20, %v702_v14  ;;  %v705_v27 = vld [vmem:[#allocation2 + $0x138] sm:$0xff]  ;;  %v706_v32 = vld [vmem:[#allocation2 + $0x140] sm:$0xff]  ;;  %v8426_v45 = vpack.c.bf16 %v704_v21, %v704_v21  ;;  %v8429_v25 = vsel %vm758_vm2, %v873_v4, %v877_v9  ;;  %v707_v63 = vld [vmem:[#allocation2 + $0x148] sm:$0x3] }
  0xcd   : > { %v894_v23 = vshll.u32 %v8417_v11, 16  ;;  %v885_v7 = vor.u32 %v884_v17, %v880_v39  ;;  %v708_v48 = vld [vmem:[#allocation2 + $0x150] sm:$0xff]  ;;  %v892_v49 = vshrl.u32 %v8417_v11, 16  ;;  %v899_v52 = vshll.u32 %v8421_v19, 16 }
  0xce   : > { %v906_v29 = vshll.u32 %v8424_v26, 16  ;;  %v709_v46 = vld [vmem:[#allocation2 + $0x158] sm:$0xff]  ;;  %v8434_v57 = vpack.c.bf16 %v706_v32, %v705_v27  ;;  %v904_v28 = vshrl.u32 %v8424_v26, 16  ;;  %v911_v61 = vshll.u32 %v8426_v45, 16  ;;  %v710_v0 = vld [vmem:[#allocation2 + $0x160] sm:$0x3] }
  0xcf   : > { %v896_v51 = vrot.slane %v894_v23, 1  ;;  %v8437_v59 = vsel %vm758_vm2, %v885_v7, %v889_v22  ;;  %v8441_v1 = vpack.c.bf16 %v709_v46, %v708_v48  ;;  %v901_v9 = vrot.slane %v899_v52, 1 }
  0xd0   : > { %v908_v39 = vrot.slane %v906_v29, 1  ;;  %v8447_v43 = vpack.c.bf16 %v707_v63, %v707_v63  ;;  %v918_v14 = vshll.u32 %v8434_v57, 16  ;;  %v913_v20 = vrot.slane %v911_v61, 1  ;;  %v711_v23 = vld [vmem:[#allocation2 + $0x168] sm:$0xff]  ;;  %v712_v27 = vld [vmem:[#allocation2 + $0x170] sm:$0xff] }
  0xd1   : > { %v897_v4 = vor.u32 %v896_v51, %v892_v49  ;;  %v8450_v21 = vpack.c.bf16 %v710_v0, %v710_v0  ;;  %v930_v22 = vshll.u32 %v8441_v1, 16  ;;  %v916_v32 = vshrl.u32 %v8434_v57, 16 }
  0xd2   : > { %v909_v17 = vor.u32 %v908_v39, %v904_v28  ;;  %v920_v29 = vrot.slane %v918_v14, 1  ;;  %v923_v48 = vshll.u32 %v8447_v43, 16  ;;  %v8458_v46 = vpack.c.bf16 %v712_v27, %v711_v23  ;;  %v713_v39 = vld [vmem:[#allocation2 + $0x178] sm:$0x3] }
  0xd3   : > { %6302 = vmatmul.mubr.msk.bf16.gmra.mrb[16].mxu0 %vm381_vm0, %v8429_v25  ;;  %v8455_v7 = vsel %vm758_vm2, %v897_v4, %v901_v9  ;;  %v928_v51 = vshrl.u32 %v8441_v1, 16  ;;  %v932_v52 = vrot.slane %v930_v22, 1  ;;  %v935_v28 = vshll.u32 %v8450_v21, 16 }
  0xd4   : > { %6305 = vmatprep.mubr.msk.bf16.mxu0 %vm381_vm0, %v8437_v59  ;;  %v8461_v49 = vsel %vm758_vm2, %v909_v17, %v913_v20  ;;  %v921_v61 = vor.u32 %v920_v29, %v916_v32  ;;  %v925_v63 = vrot.slane %v923_v48, 1  ;;  %v8469_v0 = vpack.c.bf16 %v713_v39, %v713_v39 }
  0xd5   : > { %v942_v4 = vshll.u32 %v8458_v46, 16  ;;  %v933_v9 = vor.u32 %v932_v52, %v928_v51  ;;  %v937_v14 = vrot.slane %v935_v28, 1  ;;  %v940_v20 = vshrl.u32 %v8458_v46, 16  ;;  %v7484_v51 = vld [vmem:[#allocation7 + $0x18] sm:$0xff]  }
  0xd6   : > { %v8473_v17 = vsel %vm758_vm2, %v921_v61, %v925_v63  ;;  %v947_v23 = vshll.u32 %v8469_v0, 16  ;;  %v522_v52 = vld [vmem:[%s7928_s22 + $0xf8] sm:$0xff] }
  0xd7   : > { %v944_v22 = vrot.slane %v942_v4, 1  ;;  %v8478_v27 = vsel %vm758_vm2, %v933_v9, %v937_v14  ;;  %v561_v39 = vmul.f32 %v8165_v10, %v522_v52  ;;  %v1402_v14 = vrot.slane %v8156_v6, 1 }
  0xd8   : > { %v949_v29 = vrot.slane %v947_v23, 1  ;;  %v1407_v23 = vrot.slane %v8251_v36, 1  ;;  %v1414_v52 = vrot.slane %v8278_v3, 1  ;;  %v1420_v3 = vrot.slane %v8306_v40, 1 }
  0xd9   : > { %v945_v32 = vor.u32 %v944_v22, %v940_v20  ;;  %v600_v63 = vadd.f32 %v8175_v15, %v561_v39  ;;  %v1404_v22 = vrot.slane %v8241_v30, 1  ;;  %v1426_v40 = vrot.slane %v8331_v62, 1 }
  0xda   : > { %v1432_v62 = vrot.slane %v8404_v56, 1  ;;  %v1438_v56 = vrot.slane %v8426_v45, 1  ;;  %v1444_v45 = vrot.slane %v8450_v21, 1  ;;  %v7486_v21 = vld [vmem:[#allocation7 + $0x28] sm:$0xff]  }
  0xdb   : > { %6306 = vmatmul.mubr.msk.bf16.gmra.mrb[20].mxu0 %vm381_vm0, %v8455_v7  ;;  %v8485_v48 = vsel %vm758_vm2, %v945_v32, %v949_v29  ;;  %v632_v9 = vmax.f32 %v600_v63, 0.0  ;;  %v1408_v32 = vrot.slane %v8253_v37, 1  ;;  %v7485_v29 = vld [vmem:[#allocation7 + $0x20] sm:$0xff]   ;;  %v1413_v37 = vrot.slane %v8276_v2, 1 }
  0xdc   : > { %6309 = vmatprep.mubr.msk.bf16.mxu0 %vm381_vm0, %v8461_v49 }
  0xdd   : > { %665 = vst.msk [vmem:[#allocation2 + $0x189] sm:$0xff] %vm381_vm0, %v632_v9  ;;  %v8542_v6 = vsel %vm1400_vm3, %v1407_v23, %v1408_v32  ;;  %v8556_v39 = vsel %vm1400_vm3, %v1413_v37, %v1414_v52  ;;  %v1422_v9 = vrot.slane %v8308_v41, 1 }
  0xe3   : > { %6310 = vmatmul.mubr.msk.bf16.gmra.mrb[24].mxu0 %vm381_vm0, %v8473_v17 }
  0xe4   : > { %6313 = vmatprep.mubr.msk.bf16.mxu0 %vm381_vm0, %v8478_v27 }
  0xeb   : > { %6314 = vmatmul.mubr.msk.bf16.gmra.mrb[28].mxu0 %vm381_vm0, %v8485_v48 }
  0xec   : > { %6319 = vmatprep.mubr.msk.bf16.mxu0 %vm381_vm0, %v8154_v5 }
  0xf3   : > { %6320 = vmatmul.mubr.msk.bf16.vlgmr.msra.gmra.mrb[0].mxu0 %vm381_vm0, %v8241_v30 }
  0xf4   : > { %6352 = vmatpush3.bf16.msra.mxu0 %v8281_v8  ;;  %6323 = vmatprep.mubr.msk.bf16.mxu0 %vm381_vm0, %v8251_v36  ;;  %v521_v8 = vld [vmem:[%s7928_s22 + $0xf0] sm:$0xff] }
  0xf5   : > { %6385 = vmatprep.subr.bf16.mxu0 %v7484_v51  ;;  %v560_v28 = vmul.f32 %v8165_v10, %v521_v8  ;;  %v1401_v10 = vrot.slane %v8154_v5, 1  ;;  %v1411_v8 = vrot.slane %v8271_v54, 1  ;;  %v1417_v54 = vrot.slane %v8285_v13, 1 }
  0xf6   : > { %v1423_v13 = vrot.slane %v8320_v34, 1  ;;  %v1429_v34 = vrot.slane %v8388_v38, 1  ;;  %v1435_v38 = vrot.slane %v8421_v19, 1  ;;  %v1441_v19 = vrot.slane %v8447_v43, 1 }
  0xf7   : > { %v599_v61 = vadd.f32 %v8175_v15, %v560_v28  ;;  %v1403_v20 = vsel %vm1400_vm3, %v1401_v10, %v1402_v14  ;;  %v1405_v15 = vrot.slane %v8243_v31, 1  ;;  %v1410_v31 = vrot.slane %v8268_v50, 1 }
  0xf8   : > { %v1425_v10 = vrot.slane %v8324_v58, 1  ;;  %v8581_v14 = vsel %vm1400_vm3, %v1422_v9, %v1423_v13  ;;  %v1446_v9 = vrot.slane %v8458_v46, 1  ;;  %v1447_v43 = vrot.slane %v8469_v0, 1 }
  0xf9   : > { %v631_v4 = vmax.f32 %v599_v61, 0.0  ;;  %v8539_v5 = vsel %vm1400_vm3, %v1404_v22, %v1405_v15  ;;  %v8553_v28 = vsel %vm1400_vm3, %v1410_v31, %v1411_v8  ;;  %v1419_v61 = vrot.slane %v8304_v33, 1 }
  0xfa   : > { %v1428_v15 = vrot.slane %v8386_v35, 1  ;;  %v1431_v22 = vrot.slane %v8402_v55, 1  ;;  %v1434_v31 = vrot.slane %v8417_v11, 1  ;;  %v1437_v8 = vrot.slane %v8424_v26, 1 }
  0xfb   : > { %6324 = vmatmul.mubr.msk.bf16.gmra.mrb[4].mxu0 %vm381_vm0, %v8268_v50  ;;  %664 = vst.msk [vmem:[#allocation2 + $0x181] sm:$0xff] %vm381_vm0, %v631_v4  ;;  %v8570_v4 = vsel %vm1400_vm3, %v1419_v61, %v1420_v3  ;;  %v8635_v13 = vsel %vm1400_vm3, %v1446_v9, %v1447_v43 }
  0xfc   : > { %6327 = vmatprep.mubr.msk.bf16.mxu0 %vm381_vm0, %v8276_v2  ;;  %v8595_v23 = vsel %vm1400_vm3, %v1428_v15, %v1429_v34  ;;  %v8598_v32 = vsel %vm1400_vm3, %v1431_v22, %v1432_v62  ;;  %v8609_v37 = vsel %vm1400_vm3, %v1434_v31, %v1435_v38  ;;  %v8612_v52 = vsel %vm1400_vm3, %v1437_v8, %v1438_v56  ;;  %v7488_v56 = vld [vmem:[#allocation7 + $0x38] sm:$0xff]  }
 0x102   : > { %v715_v0 = vld [vmem:[#allocation2 + $0x188] sm:$0xff] }
 0x103   : > { %6328 = vmatmul.mubr.msk.bf16.gmra.mrb[8].mxu0 %vm381_vm0, %v8283_v12 }
 0x104   : > { %6331 = vmatprep.mubr.msk.bf16.mxu0 %vm381_vm0, %v8304_v33 }
 0x10b   : > { %6332 = vmatmul.mubr.msk.bf16.gmra.mrb[12].mxu0 %vm381_vm0, %v8308_v41 }
 0x10c   : > { %6335 = vmatprep.mubr.msk.bf16.mxu0 %vm381_vm0, %v8324_v58 }
 0x113   : > { %6336 = vmatmul.mubr.msk.bf16.gmra.mrb[16].mxu0 %vm381_vm0, %v8386_v35 }
 0x114   : > { %6339 = vmatprep.mubr.msk.bf16.mxu0 %vm381_vm0, %v8402_v55 }
 0x11b   : > { %6340 = vmatmul.mubr.msk.bf16.gmra.mrb[20].mxu0 %vm381_vm0, %v8417_v11 }
 0x11c   : > { %6343 = vmatprep.mubr.msk.bf16.mxu0 %vm381_vm0, %v8424_v26 }
 0x123   : > { %6344 = vmatmul.mubr.msk.bf16.gmra.mrb[24].mxu0 %vm381_vm0, %v8434_v57 }
 0x124   : > { %6347 = vmatprep.mubr.msk.bf16.mxu0 %vm381_vm0, %v8441_v1 }
 0x12b   : > { %6348 = vmatmul.mubr.msk.bf16.gmra.mrb[28].mxu0 %vm381_vm0, %v8458_v46 }
 0x12c   : > { %6353 = vmatprep.mubr.msk.bf16.mxu0 %vm381_vm0, %v1403_v20  ;;  %v8584_v20 = vsel %vm1400_vm3, %v1425_v10, %v1426_v40  ;;  %v7487_v10 = vld [vmem:[#allocation7 + $0x30] sm:$0xff]  }
 0x133   : > { %6354 = vmatmul.mubr.msk.bf16.vlgmr.msra.gmra.mrb[0].mxu0 %vm381_vm0, %v8539_v5 }
 0x134   : > { %6386 = vmatpush3.bf16.msra.mxu0 %v7484_v51  ;;  %6357 = vmatprep.mubr.msk.bf16.mxu0 %vm381_vm0, %v8542_v6  ;;  %v1416_v51 = vrot.slane %v8283_v12, 1 }
 0x135   : > { %6419 = vmatprep.subr.bf16.mxu0 %v7485_v29 }
 0x136   : > { %v8567_v63 = vsel %vm1400_vm3, %v1416_v51, %v1417_v54  ;;  %v1440_v51 = vrot.slane %v8434_v57, 1  ;;  %v1443_v54 = vrot.slane %v8441_v1, 1 }
 0x138   : > { %v8623_v61 = vsel %vm1400_vm3, %v1440_v51, %v1441_v19  ;;  %v8626_v3 = vsel %vm1400_vm3, %v1443_v54, %v1444_v45  ;;  %v7489_v54 = vld [vmem:[#allocation7 + $0x40] sm:$0xff]  }
 0x13b   : > { %6358 = vmatmul.mubr.msk.bf16.gmra.mrb[4].mxu0 %vm381_vm0, %v8553_v28 }
 0x13c   : > { %6361 = vmatprep.mubr.msk.bf16.mxu0 %vm381_vm0, %v8556_v39 }
 0x143   : > { %6362 = vmatmul.mubr.msk.bf16.gmra.mrb[8].mxu0 %vm381_vm0, %v8567_v63 }
 0x144   : > { %6365 = vmatprep.mubr.msk.bf16.mxu0 %vm381_vm0, %v8570_v4 }
 0x14b   : > { %6366 = vmatmul.mubr.msk.bf16.gmra.mrb[12].mxu0 %vm381_vm0, %v8581_v14 }
 0x14c   : > { %6369 = vmatprep.mubr.msk.bf16.mxu0 %vm381_vm0, %v8584_v20 }
 0x153   : > { %6370 = vmatmul.mubr.msk.bf16.gmra.mrb[16].mxu0 %vm381_vm0, %v8595_v23 }
 0x154   : > { %6373 = vmatprep.mubr.msk.bf16.mxu0 %vm381_vm0, %v8598_v32 }
 0x15b   : > { %6374 = vmatmul.mubr.msk.bf16.gmra.mrb[20].mxu0 %vm381_vm0, %v8609_v37 }
 0x15c   : > { %6377 = vmatprep.mubr.msk.bf16.mxu0 %vm381_vm0, %v8612_v52 }
 0x163   : > { %6378 = vmatmul.mubr.msk.bf16.gmra.mrb[24].mxu0 %vm381_vm0, %v8623_v61 }
 0x164   : > { %6381 = vmatprep.mubr.msk.bf16.mxu0 %vm381_vm0, %v8626_v3 }
 0x16b   : > { %6382 = vmatmul.mubr.msk.bf16.gmra.mrb[28].mxu0 %vm381_vm0, %v8635_v13 }
 0x16c   : > { %6387 = vmatprep.mubr.msk.bf16.mxu0 %vm381_vm0, %v8241_v30  ;;  %v714_v30 = vld [vmem:[#allocation2 + $0x180] sm:$0xff] }
 0x173   : > { %6388 = vmatmul.mubr.msk.bf16.vlgmr.msra.gmra.mrb[0].mxu0 %vm381_vm0, %v8251_v36 }
 0x174   : > { %6420 = vmatpush3.bf16.msra.mxu0 %v7485_v29  ;;  %6391 = vmatprep.mubr.msk.bf16.mxu0 %vm381_vm0, %v8268_v50  ;;  %v8669_v29 = vpack.c.bf16 %v715_v0, %v714_v30 }
 0x175   : > { %6453 = vmatprep.subr.bf16.mxu0 %v7486_v21 }
 0x176   : > { %v1906_v15 = vshll.u32 %v8669_v29, 16  ;;  %v1904_v34 = vshrl.u32 %v8669_v29, 16 }
 0x178   : > { %v1908_v22 = vrot.slane %v1906_v15, 1 }
 0x17a   : > { %v1909_v31 = vor.u32 %v1908_v22, %v1904_v34 }
 0x17b   : > { %6392 = vmatmul.mubr.msk.bf16.gmra.mrb[4].mxu0 %vm381_vm0, %v8276_v2 }
 0x17c   : > { %6395 = vmatprep.mubr.msk.bf16.mxu0 %vm381_vm0, %v8283_v12 }
 0x183   : > { %6396 = vmatmul.mubr.msk.bf16.gmra.mrb[8].mxu0 %vm381_vm0, %v8304_v33 }
 0x184   : > { %6399 = vmatprep.mubr.msk.bf16.mxu0 %vm381_vm0, %v8308_v41 }
 0x18b   : > { %6400 = vmatmul.mubr.msk.bf16.gmra.mrb[12].mxu0 %vm381_vm0, %v8324_v58 }
 0x18c   : > { %6403 = vmatprep.mubr.msk.bf16.mxu0 %vm381_vm0, %v8386_v35 }
 0x193   : > { %6404 = vmatmul.mubr.msk.bf16.gmra.mrb[16].mxu0 %vm381_vm0, %v8402_v55 }
 0x194   : > { %6407 = vmatprep.mubr.msk.bf16.mxu0 %vm381_vm0, %v8417_v11 }
 0x19b   : > { %6408 = vmatmul.mubr.msk.bf16.gmra.mrb[20].mxu0 %vm381_vm0, %v8424_v26 }
 0x19c   : > { %6411 = vmatprep.mubr.msk.bf16.mxu0 %vm381_vm0, %v8434_v57 }
 0x1a3   : > { %6412 = vmatmul.mubr.msk.bf16.gmra.mrb[24].mxu0 %vm381_vm0, %v8441_v1 }
 0x1a4   : > { %6415 = vmatprep.mubr.msk.bf16.mxu0 %vm381_vm0, %v8458_v46 }
 0x1ab   : > { %6416 = vmatmul.mubr.msk.bf16.gmra.mrb[28].mxu0 %vm381_vm0, %v8669_v29 }
 0x1ac   : > { %6421 = vmatprep.mubr.msk.bf16.mxu0 %vm381_vm0, %v8288_v18  ;;  %v716_v18 = vld [vmem:[#allocation2 + $0x190] sm:$0x3] }
 0x1ad   : > { %v753_v40 = vpack.c.bf16 %v716_v18, %v716_v18 }
 0x1af   : > { %v1911_v62 = vshll.u32 %v753_v40, 16  ;;  %v2123_v51 = vrot.slane %v753_v40, 1 }
 0x1b1   : > { %v1913_v38 = vrot.slane %v1911_v62, 1 }
 0x1b3   : > { %6422 = vmatmul.mubr.msk.bf16.vlgmr.msra.gmra.mrb[0].mxu0 %vm381_vm0, %v8295_v24  ;;  %v8706_v8 = vsel %vm758_vm2, %v1909_v31, %v1913_v38 }
 0x1b4   : > { %6454 = vmatpush3.bf16.msra.mxu0 %v7486_v21  ;;  %6425 = vmatprep.mubr.msk.bf16.mxu0 %vm381_vm0, %v8314_v44 }
 0x1b5   : > { %6487 = vmatprep.subr.bf16.mxu0 %v7487_v10 }
 0x1bb   : > { %6426 = vmatmul.mubr.msk.bf16.gmra.mrb[4].mxu0 %vm381_vm0, %v8328_v60 }
 0x1bc   : > { %6429 = vmatprep.mubr.msk.bf16.mxu0 %vm381_vm0, %v8342_v16 }
 0x1c3   : > { %6430 = vmatmul.mubr.msk.bf16.gmra.mrb[8].mxu0 %vm381_vm0, %v8365_v53 }
 0x1c4   : > { %6433 = vmatprep.mubr.msk.bf16.mxu0 %vm381_vm0, %v8397_v47 }
 0x1cb   : > { %6434 = vmatmul.mubr.msk.bf16.gmra.mrb[12].mxu0 %vm381_vm0, %v8408_v42 }
 0x1cc   : > { %6437 = vmatprep.mubr.msk.bf16.mxu0 %vm381_vm0, %v8429_v25 }
 0x1d3   : > { %6438 = vmatmul.mubr.msk.bf16.gmra.mrb[16].mxu0 %vm381_vm0, %v8437_v59 }
 0x1d4   : > { %6441 = vmatprep.mubr.msk.bf16.mxu0 %vm381_vm0, %v8455_v7 }
 0x1db   : > { %6442 = vmatmul.mubr.msk.bf16.gmra.mrb[20].mxu0 %vm381_vm0, %v8461_v49 }
 0x1dc   : > { %6445 = vmatprep.mubr.msk.bf16.mxu0 %vm381_vm0, %v8473_v17 }
 0x1e3   : > { %6446 = vmatmul.mubr.msk.bf16.gmra.mrb[24].mxu0 %vm381_vm0, %v8478_v27 }
 0x1e4   : > { %6449 = vmatprep.mubr.msk.bf16.mxu0 %vm381_vm0, %v8485_v48 }
 0x1eb   : > { %6450 = vmatmul.mubr.msk.bf16.gmra.mrb[28].mxu0 %vm381_vm0, %v8706_v8 }
 0x1ec   : > { %6455 = vmatprep.mubr.msk.bf16.mxu0 %vm381_vm0, %v8539_v5  ;;  %v2122_v5 = vrot.slane %v8669_v29, 1 }
 0x1ee   : > { %v8742_v19 = vsel %vm1400_vm3, %v2122_v5, %v2123_v51 }
 0x1f3   : > { %6456 = vmatmul.mubr.msk.bf16.vlgmr.msra.gmra.mrb[0].mxu0 %vm381_vm0, %v8542_v6 }
 0x1f4   : > { %6488 = vmatpush3.bf16.msra.mxu0 %v7487_v10  ;;  %6459 = vmatprep.mubr.msk.bf16.mxu0 %vm381_vm0, %v8553_v28 }
 0x1f5   : > { %6521 = vmatprep.subr.bf16.mxu0 %v7488_v56 }
 0x1fb   : > { %6460 = vmatmul.mubr.msk.bf16.gmra.mrb[4].mxu0 %vm381_vm0, %v8556_v39 }
 0x1fc   : > { %6463 = vmatprep.mubr.msk.bf16.mxu0 %vm381_vm0, %v8567_v63 }
 0x203   : > { %6464 = vmatmul.mubr.msk.bf16.gmra.mrb[8].mxu0 %vm381_vm0, %v8570_v4 }
 0x204   : > { %6467 = vmatprep.mubr.msk.bf16.mxu0 %vm381_vm0, %v8581_v14 }
 0x20b   : > { %6468 = vmatmul.mubr.msk.bf16.gmra.mrb[12].mxu0 %vm381_vm0, %v8584_v20 }
 0x20c   : > { %6471 = vmatprep.mubr.msk.bf16.mxu0 %vm381_vm0, %v8595_v23 }
 0x213   : > { %6472 = vmatmul.mubr.msk.bf16.gmra.mrb[16].mxu0 %vm381_vm0, %v8598_v32 }
 0x214   : > { %6475 = vmatprep.mubr.msk.bf16.mxu0 %vm381_vm0, %v8609_v37 }
 0x21b   : > { %6476 = vmatmul.mubr.msk.bf16.gmra.mrb[20].mxu0 %vm381_vm0, %v8612_v52 }
 0x21c   : > { %6479 = vmatprep.mubr.msk.bf16.mxu0 %vm381_vm0, %v8623_v61 }
 0x223   : > { %6480 = vmatmul.mubr.msk.bf16.gmra.mrb[24].mxu0 %vm381_vm0, %v8626_v3 }
 0x224   : > { %6483 = vmatprep.mubr.msk.bf16.mxu0 %vm381_vm0, %v8635_v13 }
 0x22b   : > { %6484 = vmatmul.mubr.msk.bf16.gmra.mrb[28].mxu0 %vm381_vm0, %v8742_v19 }
 0x22c   : > { %6489 = vmatprep.mubr.msk.bf16.mxu0 %vm381_vm0, %v8251_v36  ;;  %v717_v36 = vld [vmem:[#allocation2 + $0x198] sm:$0xff] }
 0x233   : > { %6490 = vmatmul.mubr.msk.bf16.vlgmr.msra.gmra.mrb[0].mxu0 %vm381_vm0, %v8268_v50  ;;  %v718_v50 = vld [vmem:[#allocation2 + $0x1a0] sm:$0xff] }
 0x234   : > { %6522 = vmatpush3.bf16.msra.mxu0 %v7488_v56  ;;  %6493 = vmatprep.mubr.msk.bf16.mxu0 %vm381_vm0, %v8276_v2  ;;  %v754_v2 = vpack.c.bf16 %v718_v50, %v717_v36 }
 0x235   : > { %6555 = vmatprep.subr.bf16.mxu0 %v7489_v54 }
 0x23b   : > { %6494 = vmatmul.mubr.msk.bf16.gmra.mrb[4].mxu0 %vm381_vm0, %v8283_v12  ;;  %v719_v12 = vld [vmem:[#allocation2 + $0x1a8] sm:$0x3] }
 0x23c   : > { %6497 = vmatprep.mubr.msk.bf16.mxu0 %vm381_vm0, %v8304_v33  ;;  %v2537_v33 = vshll.u32 %v754_v2, 16 }
 0x243   : > { %6498 = vmatmul.mubr.msk.bf16.gmra.mrb[8].mxu0 %vm381_vm0, %v8308_v41  ;;  %v2535_v41 = vshrl.u32 %v754_v2, 16 }
 0x244   : > { %6501 = vmatprep.mubr.msk.bf16.mxu0 %vm381_vm0, %v8324_v58 }
 0x24b   : > { %6502 = vmatmul.mubr.msk.bf16.gmra.mrb[12].mxu0 %vm381_vm0, %v8386_v35  ;;  %v2753_v35 = vrot.slane %v754_v2, 1 }
 0x24c   : > { %6505 = vmatprep.mubr.msk.bf16.mxu0 %vm381_vm0, %v8402_v55 }
 0x253   : > { %6506 = vmatmul.mubr.msk.bf16.gmra.mrb[16].mxu0 %vm381_vm0, %v8417_v11  ;;  %v3144_v11 = vld [vmem:[#allocation3 + $0x8] sm:$0xff] }
 0x254   : > { %6509 = vmatprep.mubr.msk.bf16.mxu0 %vm381_vm0, %v8424_v26 }
 0x25b   : > { %6510 = vmatmul.mubr.msk.bf16.gmra.mrb[20].mxu0 %vm381_vm0, %v8434_v57 }
 0x25c   : > { %6513 = vmatprep.mubr.msk.bf16.mxu0 %vm381_vm0, %v8441_v1  ;;  %v7490_v1 = vld [vmem:[#allocation9 + $0x8] sm:$0xff]  }
 0x25d   : > { %6589 = vmatprep.subr.bf16.mxu1 %v7490_v1 }
 0x25e   : > { %6590 = vmatpush3.bf16.msra.mxu1 %v7490_v1 }
 0x263   : > { %6514 = vmatmul.mubr.msk.bf16.gmra.mrb[24].mxu0 %vm381_vm0, %v8458_v46 }
 0x264   : > { %6517 = vmatprep.mubr.msk.bf16.mxu0 %vm381_vm0, %v8669_v29 }
 0x26b   : > { %6518 = vmatmul.mubr.msk.bf16.gmra.mrb[28].mxu0 %vm381_vm0, %v754_v2 }
 0x26c   : > { %6523 = vmatprep.mubr.msk.bf16.mxu0 %vm381_vm0, %v8295_v24  ;;  %v755_v24 = vpack.c.bf16 %v719_v12, %v719_v12 }
 0x26e   : > { %v2542_v58 = vshll.u32 %v755_v24, 16 }
 0x273   : > { %6524 = vmatmul.mubr.msk.bf16.vlgmr.msra.gmra.mrb[0].mxu0 %vm381_vm0, %v8314_v44  ;;  %v2539_v44 = vrot.slane %v2537_v33, 1 }
 0x274   : > { %6556 = vmatpush3.bf16.msra.mxu0 %v7489_v54  ;;  %6527 = vmatprep.mubr.msk.bf16.mxu0 %vm381_vm0, %v8328_v60 }
 0x275   : > { %v2540_v60 = vor.u32 %v2539_v44, %v2535_v41 }
 0x27b   : > { %6528 = vmatmul.mubr.msk.bf16.gmra.mrb[4].mxu0 %vm381_vm0, %v8342_v16  ;;  %v2544_v16 = vrot.slane %v2542_v58, 1 }
 0x27c   : > { %6531 = vmatprep.mubr.msk.bf16.mxu0 %vm381_vm0, %v8365_v53 }
 0x27d   : > { %v2545_v53 = vsel %vm758_vm2, %v2540_v60, %v2544_v16 }
 0x283   : > { %6532 = vmatmul.mubr.msk.bf16.gmra.mrb[8].mxu0 %vm381_vm0, %v8397_v47  ;;  %v2754_v47 = vrot.slane %v755_v24, 1 }
 0x284   : > { %6535 = vmatprep.mubr.msk.bf16.mxu0 %vm381_vm0, %v8408_v42  ;;  %v3143_v42 = vld [vmem:[#allocation3] sm:$0xff] }
 0x285   : > { %v2755_v55 = vsel %vm1400_vm3, %v2753_v35, %v2754_v47  ;;  %v8841_v26 = vpack.c.bf16 %v3144_v11, %v3143_v42 }
 0x28b   : > { %6536 = vmatmul.mubr.msk.bf16.gmra.mrb[12].mxu0 %vm381_vm0, %v8429_v25  ;;  %v3145_v25 = vld [vmem:[#allocation3 + $0x10] sm:$0x3] }
 0x28c   : > { %6539 = vmatprep.mubr.msk.bf16.mxu0 %vm381_vm0, %v8437_v59  ;;  %v8843_v57 = vpack.c.bf16 %v3145_v25, %v3145_v25  ;;  %v3238_v59 = vshll.u32 %v8841_v26, 16 }
 0x28e   : > { %v3240_v46 = vrot.slane %v3238_v59, 1 }
 0x293   : > { %6540 = vmatmul.mubr.msk.bf16.gmra.mrb[16].mxu0 %vm381_vm0, %v8455_v7  ;;  %v3236_v7 = vshrl.u32 %v8841_v26, 16 }
 0x294   : > { %6543 = vmatprep.mubr.msk.bf16.mxu0 %vm381_vm0, %v8461_v49  ;;  %v3243_v49 = vshll.u32 %v8843_v57, 16 }
 0x29b   : > { %6544 = vmatmul.mubr.msk.bf16.gmra.mrb[20].mxu0 %vm381_vm0, %v8473_v17  ;;  %v3241_v17 = vor.u32 %v3240_v46, %v3236_v7 }
 0x29c   : > { %6547 = vmatprep.mubr.msk.bf16.mxu0 %vm381_vm0, %v8478_v27  ;;  %v3245_v27 = vrot.slane %v3243_v49, 1 }
 0x2a3   : > { %6548 = vmatmul.mubr.msk.bf16.gmra.mrb[24].mxu0 %vm381_vm0, %v8485_v48  ;;  %v3246_v48 = vsel %vm758_vm2, %v3241_v17, %v3245_v27 }
 0x2a4   : > { %6551 = vmatprep.mubr.msk.bf16.mxu0 %vm381_vm0, %v8706_v8  ;;  %6591 = vmatprep.mubr.msk.bf16.mxu1 %vm381_vm0, %v3246_v48 }
 0x2ab   : > { %6552 = vmatmul.mubr.msk.bf16.gmra.mrb[28].mxu0 %vm381_vm0, %v2545_v53 }
 0x2ac   : > { %6557 = vmatprep.mubr.msk.bf16.mxu0 %vm381_vm0, %v8542_v6  ;;  %v8850_v6 = vld [vmem:[#allocation9] sm:$0xff]  }
 0x2ad   : > { %6623 = vmatprep.subr.bf16.mxu1 %v8850_v6 }
 0x2b3   : > { %6558 = vmatmul.mubr.msk.bf16.vlgmr.msra.gmra.mrb[0].mxu0 %vm381_vm0, %v8553_v28  ;;  %v8856_v28 = vld [vmem:[%s9716_s4] ss:$0 sm:$0xff] }
 0x2b4   : > { %6561 = vmatprep.mubr.msk.bf16.mxu0 %vm381_vm0, %v8556_v39 }
 0x2bb   : > { %6562 = vmatmul.mubr.msk.bf16.gmra.mrb[4].mxu0 %vm381_vm0, %v8567_v63  ;;  %v8861_v63 = vld [vmem:[%s9717_s5] ss:$0 sm:$0xff] }
 0x2bc   : > { %6565 = vmatprep.mubr.msk.bf16.mxu0 %vm381_vm0, %v8570_v4 }
 0x2c3   : > { %6566 = vmatmul.mubr.msk.bf16.gmra.mrb[8].mxu0 %vm381_vm0, %v8581_v14 }
 0x2c4   : > { %6569 = vmatprep.mubr.msk.bf16.mxu0 %vm381_vm0, %v8584_v20  ;;  %v8867_v20 = vld [vmem:[%s9718_s6] ss:$0 sm:$0xff] }
 0x2cb   : > { %6570 = vmatmul.mubr.msk.bf16.gmra.mrb[12].mxu0 %vm381_vm0, %v8595_v23 }
 0x2cc   : > { %6573 = vmatprep.mubr.msk.bf16.mxu0 %vm381_vm0, %v8598_v32 }
 0x2d3   : > { %6574 = vmatmul.mubr.msk.bf16.gmra.mrb[16].mxu0 %vm381_vm0, %v8609_v37 }
 0x2d4   : > { %6577 = vmatprep.mubr.msk.bf16.mxu0 %vm381_vm0, %v8612_v52 }
 0x2db   : > { %6578 = vmatmul.mubr.msk.bf16.gmra.mrb[20].mxu0 %vm381_vm0, %v8623_v61 }
 0x2dc   : > { %6581 = vmatprep.mubr.msk.bf16.mxu0 %vm381_vm0, %v8626_v3 }
 0x2e3   : > { %6582 = vmatmul.mubr.msk.bf16.gmra.mrb[24].mxu0 %vm381_vm0, %v8635_v13 }
 0x2e4   : > { %6585 = vmatprep.mubr.msk.bf16.mxu0 %vm381_vm0, %v8742_v19 }
 0x2eb   : > { %6586 = vmatmul.mubr.msk.bf16.gmra.mrb[28].mxu0 %vm381_vm0, %v2755_v55 }
 0x386   : > { %v6559_v39 = vpop.f32.mrb[0].mxu0 }
 0x387   : > { %v2970_v4 = vadd.f32 %v6559_v39, %v8856_v28  ;;  %v2802_v14 = vpop.f32.mrb[1].mxu0 }
 0x388   : > { %v2968_v23 = vadd.f32 %v8856_v28, %v2802_v14  ;;  %v6560_v32 = vpop.f32.mrb[2].mxu0 }
 0x389   : > { %v3009_v37 = vmul.f32 %v8861_v63, %v2970_v4  ;;  %v2971_v52 = vadd.f32 %v6560_v32, %v8856_v28  ;;  %v2805_v45 = vpop.f32.mrb[3].mxu0 }
 0x38a   : > { %v3007_v61 = vmul.f32 %v8861_v63, %v2968_v23  ;;  %v2969_v3 = vadd.f32 %v8856_v28, %v2805_v45 }
 0x38b   : > { %v3048_v9 = vadd.f32 %v8867_v20, %v3009_v37  ;;  %v3010_v43 = vmul.f32 %v8861_v63, %v2971_v52 }
 0x38c   : > { %v3046_v13 = vadd.f32 %v8867_v20, %v3007_v61  ;;  %v3008_v21 = vmul.f32 %v8861_v63, %v2969_v3 }
 0x38d   : > { %v3080_v30 = vmax.f32 %v3048_v9, 0.0  ;;  %v3049_v0 = vadd.f32 %v8867_v20, %v3010_v43 }
 0x38e   : > { %v3078_v29 = vmax.f32 %v3046_v13, 0.0  ;;  %v3047_v10 = vadd.f32 %v8867_v20, %v3008_v21  ;;  %v6563_v18 = vpop.f32.mrb[4].mxu0 }
 0x38f   : > { %3113 = vst.msk [vmem:[#allocation3 + $0x31] sm:$0xff] %vm381_vm0, %v3080_v30  ;;  %v3081_v40 = vmax.f32 %v3049_v0, 0.0  ;;  %v2974_v15 = vadd.f32 %v6563_v18, %v8856_v28  ;;  %v2818_v34 = vpop.f32.mrb[5].mxu0 }
 0x390   : > { %3111 = vst.msk [vmem:[#allocation3 + $0x19] sm:$0xff] %vm381_vm0, %v3078_v29  ;;  %v3079_v22 = vmax.f32 %v3047_v10, 0.0  ;;  %v2972_v62 = vadd.f32 %v8856_v28, %v2818_v34  ;;  %v6564_v31 = vpop.f32.mrb[6].mxu0 }
 0x391   : > { %3114 = vst.msk [vmem:[#allocation3 + $0x39] sm:$0xff] %vm381_vm0, %v3081_v40  ;;  %v3013_v38 = vmul.f32 %v8861_v63, %v2974_v15  ;;  %v2975_v8 = vadd.f32 %v6564_v31, %v8856_v28  ;;  %v2821_v56 = vpop.f32.mrb[7].mxu0 }
 0x392   : > { %3112 = vst.msk [vmem:[#allocation3 + $0x21] sm:$0xff] %vm381_vm0, %v3079_v22  ;;  %v3011_v5 = vmul.f32 %v8861_v63, %v2972_v62  ;;  %v2973_v51 = vadd.f32 %v8856_v28, %v2821_v56 }
 0x393   : > { %v3052_v19 = vadd.f32 %v8867_v20, %v3013_v38  ;;  %v3014_v54 = vmul.f32 %v8861_v63, %v2975_v8 }
 0x394   : > { %v3050_v36 = vadd.f32 %v8867_v20, %v3011_v5  ;;  %v3012_v50 = vmul.f32 %v8861_v63, %v2973_v51 }
 0x395   : > { %v3084_v2 = vmax.f32 %v3052_v19, 0.0  ;;  %v3053_v12 = vadd.f32 %v8867_v20, %v3014_v54  ;;  %v8930_v19 = vld [vmem:[#allocation9 + $0x10] sm:$0xff]  }
 0x396   : > { %v3082_v24 = vmax.f32 %v3050_v36, 0.0  ;;  %v3051_v33 = vadd.f32 %v8867_v20, %v3012_v50  ;;  %v6567_v41 = vpop.f32.mrb[8].mxu0  ;;  %v3149_v47 = vld [vmem:[#allocation3 + $0x30] sm:$0xff] }
 0x397   : > { %3117 = vst.msk [vmem:[#allocation3 + $0x61] sm:$0xff] %vm381_vm0, %v3084_v2  ;;  %v3085_v44 = vmax.f32 %v3053_v12, 0.0  ;;  %v2978_v58 = vadd.f32 %v6567_v41, %v8856_v28  ;;  %v2834_v60 = vpop.f32.mrb[9].mxu0  ;;  %v3146_v1 = vld [vmem:[#allocation3 + $0x18] sm:$0xff] }
 0x398   : > { %3115 = vst.msk [vmem:[#allocation3 + $0x49] sm:$0xff] %vm381_vm0, %v3082_v24  ;;  %v3083_v16 = vmax.f32 %v3051_v33, 0.0  ;;  %v2976_v53 = vadd.f32 %v8856_v28, %v2834_v60  ;;  %v6568_v35 = vpop.f32.mrb[10].mxu0  ;;  %v3150_v55 = vld [vmem:[#allocation3 + $0x38] sm:$0xff]  ;;  %v3151_v42 = vld [vmem:[#allocation3 + $0x40] sm:$0x3] }
 0x399   : > { %3118 = vst.msk [vmem:[#allocation3 + $0x69] sm:$0xff] %vm381_vm0, %v3085_v44  ;;  %v3017_v11 = vmul.f32 %v8861_v63, %v2978_v58  ;;  %v2979_v25 = vadd.f32 %v6568_v35, %v8856_v28  ;;  %v2837_v59 = vpop.f32.mrb[11].mxu0  ;;  %v3147_v7 = vld [vmem:[#allocation3 + $0x20] sm:$0xff]  ;;  %v3148_v46 = vld [vmem:[#allocation3 + $0x28] sm:$0x3]  ;;  %v8903_v49 = vpack.c.bf16 %v3150_v55, %v3149_v47  ;;  %v8914_v23 = vpack.c.bf16 %v3151_v42, %v3151_v42 }
 0x39a   : > { %3116 = vst.msk [vmem:[#allocation3 + $0x51] sm:$0xff] %vm381_vm0, %v3083_v16  ;;  %v3015_v17 = vmul.f32 %v8861_v63, %v2976_v53  ;;  %v2977_v27 = vadd.f32 %v8856_v28, %v2837_v59  ;;  %v8908_v48 = vpack.c.bf16 %v3147_v7, %v3146_v1  ;;  %v8910_v39 = vpack.c.bf16 %v3148_v46, %v3148_v46 }
 0x39b   : > { %v3056_v4 = vadd.f32 %v8867_v20, %v3017_v11  ;;  %v3018_v14 = vmul.f32 %v8861_v63, %v2979_v25  ;;  %v3262_v32 = vshll.u32 %v8903_v49, 16  ;;  %v3260_v61 = vshrl.u32 %v8903_v49, 16 }
 0x39c   : > { %v3054_v37 = vadd.f32 %v8867_v20, %v3015_v17  ;;  %v3016_v52 = vmul.f32 %v8861_v63, %v2977_v27  ;;  %v3250_v45 = vshll.u32 %v8908_v48, 16  ;;  %v3248_v43 = vshrl.u32 %v8908_v48, 16 }
 0x39d   : > { %v3088_v3 = vmax.f32 %v3056_v4, 0.0  ;;  %v3057_v9 = vadd.f32 %v8867_v20, %v3018_v14  ;;  %v3255_v13 = vshll.u32 %v8910_v39, 16  ;;  %v3264_v10 = vrot.slane %v3262_v32, 1 }
 0x39e   : > { %v3086_v21 = vmax.f32 %v3054_v37, 0.0  ;;  %v3055_v30 = vadd.f32 %v8867_v20, %v3016_v52  ;;  %v6571_v0 = vpop.f32.mrb[12].mxu0  ;;  %v3252_v29 = vrot.slane %v3250_v45, 1  ;;  %v3267_v22 = vshll.u32 %v8914_v23, 16  ;;  %v3155_v5 = vld [vmem:[#allocation3 + $0x60] sm:$0xff] }
 0x39f   : > { %3121 = vst.msk [vmem:[#allocation3 + $0x91] sm:$0xff] %vm381_vm0, %v3088_v3  ;;  %v3089_v18 = vmax.f32 %v3057_v9, 0.0  ;;  %v2982_v40 = vadd.f32 %v6571_v0, %v8856_v28  ;;  %v2850_v15 = vpop.f32.mrb[13].mxu0  ;;  %v3257_v34 = vrot.slane %v3255_v13, 1  ;;  %v3265_v56 = vor.u32 %v3264_v10, %v3260_v61  ;;  %v3152_v12 = vld [vmem:[#allocation3 + $0x48] sm:$0xff] }
 0x3a0   : > { %3119 = vst.msk [vmem:[#allocation3 + $0x79] sm:$0xff] %vm381_vm0, %v3086_v21  ;;  %v3087_v62 = vmax.f32 %v3055_v30, 0.0  ;;  %v2980_v31 = vadd.f32 %v8856_v28, %v2850_v15  ;;  %v6572_v38 = vpop.f32.mrb[14].mxu0  ;;  %v3253_v8 = vor.u32 %v3252_v29, %v3248_v43  ;;  %v3156_v51 = vld [vmem:[#allocation3 + $0x68] sm:$0xff]  ;;  %v3269_v2 = vrot.slane %v3267_v22, 1 }
 0x3a1   : > { %3122 = vst.msk [vmem:[#allocation3 + $0x99] sm:$0xff] %vm381_vm0, %v3089_v18  ;;  %v3021_v54 = vmul.f32 %v8861_v63, %v2982_v40  ;;  %v2983_v36 = vadd.f32 %v6572_v38, %v8856_v28  ;;  %v2853_v50 = vpop.f32.mrb[15].mxu0  ;;  %v3153_v24 = vld [vmem:[#allocation3 + $0x50] sm:$0xff]  ;;  %v3154_v33 = vld [vmem:[#allocation3 + $0x58] sm:$0x3]  ;;  %v8935_v41 = vpack.c.bf16 %v3156_v51, %v3155_v5 }
 0x3a2   : > { %3120 = vst.msk [vmem:[#allocation3 + $0x81] sm:$0xff] %vm381_vm0, %v3087_v62  ;;  %v3019_v44 = vmul.f32 %v8861_v63, %v2980_v31  ;;  %v2981_v58 = vadd.f32 %v8856_v28, %v2853_v50  ;;  %v8941_v60 = vsel %vm758_vm2, %v3253_v8, %v3257_v34  ;;  %v8943_v16 = vpack.c.bf16 %v3153_v24, %v3152_v12  ;;  %v3157_v53 = vld [vmem:[#allocation3 + $0x70] sm:$0x3] }
 0x3a3   : > { %v3060_v35 = vadd.f32 %v8867_v20, %v3021_v54  ;;  %v3022_v47 = vmul.f32 %v8861_v63, %v2983_v36  ;;  %6592 = vmatmul.mubr.msk.bf16.vlgmr.msra.gmra.mrb[0].mxu1 %vm381_vm0, %v8941_v60  ;;  %v8950_v55 = vsel %vm758_vm2, %v3265_v56, %v3269_v2  ;;  %v8952_v42 = vpack.c.bf16 %v3154_v33, %v3154_v33 }
 0x3a4   : > { %v3058_v11 = vadd.f32 %v8867_v20, %v3019_v44  ;;  %v3020_v25 = vmul.f32 %v8861_v63, %v2981_v58  ;;  %6624 = vmatpush3.bf16.msra.mxu1 %v8850_v6  ;;  %6595 = vmatprep.mubr.msk.bf16.mxu1 %vm381_vm0, %v8950_v55  ;;  %v3272_v59 = vshrl.u32 %v8943_v16, 16  ;;  %v3274_v1 = vshll.u32 %v8943_v16, 16 }
 0x3a5   : > { %v3092_v7 = vmax.f32 %v3060_v35, 0.0  ;;  %v3061_v46 = vadd.f32 %v8867_v20, %v3022_v47  ;;  %v3279_v17 = vshll.u32 %v8952_v42, 16  ;;  %v8963_v27 = vpack.c.bf16 %v3157_v53, %v3157_v53  ;;  %6657 = vmatprep.subr.bf16.mxu1 %v8930_v19 }
 0x3a6   : > { %v3090_v4 = vmax.f32 %v3058_v11, 0.0  ;;  %v3059_v14 = vadd.f32 %v8867_v20, %v3020_v25  ;;  %v6575_v6 = vpop.f32.mrb[16].mxu0  ;;  %v3276_v32 = vrot.slane %v3274_v1, 1  ;;  %v3284_v37 = vshrl.u32 %v8935_v41, 16  ;;  %v3161_v43 = vld [vmem:[#allocation3 + $0x90] sm:$0xff] }
 0x3a7   : > { %3125 = vst.msk [vmem:[#allocation3 + $0xc1] sm:$0xff] %vm381_vm0, %v3092_v7  ;;  %v3093_v52 = vmax.f32 %v3061_v46, 0.0  ;;  %v2986_v45 = vadd.f32 %v6575_v6, %v8856_v28  ;;  %v2866_v61 = vpop.f32.mrb[17].mxu0  ;;  %v3281_v3 = vrot.slane %v3279_v17, 1  ;;  %v3286_v9 = vshll.u32 %v8935_v41, 16  ;;  %v3158_v54 = vld [vmem:[#allocation3 + $0x78] sm:$0xff] }
 0x3a8   : > { %3123 = vst.msk [vmem:[#allocation3 + $0xa9] sm:$0xff] %vm381_vm0, %v3090_v4  ;;  %v3091_v13 = vmax.f32 %v3059_v14, 0.0  ;;  %v2984_v21 = vadd.f32 %v8856_v28, %v2866_v61  ;;  %v6576_v30 = vpop.f32.mrb[18].mxu0  ;;  %v3277_v0 = vor.u32 %v3276_v32, %v3272_v59  ;;  %v3291_v29 = vshll.u32 %v8963_v27, 16  ;;  %v3162_v10 = vld [vmem:[#allocation3 + $0x98] sm:$0xff] }
 0x3a9   : > { %v3163_v18 = vld [vmem:[#allocation3 + $0xa0] sm:$0x3]  ;;  %3126 = vst.msk [vmem:[#allocation3 + $0xc9] sm:$0xff] %vm381_vm0, %v3093_v52  ;;  %v3025_v40 = vmul.f32 %v8861_v63, %v2986_v45  ;;  %v2987_v15 = vadd.f32 %v6576_v30, %v8856_v28  ;;  %v2869_v34 = vpop.f32.mrb[19].mxu0  ;;  %v3288_v22 = vrot.slane %v3286_v9, 1  ;;  %v8977_v38 = vpack.c.bf16 %v3162_v10, %v3161_v43 }
 0x3aa   : > { %v3159_v62 = vld [vmem:[#allocation3 + $0x80] sm:$0xff]  ;;  %v3160_v31 = vld [vmem:[#allocation3 + $0x88] sm:$0x3]  ;;  %3124 = vst.msk [vmem:[#allocation3 + $0xb1] sm:$0xff] %vm381_vm0, %v3091_v13  ;;  %v3023_v8 = vmul.f32 %v8861_v63, %v2984_v21  ;;  %v2985_v56 = vadd.f32 %v8856_v28, %v2869_v34  ;;  %v8983_v5 = vsel %vm758_vm2, %v3277_v0, %v3281_v3  ;;  %v3293_v51 = vrot.slane %v3291_v29, 1 }
 0x3ab   : > { %v3064_v36 = vadd.f32 %v8867_v20, %v3025_v40  ;;  %v3026_v50 = vmul.f32 %v8861_v63, %v2987_v15  ;;  %6596 = vmatmul.mubr.msk.bf16.gmra.mrb[4].mxu1 %vm381_vm0, %v8983_v5  ;;  %v3289_v2 = vor.u32 %v3288_v22, %v3284_v37  ;;  %v8989_v12 = vpack.c.bf16 %v3159_v62, %v3158_v54 }
 0x3ac   : > { %v3062_v24 = vadd.f32 %v8867_v20, %v3023_v8  ;;  %v3024_v33 = vmul.f32 %v8861_v63, %v2985_v56  ;;  %v8993_v44 = vpack.c.bf16 %v3160_v31, %v3160_v31  ;;  %v8995_v58 = vpack.c.bf16 %v3163_v18, %v3163_v18 }
 0x3ad   : > { %v3096_v53 = vmax.f32 %v3064_v36, 0.0  ;;  %v3065_v35 = vadd.f32 %v8867_v20, %v3026_v50  ;;  %v8999_v47 = vsel %vm758_vm2, %v3289_v2, %v3293_v51  ;;  %v3296_v11 = vshrl.u32 %v8989_v12, 16 }
 0x3ae   : > { %v3094_v25 = vmax.f32 %v3062_v24, 0.0  ;;  %v3063_v59 = vadd.f32 %v8867_v20, %v3024_v33  ;;  %6599 = vmatprep.mubr.msk.bf16.mxu1 %vm381_vm0, %v8999_v47  ;;  %v6579_v1 = vpop.f32.mrb[20].mxu0  ;;  %v3298_v7 = vshll.u32 %v8989_v12, 16  ;;  %v3303_v46 = vshll.u32 %v8993_v44, 16 }
 0x3af   : > { %3129 = vst.msk [vmem:[#allocation3 + $0xf1] sm:$0xff] %vm381_vm0, %v3096_v53  ;;  %v3097_v17 = vmax.f32 %v3065_v35, 0.0  ;;  %v2990_v4 = vadd.f32 %v6579_v1, %v8856_v28  ;;  %v2882_v14 = vpop.f32.mrb[21].mxu0  ;;  %v3308_v6 = vshrl.u32 %v8977_v38, 16  ;;  %v3310_v32 = vshll.u32 %v8977_v38, 16  ;;  %v3164_v9 = vld [vmem:[#allocation3 + $0xa8] sm:$0xff] }
 0x3b0   : > { %3127 = vst.msk [vmem:[#allocation3 + $0xd9] sm:$0xff] %vm381_vm0, %v3094_v25  ;;  %v3095_v37 = vmax.f32 %v3063_v59, 0.0  ;;  %v2988_v52 = vadd.f32 %v8856_v28, %v2882_v14  ;;  %v6580_v45 = vpop.f32.mrb[22].mxu0  ;;  %v3300_v61 = vrot.slane %v3298_v7, 1  ;;  %v3305_v3 = vrot.slane %v3303_v46, 1  ;;  %v3168_v50 = vld [vmem:[#allocation3 + $0xc8] sm:$0xff] }
 0x3b1   : > { %3130 = vst.msk [vmem:[#allocation3 + $0xf9] sm:$0xff] %vm381_vm0, %v3097_v17  ;;  %v3029_v43 = vmul.f32 %v8861_v63, %v2990_v4  ;;  %v2991_v13 = vadd.f32 %v6580_v45, %v8856_v28  ;;  %v2885_v21 = vpop.f32.mrb[23].mxu0  ;;  %v3312_v30 = vrot.slane %v3310_v32, 1  ;;  %v3315_v0 = vshll.u32 %v8995_v58, 16  ;;  %v3165_v29 = vld [vmem:[#allocation3 + $0xb0] sm:$0xff]  ;;  %v3167_v46 = vld [vmem:[#allocation3 + $0xc0] sm:$0xff] }
 0x3b2   : > { %v3166_v10 = vld [vmem:[#allocation3 + $0xb8] sm:$0x3]  ;;  %3128 = vst.msk [vmem:[#allocation3 + $0xe1] sm:$0xff] %vm381_vm0, %v3095_v37  ;;  %v3027_v18 = vmul.f32 %v8861_v63, %v2988_v52  ;;  %v2989_v40 = vadd.f32 %v8856_v28, %v2885_v21  ;;  %v3301_v15 = vor.u32 %v3300_v61, %v3296_v11  ;;  %v9020_v34 = vpack.c.bf16 %v3165_v29, %v3164_v9  ;;  %v3169_v2 = vld [vmem:[#allocation3 + $0xd0] sm:$0x3] }
 0x3b3   : > { %v3068_v22 = vadd.f32 %v8867_v20, %v3029_v43  ;;  %v3030_v62 = vmul.f32 %v8861_v63, %v2991_v13  ;;  %v3313_v31 = vor.u32 %v3312_v30, %v3308_v6  ;;  %v3317_v8 = vrot.slane %v3315_v0, 1 }
 0x3b4   : > { %v3066_v56 = vadd.f32 %v8867_v20, %v3027_v18  ;;  %v3028_v51 = vmul.f32 %v8861_v63, %v2989_v40  ;;  %v9027_v54 = vsel %vm758_vm2, %v3301_v15, %v3305_v3  ;;  %v9029_v36 = vpack.c.bf16 %v3166_v10, %v3166_v10 }
 0x3b5   : > { %v3100_v24 = vmax.f32 %v3068_v22, 0.0  ;;  %v3069_v33 = vadd.f32 %v8867_v20, %v3030_v62  ;;  %6600 = vmatmul.mubr.msk.bf16.gmra.mrb[8].mxu1 %vm381_vm0, %v9027_v54  ;;  %v9035_v53 = vsel %vm758_vm2, %v3313_v31, %v3317_v8  ;;  %v3320_v35 = vshrl.u32 %v9020_v34, 16 }
 0x3b6   : > { %v3098_v11 = vmax.f32 %v3066_v56, 0.0  ;;  %v3067_v25 = vadd.f32 %v8867_v20, %v3028_v51  ;;  %6603 = vmatprep.mubr.msk.bf16.mxu1 %vm381_vm0, %v9035_v53  ;;  %v6583_v59 = vpop.f32.mrb[24].mxu0  ;;  %v3322_v1 = vshll.u32 %v9020_v34, 16  ;;  %v3327_v7 = vshll.u32 %v9029_v36, 16 }
 0x3b7   : > { %3133 = vst.msk [vmem:[#allocation3 + $0x121] sm:$0xff] %vm381_vm0, %v3100_v24  ;;  %v3101_v17 = vmax.f32 %v3069_v33, 0.0  ;;  %v2994_v4 = vadd.f32 %v6583_v59, %v8856_v28  ;;  %v2898_v14 = vpop.f32.mrb[25].mxu0  ;;  %v9045_v6 = vpack.c.bf16 %v3168_v50, %v3167_v46  ;;  %v9047_v32 = vpack.c.bf16 %v3169_v2, %v3169_v2  ;;  %v3170_v15 = vld [vmem:[#allocation3 + $0xd8] sm:$0xff] }
 0x3b8   : > { %3131 = vst.msk [vmem:[#allocation3 + $0x109] sm:$0xff] %vm381_vm0, %v3098_v11  ;;  %v3099_v37 = vmax.f32 %v3067_v25, 0.0  ;;  %v2992_v52 = vadd.f32 %v8856_v28, %v2898_v14  ;;  %v6584_v45 = vpop.f32.mrb[26].mxu0  ;;  %v3324_v61 = vrot.slane %v3322_v1, 1  ;;  %v3329_v3 = vrot.slane %v3327_v7, 1  ;;  %v3174_v59 = vld [vmem:[#allocation3 + $0xf8] sm:$0xff] }
 0x3b9   : > { %3134 = vst.msk [vmem:[#allocation3 + $0x129] sm:$0xff] %vm381_vm0, %v3101_v17  ;;  %v3033_v9 = vmul.f32 %v8861_v63, %v2994_v4  ;;  %v2995_v43 = vadd.f32 %v6584_v45, %v8856_v28  ;;  %v2901_v13 = vpop.f32.mrb[27].mxu0  ;;  %v3332_v21 = vshrl.u32 %v9045_v6, 16  ;;  %v3334_v30 = vshll.u32 %v9045_v6, 16  ;;  %v3171_v0 = vld [vmem:[#allocation3 + $0xe0] sm:$0xff] }
 0x3ba   : > { %3132 = vst.msk [vmem:[#allocation3 + $0x111] sm:$0xff] %vm381_vm0, %v3099_v37  ;;  %v3031_v29 = vmul.f32 %v8861_v63, %v2992_v52  ;;  %v2993_v10 = vadd.f32 %v8856_v28, %v2901_v13  ;;  %v3325_v18 = vor.u32 %v3324_v61, %v3320_v35  ;;  %v3339_v40 = vshll.u32 %v9047_v32, 16  ;;  %v3172_v22 = vld [vmem:[#allocation3 + $0xe8] sm:$0x3]  ;;  %v3175_v14 = vld [vmem:[#allocation3 + $0x100] sm:$0x3] }
 0x3bb   : > { %v3072_v62 = vadd.f32 %v8867_v20, %v3033_v9  ;;  %v3034_v31 = vmul.f32 %v8861_v63, %v2995_v43  ;;  %v3336_v8 = vrot.slane %v3334_v30, 1  ;;  %v9062_v56 = vpack.c.bf16 %v3171_v0, %v3170_v15  ;;  %v3173_v9 = vld [vmem:[#allocation3 + $0xf0] sm:$0xff] }
 0x3bc   : > { %v3070_v51 = vadd.f32 %v8867_v20, %v3031_v29  ;;  %v3032_v50 = vmul.f32 %v8861_v63, %v2993_v10  ;;  %v9067_v2 = vsel %vm758_vm2, %v3325_v18, %v3329_v3  ;;  %v3341_v24 = vrot.slane %v3339_v40, 1 }
 0x3bd   : > { %v3104_v33 = vmax.f32 %v3072_v62, 0.0  ;;  %v3073_v35 = vadd.f32 %v8867_v20, %v3034_v31  ;;  %6604 = vmatmul.mubr.msk.bf16.gmra.mrb[12].mxu1 %vm381_vm0, %v9067_v2  ;;  %v3337_v11 = vor.u32 %v3336_v8, %v3332_v21  ;;  %v9072_v25 = vpack.c.bf16 %v3172_v22, %v3172_v22 }
 0x3be   : > { %v3102_v1 = vmax.f32 %v3070_v51, 0.0  ;;  %v3071_v7 = vadd.f32 %v8867_v20, %v3032_v50  ;;  %v6587_v46 = vpop.f32.mrb[28].mxu0  ;;  %v3344_v17 = vshrl.u32 %v9062_v56, 16  ;;  %v3346_v4 = vshll.u32 %v9062_v56, 16 }
 0x3bf   : > { %3137 = vst.msk [vmem:[#allocation3 + $0x151] sm:$0xff] %vm381_vm0, %v3104_v33  ;;  %v3105_v37 = vmax.f32 %v3073_v35, 0.0  ;;  %v9079_v52 = vsel %vm758_vm2, %v3337_v11, %v3341_v24  ;;  %v2998_v45 = vadd.f32 %v6587_v46, %v8856_v28  ;;  %v2914_v61 = vpop.f32.mrb[29].mxu0  ;;  %v3351_v3 = vshll.u32 %v9072_v25, 16  ;;  %v3176_v35 = vld [vmem:[#allocation3 + $0x108] sm:$0xff] }
 0x3c0   : > { %3135 = vst.msk [vmem:[#allocation3 + $0x139] sm:$0xff] %vm381_vm0, %v3102_v1  ;;  %v3103_v43 = vmax.f32 %v3071_v7, 0.0  ;;  %6607 = vmatprep.mubr.msk.bf16.mxu1 %vm381_vm0, %v9079_v52  ;;  %v2996_v13 = vadd.f32 %v8856_v28, %v2914_v61  ;;  %v6588_v21 = vpop.f32.mrb[30].mxu0  ;;  %v3348_v30 = vrot.slane %v3346_v4, 1  ;;  %v9087_v0 = vpack.c.bf16 %v3174_v59, %v3173_v9  ;;  %v3180_v46 = vld [vmem:[#allocation3 + $0x128] sm:$0xff] }
 0x3c1   : > { %3138 = vst.msk [vmem:[#allocation3 + $0x159] sm:$0xff] %vm381_vm0, %v3105_v37  ;;  %v3037_v29 = vmul.f32 %v8861_v63, %v2998_v45  ;;  %v2999_v10 = vadd.f32 %v6588_v21, %v8856_v28  ;;  %v2917_v18 = vpop.f32.mrb[31].mxu0  ;;  %v9092_v40 = vpack.c.bf16 %v3175_v14, %v3175_v14  ;;  %v3177_v15 = vld [vmem:[#allocation3 + $0x110] sm:$0xff]  ;;  %v3353_v8 = vrot.slane %v3351_v3, 1  ;;  %v3178_v11 = vld [vmem:[#allocation3 + $0x118] sm:$0x3] }
 0x3c2   : > { %3136 = vst.msk [vmem:[#allocation3 + $0x141] sm:$0xff] %vm381_vm0, %v3103_v43  ;;  %v3035_v22 = vmul.f32 %v8861_v63, %v2996_v13  ;;  %v2997_v62 = vadd.f32 %v8856_v28, %v2917_v18  ;;  %v3349_v31 = vor.u32 %v3348_v30, %v3344_v17  ;;  %v3358_v24 = vshll.u32 %v9087_v0, 16  ;;  %v3181_v45 = vld [vmem:[#allocation3 + $0x130] sm:$0x3]  ;;  %v3179_v43 = vld [vmem:[#allocation3 + $0x120] sm:$0xff] }
 0x3c3   : > { %v3076_v51 = vadd.f32 %v8867_v20, %v3037_v29  ;;  %v3038_v50 = vmul.f32 %v8861_v63, %v2999_v10  ;;  %v3363_v33 = vshll.u32 %v9092_v40, 16  ;;  %v9106_v28 = vpack.c.bf16 %v3177_v15, %v3176_v35 }
 0x3c4   : > { %v3074_v59 = vadd.f32 %v8867_v20, %v3035_v22  ;;  %v3036_v1 = vmul.f32 %v8861_v63, %v2997_v62  ;;  %v9104_v7 = vsel %vm758_vm2, %v3349_v31, %v3353_v8  ;;  %v3356_v14 = vshrl.u32 %v9087_v0, 16 }
 0x3c5   : > { %v3108_v17 = vmax.f32 %v3076_v51, 0.0  ;;  %v3077_v4 = vadd.f32 %v8867_v20, %v3038_v50  ;;  %6608 = vmatmul.mubr.msk.bf16.gmra.mrb[16].mxu1 %vm381_vm0, %v9104_v7  ;;  %v3360_v37 = vrot.slane %v3358_v24, 1  ;;  %v3365_v63 = vrot.slane %v3363_v33, 1 }
 0x3c6   : > { %v3106_v61 = vmax.f32 %v3074_v59, 0.0  ;;  %v3075_v3 = vadd.f32 %v8867_v20, %v3036_v1  ;;  %v9113_v9 = vpack.c.bf16 %v3178_v11, %v3178_v11  ;;  %v3370_v30 = vshll.u32 %v9106_v28, 16 }
 0x3c7   : > { %3141 = vst.msk [vmem:[#allocation3 + $0x181] sm:$0xff] %vm381_vm0, %v3108_v17  ;;  %v3109_v13 = vmax.f32 %v3077_v4, 0.0  ;;  %v3361_v21 = vor.u32 %v3360_v37, %v3356_v14  ;;  %v9117_v29 = vpack.c.bf16 %v3180_v46, %v3179_v43  ;;  %v3368_v18 = vshrl.u32 %v9106_v28, 16  ;;  %v3182_v50 = vld [vmem:[#allocation3 + $0x138] sm:$0xff]  ;;  %v3185_v46 = vld [vmem:[#allocation3 + $0x150] sm:$0xff] }
 0x3c8   : > { %3139 = vst.msk [vmem:[#allocation3 + $0x169] sm:$0xff] %vm381_vm0, %v3106_v61  ;;  %v3107_v10 = vmax.f32 %v3075_v3, 0.0  ;;  %v3375_v15 = vshll.u32 %v9113_v9, 16  ;;  %v9122_v20 = vpack.c.bf16 %v3181_v45, %v3181_v45  ;;  %v3186_v22 = vld [vmem:[#allocation3 + $0x158] sm:$0xff]  ;;  %v3187_v62 = vld [vmem:[#allocation3 + $0x160] sm:$0x3] }
 0x3c9   : > { %3142 = vst.msk [vmem:[#allocation3 + $0x189] sm:$0xff] %vm381_vm0, %v3109_v13  ;;  %v9126_v31 = vsel %vm758_vm2, %v3361_v21, %v3365_v63  ;;  %v3372_v8 = vrot.slane %v3370_v30, 1  ;;  %v3382_v51 = vshll.u32 %v9117_v29, 16  ;;  %v3183_v24 = vld [vmem:[#allocation3 + $0x140] sm:$0xff]  ;;  %v3184_v33 = vld [vmem:[#allocation3 + $0x148] sm:$0x3]  ;;  %v9138_v37 = vpack.c.bf16 %v3186_v22, %v3185_v46 }
 0x3ca   : > { %3140 = vst.msk [vmem:[#allocation3 + $0x171] sm:$0xff] %vm381_vm0, %v3107_v10  ;;  %6611 = vmatprep.mubr.msk.bf16.mxu1 %vm381_vm0, %v9126_v31  ;;  %v3380_v35 = vshrl.u32 %v9117_v29, 16  ;;  %v3387_v11 = vshll.u32 %v9122_v20, 16  ;;  %v9134_v59 = vpack.c.bf16 %v3183_v24, %v3182_v50  ;;  %v9136_v1 = vpack.c.bf16 %v3184_v33, %v3184_v33 }
 0x3cb   : > { %v3373_v17 = vor.u32 %v3372_v8, %v3368_v18  ;;  %v3377_v4 = vrot.slane %v3375_v15, 1  ;;  %v3384_v14 = vrot.slane %v3382_v51, 1  ;;  %v9141_v3 = vpack.c.bf16 %v3187_v62, %v3187_v62 }
 0x3cc   : > { %v3389_v45 = vrot.slane %v3387_v11, 1  ;;  %v3394_v61 = vshll.u32 %v9134_v59, 16  ;;  %v3399_v13 = vshll.u32 %v9136_v1, 16  ;;  %v3406_v21 = vshll.u32 %v9138_v37, 16 }
 0x3cd   : > { %v9144_v63 = vsel %vm758_vm2, %v3373_v17, %v3377_v4  ;;  %v3385_v43 = vor.u32 %v3384_v14, %v3380_v35  ;;  %v3392_v30 = vshrl.u32 %v9134_v59, 16  ;;  %v3404_v62 = vshrl.u32 %v9138_v37, 16 }
 0x3ce   : > { %6612 = vmatmul.mubr.msk.bf16.gmra.mrb[20].mxu1 %vm381_vm0, %v9144_v63  ;;  %v3396_v10 = vrot.slane %v3394_v61, 1  ;;  %v3408_v15 = vrot.slane %v3406_v21, 1  ;;  %v3411_v8 = vshll.u32 %v9141_v3, 16  ;;  %v3401_v51 = vrot.slane %v3399_v13, 1 }
 0x3cf   : > { %v9152_v18 = vsel %vm758_vm2, %v3385_v43, %v3389_v45  ;;  %v3188_v50 = vld [vmem:[#allocation3 + $0x168] sm:$0xff] }
 0x3d0   : > { %6615 = vmatprep.mubr.msk.bf16.mxu1 %vm381_vm0, %v9152_v18  ;;  %v3397_v22 = vor.u32 %v3396_v10, %v3392_v30  ;;  %v3409_v35 = vor.u32 %v3408_v15, %v3404_v62  ;;  %v3413_v4 = vrot.slane %v3411_v8, 1  ;;  %v7493_v15 = vld [vmem:[#allocation9 + $0x18] sm:$0xff]   ;;  %v3880_v8 = vrot.slane %v8910_v39, 1 }
 0x3d1   : > { %v3189_v24 = vld [vmem:[#allocation3 + $0x170] sm:$0xff]  ;;  %v3190_v33 = vld [vmem:[#allocation3 + $0x178] sm:$0x3]  ;;  %v3885_v39 = vrot.slane %v8943_v16, 1 }
 0x3d2   : > { %v9158_v11 = vpack.c.bf16 %v3189_v24, %v3188_v50  ;;  %v9160_v46 = vpack.c.bf16 %v3190_v33, %v3190_v33  ;;  %v9163_v17 = vsel %vm758_vm2, %v3397_v22, %v3401_v51  ;;  %v9170_v61 = vsel %vm758_vm2, %v3409_v35, %v3413_v4  ;;  %v7494_v33 = vld [vmem:[#allocation9 + $0x20] sm:$0xff]  }
 0x3d3   : > { %v3877_v22 = vrot.slane %v8843_v57, 1  ;;  %v3879_v51 = vrot.slane %v8908_v48, 1  ;;  %v3882_v50 = vrot.slane %v8903_v49, 1  ;;  %v3883_v24 = vrot.slane %v8914_v23, 1 }
 0x3d4   : > { %v3418_v14 = vshll.u32 %v9158_v11, 16  ;;  %v3423_v45 = vshll.u32 %v9160_v46, 16  ;;  %v3416_v43 = vshrl.u32 %v9158_v11, 16  ;;  %v3886_v35 = vrot.slane %v8952_v42, 1 }
 0x3d5   : > { %v9227_v57 = vsel %vm1400_vm3, %v3882_v50, %v3883_v24  ;;  %v3888_v23 = vrot.slane %v8935_v41, 1  ;;  %v3889_v4 = vrot.slane %v8963_v27, 1  ;;  %v3892_v42 = vrot.slane %v8993_v44, 1 }
 0x3d6   : > { %6616 = vmatmul.mubr.msk.bf16.gmra.mrb[24].mxu1 %vm381_vm0, %v9163_v17  ;;  %v3420_v13 = vrot.slane %v3418_v14, 1  ;;  %v3425_v30 = vrot.slane %v3423_v45, 1  ;;  %v9236_v14 = vsel %vm1400_vm3, %v3885_v39, %v3886_v35  ;;  %v3895_v27 = vrot.slane %v8995_v58, 1 }
 0x3d7   : > { %6619 = vmatprep.mubr.msk.bf16.mxu1 %vm381_vm0, %v9170_v61  ;;  %v9241_v45 = vsel %vm1400_vm3, %v3888_v23, %v3889_v4  ;;  %v3898_v44 = vrot.slane %v9029_v36, 1  ;;  %v3901_v58 = vrot.slane %v9047_v32, 1  ;;  %v3904_v36 = vrot.slane %v9072_v25, 1 }
 0x3d8   : > { %v3421_v21 = vor.u32 %v3420_v13, %v3416_v43  ;;  %v3891_v43 = vrot.slane %v8989_v12, 1  ;;  %v3894_v13 = vrot.slane %v8977_v38, 1  ;;  %v3907_v32 = vrot.slane %v9092_v40, 1 }
 0x3d9   : > { %v3909_v39 = vrot.slane %v9106_v28, 1  ;;  %v3910_v25 = vrot.slane %v9113_v9, 1  ;;  %v3912_v35 = vrot.slane %v9117_v29, 1  ;;  %v3913_v40 = vrot.slane %v9122_v20, 1 }
 0x3da   : > { %v9176_v10 = vsel %vm758_vm2, %v3421_v21, %v3425_v30  ;;  %v9250_v21 = vsel %vm1400_vm3, %v3891_v43, %v3892_v42  ;;  %v9255_v30 = vsel %vm1400_vm3, %v3894_v13, %v3895_v27  ;;  %v3915_v43 = vrot.slane %v9134_v59, 1 }
 0x3db   : > { %v9292_v23 = vsel %vm1400_vm3, %v3909_v39, %v3910_v25  ;;  %v9297_v4 = vsel %vm1400_vm3, %v3912_v35, %v3913_v40  ;;  %v3916_v9 = vrot.slane %v9136_v1, 1  ;;  %v3918_v42 = vrot.slane %v9138_v37, 1  ;;  %v7497_v40 = vld [vmem:[#allocation9 + $0x38] sm:$0xff]  }
 0x3dc   : > { %v3919_v20 = vrot.slane %v9141_v3, 1  ;;  %v3922_v1 = vrot.slane %v9160_v46, 1  ;;  %v7495_v3 = vld [vmem:[#allocation9 + $0x28] sm:$0xff]  }
 0x3dd   : > { %v9306_v13 = vsel %vm1400_vm3, %v3915_v43, %v3916_v9  ;;  %v3191_v46 = vld [vmem:[#allocation3 + $0x180] sm:$0xff] }
 0x3de   : > { %6620 = vmatmul.mubr.msk.bf16.gmra.mrb[28].mxu1 %vm381_vm0, %v9176_v10  ;;  %v9311_v27 = vsel %vm1400_vm3, %v3918_v42, %v3919_v20  ;;  %v7498_v42 = vld [vmem:[#allocation9 + $0x40] sm:$0xff]  }
 0x3df   : > { %6625 = vmatprep.mubr.msk.bf16.mxu1 %vm381_vm0, %v8841_v26 }
 0x3e6   : > { %6626 = vmatmul.mubr.msk.bf16.vlgmr.msra.gmra.mrb[0].mxu1 %vm381_vm0, %v8908_v48 }
 0x3e7   : > { %6658 = vmatpush3.bf16.msra.mxu1 %v8930_v19  ;;  %6629 = vmatprep.mubr.msk.bf16.mxu1 %vm381_vm0, %v8903_v49  ;;  %v3876_v19 = vrot.slane %v8841_v26, 1  ;;  %v9222_v26 = vsel %vm1400_vm3, %v3879_v51, %v3880_v8  ;;  %v3903_v8 = vrot.slane %v9062_v56, 1  ;;  %v3906_v51 = vrot.slane %v9087_v0, 1 }
 0x3e8   : > { %6691 = vmatprep.subr.bf16.mxu1 %v7493_v15 }
 0x3e9   : > { %v3878_v62 = vsel %vm1400_vm3, %v3876_v19, %v3877_v22  ;;  %v3900_v19 = vrot.slane %v9045_v6, 1  ;;  %v9278_v50 = vsel %vm1400_vm3, %v3903_v8, %v3904_v36  ;;  %v9283_v24 = vsel %vm1400_vm3, %v3906_v51, %v3907_v32 }
 0x3ee   : > { %6630 = vmatmul.mubr.msk.bf16.gmra.mrb[4].mxu1 %vm381_vm0, %v8943_v16 }
 0x3ef   : > { %6633 = vmatprep.mubr.msk.bf16.mxu1 %vm381_vm0, %v8935_v41 }
 0x3f6   : > { %6634 = vmatmul.mubr.msk.bf16.gmra.mrb[8].mxu1 %vm381_vm0, %v8989_v12 }
 0x3f7   : > { %6637 = vmatprep.mubr.msk.bf16.mxu1 %vm381_vm0, %v8977_v38 }
 0x3fe   : > { %6638 = vmatmul.mubr.msk.bf16.gmra.mrb[12].mxu1 %vm381_vm0, %v9020_v34 }
 0x3ff   : > { %6641 = vmatprep.mubr.msk.bf16.mxu1 %vm381_vm0, %v9045_v6 }
 0x406   : > { %6642 = vmatmul.mubr.msk.bf16.gmra.mrb[16].mxu1 %vm381_vm0, %v9062_v56 }
 0x407   : > { %6645 = vmatprep.mubr.msk.bf16.mxu1 %vm381_vm0, %v9087_v0 }
 0x40e   : > { %6646 = vmatmul.mubr.msk.bf16.gmra.mrb[20].mxu1 %vm381_vm0, %v9106_v28 }
 0x40f   : > { %6649 = vmatprep.mubr.msk.bf16.mxu1 %vm381_vm0, %v9117_v29 }
 0x416   : > { %6650 = vmatmul.mubr.msk.bf16.gmra.mrb[24].mxu1 %vm381_vm0, %v9134_v59 }
 0x417   : > { %6653 = vmatprep.mubr.msk.bf16.mxu1 %vm381_vm0, %v9138_v37 }
 0x41e   : > { %6654 = vmatmul.mubr.msk.bf16.gmra.mrb[28].mxu1 %vm381_vm0, %v9158_v11 }
 0x41f   : > { %6659 = vmatprep.mubr.msk.bf16.mxu1 %vm381_vm0, %v3878_v62  ;;  %v9269_v62 = vsel %vm1400_vm3, %v3900_v19, %v3901_v58  ;;  %v7496_v19 = vld [vmem:[#allocation9 + $0x30] sm:$0xff]  }
 0x426   : > { %6660 = vmatmul.mubr.msk.bf16.vlgmr.msra.gmra.mrb[0].mxu1 %vm381_vm0, %v9222_v26 }
 0x427   : > { %6692 = vmatpush3.bf16.msra.mxu1 %v7493_v15  ;;  %6663 = vmatprep.mubr.msk.bf16.mxu1 %vm381_vm0, %v9227_v57  ;;  %v3897_v15 = vrot.slane %v9020_v34, 1 }
 0x428   : > { %6725 = vmatprep.subr.bf16.mxu1 %v7494_v33 }
 0x429   : > { %v9264_v22 = vsel %vm1400_vm3, %v3897_v15, %v3898_v44  ;;  %v3921_v15 = vrot.slane %v9158_v11, 1 }
 0x42b   : > { %v9318_v44 = vsel %vm1400_vm3, %v3921_v15, %v3922_v1 }
 0x42e   : > { %6664 = vmatmul.mubr.msk.bf16.gmra.mrb[4].mxu1 %vm381_vm0, %v9236_v14 }
 0x42f   : > { %6667 = vmatprep.mubr.msk.bf16.mxu1 %vm381_vm0, %v9241_v45 }
 0x436   : > { %6668 = vmatmul.mubr.msk.bf16.gmra.mrb[8].mxu1 %vm381_vm0, %v9250_v21 }
 0x437   : > { %6671 = vmatprep.mubr.msk.bf16.mxu1 %vm381_vm0, %v9255_v30 }
 0x43e   : > { %6672 = vmatmul.mubr.msk.bf16.gmra.mrb[12].mxu1 %vm381_vm0, %v9264_v22 }
 0x43f   : > { %6675 = vmatprep.mubr.msk.bf16.mxu1 %vm381_vm0, %v9269_v62 }
 0x446   : > { %6676 = vmatmul.mubr.msk.bf16.gmra.mrb[16].mxu1 %vm381_vm0, %v9278_v50 }
 0x447   : > { %6679 = vmatprep.mubr.msk.bf16.mxu1 %vm381_vm0, %v9283_v24 }
 0x44e   : > { %6680 = vmatmul.mubr.msk.bf16.gmra.mrb[20].mxu1 %vm381_vm0, %v9292_v23 }
 0x44f   : > { %6683 = vmatprep.mubr.msk.bf16.mxu1 %vm381_vm0, %v9297_v4 }
 0x456   : > { %6684 = vmatmul.mubr.msk.bf16.gmra.mrb[24].mxu1 %vm381_vm0, %v9306_v13 }
 0x457   : > { %6687 = vmatprep.mubr.msk.bf16.mxu1 %vm381_vm0, %v9311_v27 }
 0x45e   : > { %6688 = vmatmul.mubr.msk.bf16.gmra.mrb[28].mxu1 %vm381_vm0, %v9318_v44 }
 0x45f   : > { %6693 = vmatprep.mubr.msk.bf16.mxu1 %vm381_vm0, %v8908_v48  ;;  %v3192_v48 = vld [vmem:[#allocation3 + $0x188] sm:$0xff] }
 0x466   : > { %6694 = vmatmul.mubr.msk.bf16.vlgmr.msra.gmra.mrb[0].mxu1 %vm381_vm0, %v8903_v49 }
 0x467   : > { %6726 = vmatpush3.bf16.msra.mxu1 %v7494_v33  ;;  %6697 = vmatprep.mubr.msk.bf16.mxu1 %vm381_vm0, %v8943_v16  ;;  %v9352_v33 = vpack.c.bf16 %v3192_v48, %v3191_v46  ;;  %v7506_v48 = vld [vmem:[%s7928_s22 + $0x28] sm:$0xff] }
 0x468   : > { %6759 = vmatprep.subr.bf16.mxu1 %v7495_v3 }
 0x469   : > { %v4381_v58 = vshll.u32 %v9352_v33, 16  ;;  %v4379_v51 = vshrl.u32 %v9352_v33, 16 }
 0x46b   : > { %v4383_v36 = vrot.slane %v4381_v58, 1 }
 0x46d   : > { %v4384_v39 = vor.u32 %v4383_v36, %v4379_v51  ;;  %v7507_v36 = vld [vmem:[%s7928_s22 + $0x50] sm:$0xff] }
 0x46e   : > { %6698 = vmatmul.mubr.msk.bf16.gmra.mrb[4].mxu1 %vm381_vm0, %v8935_v41 }
 0x46f   : > { %6701 = vmatprep.mubr.msk.bf16.mxu1 %vm381_vm0, %v8989_v12 }
 0x476   : > { %6702 = vmatmul.mubr.msk.bf16.gmra.mrb[8].mxu1 %vm381_vm0, %v8977_v38 }
 0x477   : > { %6705 = vmatprep.mubr.msk.bf16.mxu1 %vm381_vm0, %v9020_v34 }
 0x47e   : > { %6706 = vmatmul.mubr.msk.bf16.gmra.mrb[12].mxu1 %vm381_vm0, %v9045_v6 }
 0x47f   : > { %6709 = vmatprep.mubr.msk.bf16.mxu1 %vm381_vm0, %v9062_v56 }
 0x486   : > { %6710 = vmatmul.mubr.msk.bf16.gmra.mrb[16].mxu1 %vm381_vm0, %v9087_v0 }
 0x487   : > { %6713 = vmatprep.mubr.msk.bf16.mxu1 %vm381_vm0, %v9106_v28 }
 0x48e   : > { %6714 = vmatmul.mubr.msk.bf16.gmra.mrb[20].mxu1 %vm381_vm0, %v9117_v29 }
 0x48f   : > { %6717 = vmatprep.mubr.msk.bf16.mxu1 %vm381_vm0, %v9134_v59 }
 0x496   : > { %6718 = vmatmul.mubr.msk.bf16.gmra.mrb[24].mxu1 %vm381_vm0, %v9138_v37 }
 0x497   : > { %6721 = vmatprep.mubr.msk.bf16.mxu1 %vm381_vm0, %v9158_v11 }
 0x49e   : > { %6722 = vmatmul.mubr.msk.bf16.gmra.mrb[28].mxu1 %vm381_vm0, %v9352_v33 }
 0x49f   : > { %6727 = vmatprep.mubr.msk.bf16.mxu1 %vm381_vm0, %v8941_v60  ;;  %v3193_v60 = vld [vmem:[#allocation3 + $0x190] sm:$0x3] }
 0x4a0   : > { %v3230_v8 = vpack.c.bf16 %v3193_v60, %v3193_v60 }
 0x4a2   : > { %v4386_v32 = vshll.u32 %v3230_v8, 16  ;;  %v4598_v43 = vrot.slane %v3230_v8, 1 }
 0x4a4   : > { %v4388_v25 = vrot.slane %v4386_v32, 1 }
 0x4a6   : > { %6728 = vmatmul.mubr.msk.bf16.vlgmr.msra.gmra.mrb[0].mxu1 %vm381_vm0, %v8950_v55  ;;  %v9389_v35 = vsel %vm758_vm2, %v4384_v39, %v4388_v25  ;;  %v7508_v25 = vld [vmem:[%s7928_s22 + $0x40] sm:$0xff] }
 0x4a7   : > { %6760 = vmatpush3.bf16.msra.mxu1 %v7495_v3  ;;  %6731 = vmatprep.mubr.msk.bf16.mxu1 %vm381_vm0, %v8983_v5 }
 0x4a8   : > { %6793 = vmatprep.subr.bf16.mxu1 %v7496_v19 }
 0x4ae   : > { %6732 = vmatmul.mubr.msk.bf16.gmra.mrb[4].mxu1 %vm381_vm0, %v8999_v47 }
 0x4af   : > { %6735 = vmatprep.mubr.msk.bf16.mxu1 %vm381_vm0, %v9027_v54 }
 0x4b6   : > { %6736 = vmatmul.mubr.msk.bf16.gmra.mrb[8].mxu1 %vm381_vm0, %v9035_v53 }
 0x4b7   : > { %6739 = vmatprep.mubr.msk.bf16.mxu1 %vm381_vm0, %v9067_v2 }
 0x4be   : > { %6740 = vmatmul.mubr.msk.bf16.gmra.mrb[12].mxu1 %vm381_vm0, %v9079_v52 }
 0x4bf   : > { %6743 = vmatprep.mubr.msk.bf16.mxu1 %vm381_vm0, %v9104_v7 }
 0x4c6   : > { %6744 = vmatmul.mubr.msk.bf16.gmra.mrb[16].mxu1 %vm381_vm0, %v9126_v31 }
 0x4c7   : > { %6747 = vmatprep.mubr.msk.bf16.mxu1 %vm381_vm0, %v9144_v63 }
 0x4ce   : > { %6748 = vmatmul.mubr.msk.bf16.gmra.mrb[20].mxu1 %vm381_vm0, %v9152_v18 }
 0x4cf   : > { %6751 = vmatprep.mubr.msk.bf16.mxu1 %vm381_vm0, %v9163_v17 }
 0x4d6   : > { %6752 = vmatmul.mubr.msk.bf16.gmra.mrb[24].mxu1 %vm381_vm0, %v9170_v61 }
 0x4d7   : > { %6755 = vmatprep.mubr.msk.bf16.mxu1 %vm381_vm0, %v9176_v10 }
 0x4de   : > { %6756 = vmatmul.mubr.msk.bf16.gmra.mrb[28].mxu1 %vm381_vm0, %v9389_v35 }
 0x4df   : > { %6761 = vmatprep.mubr.msk.bf16.mxu1 %vm381_vm0, %v9222_v26  ;;  %v4597_v26 = vrot.slane %v9352_v33, 1 }
 0x4e1   : > { %v9425_v9 = vsel %vm1400_vm3, %v4597_v26, %v4598_v43  ;;  %v7509_v26 = vld [vmem:[%s7928_s22 + $0x58] sm:$0xff] }
 0x4e6   : > { %6762 = vmatmul.mubr.msk.bf16.vlgmr.msra.gmra.mrb[0].mxu1 %vm381_vm0, %v9227_v57 }
 0x4e7   : > { %6794 = vmatpush3.bf16.msra.mxu1 %v7496_v19  ;;  %6765 = vmatprep.mubr.msk.bf16.mxu1 %vm381_vm0, %v9236_v14 }
 0x4e8   : > { %6827 = vmatprep.subr.bf16.mxu1 %v7497_v40 }
 0x4ee   : > { %6766 = vmatmul.mubr.msk.bf16.gmra.mrb[4].mxu1 %vm381_vm0, %v9241_v45 }
 0x4ef   : > { %6769 = vmatprep.mubr.msk.bf16.mxu1 %vm381_vm0, %v9250_v21 }
 0x4f6   : > { %6770 = vmatmul.mubr.msk.bf16.gmra.mrb[8].mxu1 %vm381_vm0, %v9255_v30 }
 0x4f7   : > { %6773 = vmatprep.mubr.msk.bf16.mxu1 %vm381_vm0, %v9264_v22 }
 0x4fe   : > { %6774 = vmatmul.mubr.msk.bf16.gmra.mrb[12].mxu1 %vm381_vm0, %v9269_v62 }
 0x4ff   : > { %6777 = vmatprep.mubr.msk.bf16.mxu1 %vm381_vm0, %v9278_v50 }
 0x506   : > { %6778 = vmatmul.mubr.msk.bf16.gmra.mrb[16].mxu1 %vm381_vm0, %v9283_v24 }
 0x507   : > { %6781 = vmatprep.mubr.msk.bf16.mxu1 %vm381_vm0, %v9292_v23 }
 0x50e   : > { %6782 = vmatmul.mubr.msk.bf16.gmra.mrb[20].mxu1 %vm381_vm0, %v9297_v4 }
 0x50f   : > { %6785 = vmatprep.mubr.msk.bf16.mxu1 %vm381_vm0, %v9306_v13 }
 0x516   : > { %6786 = vmatmul.mubr.msk.bf16.gmra.mrb[24].mxu1 %vm381_vm0, %v9311_v27 }
 0x517   : > { %6789 = vmatprep.mubr.msk.bf16.mxu1 %vm381_vm0, %v9318_v44 }
 0x51e   : > { %6790 = vmatmul.mubr.msk.bf16.gmra.mrb[28].mxu1 %vm381_vm0, %v9425_v9 }
 0x51f   : > { %6795 = vmatprep.mubr.msk.bf16.mxu1 %vm381_vm0, %v8903_v49  ;;  %v3194_v49 = vld [vmem:[#allocation3 + $0x198] sm:$0xff] }
 0x526   : > { %6796 = vmatmul.mubr.msk.bf16.vlgmr.msra.gmra.mrb[0].mxu1 %vm381_vm0, %v8943_v16 }
 0x527   : > { %6828 = vmatpush3.bf16.msra.mxu1 %v7497_v40  ;;  %6799 = vmatprep.mubr.msk.bf16.mxu1 %vm381_vm0, %v8935_v41  ;;  %v3195_v41 = vld [vmem:[#allocation3 + $0x1a0] sm:$0xff] }
 0x528   : > { %6861 = vmatprep.subr.bf16.mxu1 %v7498_v42  ;;  %v3231_v16 = vpack.c.bf16 %v3195_v41, %v3194_v49 }
 0x52e   : > { %6800 = vmatmul.mubr.msk.bf16.gmra.mrb[4].mxu1 %vm381_vm0, %v8989_v12  ;;  %v5010_v12 = vshrl.u32 %v3231_v16, 16 }
 0x52f   : > { %6803 = vmatprep.mubr.msk.bf16.mxu1 %vm381_vm0, %v8977_v38 }
 0x536   : > { %6804 = vmatmul.mubr.msk.bf16.gmra.mrb[8].mxu1 %vm381_vm0, %v9020_v34 }
 0x537   : > { %6807 = vmatprep.mubr.msk.bf16.mxu1 %vm381_vm0, %v9045_v6 }
 0x53e   : > { %6808 = vmatmul.mubr.msk.bf16.gmra.mrb[12].mxu1 %vm381_vm0, %v9062_v56  ;;  %v5228_v56 = vrot.slane %v3231_v16, 1 }
 0x53f   : > { %6811 = vmatprep.mubr.msk.bf16.mxu1 %vm381_vm0, %v9087_v0  ;;  %v9527_v0 = vld [vmem:[%s9720_s8] ss:$0 sm:$0xff] }
 0x546   : > { %6812 = vmatmul.mubr.msk.bf16.gmra.mrb[16].mxu1 %vm381_vm0, %v9106_v28 }
 0x547   : > { %6815 = vmatprep.mubr.msk.bf16.mxu1 %vm381_vm0, %v9117_v29 }
 0x54e   : > { %6816 = vmatmul.mubr.msk.bf16.gmra.mrb[20].mxu1 %vm381_vm0, %v9134_v59 }
 0x54f   : > { %6819 = vmatprep.mubr.msk.bf16.mxu1 %vm381_vm0, %v9138_v37  ;;  %v7499_v37 = vld [vmem:[%s7928_s22 + $0x10] sm:$0xff] }
 0x556   : > { %6820 = vmatmul.mubr.msk.bf16.gmra.mrb[24].mxu1 %vm381_vm0, %v9158_v11 }
 0x557   : > { %6823 = vmatprep.mubr.msk.bf16.mxu1 %vm381_vm0, %v9352_v33 }
 0x55e   : > { %6824 = vmatmul.mubr.msk.bf16.gmra.mrb[28].mxu1 %vm381_vm0, %v3231_v16 }
 0x55f   : > { %6829 = vmatprep.mubr.msk.bf16.mxu1 %vm381_vm0, %v8950_v55  ;;  %v3196_v55 = vld [vmem:[#allocation3 + $0x1a8] sm:$0x3] }
 0x560   : > { %v3232_v38 = vpack.c.bf16 %v3196_v55, %v3196_v55 }
 0x562   : > { %v5017_v34 = vshll.u32 %v3232_v38, 16 }
 0x566   : > { %6830 = vmatmul.mubr.msk.bf16.vlgmr.msra.gmra.mrb[0].mxu1 %vm381_vm0, %v8983_v5  ;;  %v5012_v5 = vshll.u32 %v3231_v16, 16 }
 0x567   : > { %6862 = vmatpush3.bf16.msra.mxu1 %v7498_v42  ;;  %6833 = vmatprep.mubr.msk.bf16.mxu1 %vm381_vm0, %v8999_v47 }
 0x568   : > { %v5014_v47 = vrot.slane %v5012_v5, 1  ;;  %v7511_v5 = vld [vmem:[%s7928_s22 + $0x70] sm:$0xff] }
 0x56e   : > { %6834 = vmatmul.mubr.msk.bf16.gmra.mrb[4].mxu1 %vm381_vm0, %v9027_v54  ;;  %v5015_v54 = vor.u32 %v5014_v47, %v5010_v12 }
 0x56f   : > { %6837 = vmatprep.mubr.msk.bf16.mxu1 %vm381_vm0, %v9035_v53  ;;  %v5019_v53 = vrot.slane %v5017_v34, 1 }
 0x571   : > { %v5020_v6 = vsel %vm758_vm2, %v5015_v54, %v5019_v53  ;;  %v7512_v54 = vld [vmem:[%s7928_s22 + $0x60] sm:$0xff] }
 0x576   : > { %6838 = vmatmul.mubr.msk.bf16.gmra.mrb[8].mxu1 %vm381_vm0, %v9067_v2  ;;  %v5229_v2 = vrot.slane %v3232_v38, 1 }
 0x577   : > { %6841 = vmatprep.mubr.msk.bf16.mxu1 %vm381_vm0, %v9079_v52 }
 0x578   : > { %v5230_v52 = vsel %vm1400_vm3, %v5228_v56, %v5229_v2  ;;  %v7513_v56 = vld [vmem:[%s7928_s22 + $0x78] sm:$0xff] }
 0x57e   : > { %6842 = vmatmul.mubr.msk.bf16.gmra.mrb[12].mxu1 %vm381_vm0, %v9104_v7 }
 0x57f   : > { %6845 = vmatprep.mubr.msk.bf16.mxu1 %vm381_vm0, %v9126_v31 }
 0x586   : > { %6846 = vmatmul.mubr.msk.bf16.gmra.mrb[16].mxu1 %vm381_vm0, %v9144_v63 }
 0x587   : > { %6849 = vmatprep.mubr.msk.bf16.mxu1 %vm381_vm0, %v9152_v18 }
 0x58e   : > { %6850 = vmatmul.mubr.msk.bf16.gmra.mrb[20].mxu1 %vm381_vm0, %v9163_v17  ;;  %v7500_v17 = vld [vmem:[%s7928_s22] sm:$0xff] }
 0x58f   : > { %6853 = vmatprep.mubr.msk.bf16.mxu1 %vm381_vm0, %v9170_v61 }
 0x596   : > { %6854 = vmatmul.mubr.msk.bf16.gmra.mrb[24].mxu1 %vm381_vm0, %v9176_v10 }
 0x597   : > { %6857 = vmatprep.mubr.msk.bf16.mxu1 %vm381_vm0, %v9389_v35 }
 0x59e   : > { %6858 = vmatmul.mubr.msk.bf16.gmra.mrb[28].mxu1 %vm381_vm0, %v5020_v6 }
 0x59f   : > { %6863 = vmatprep.mubr.msk.bf16.mxu1 %vm381_vm0, %v9227_v57  ;;  %v7501_v57 = vld [vmem:[%s7928_s22 + $0x18] sm:$0xff] }
 0x5a6   : > { %6864 = vmatmul.mubr.msk.bf16.vlgmr.msra.gmra.mrb[0].mxu1 %vm381_vm0, %v9236_v14 }
 0x5a7   : > { %6867 = vmatprep.mubr.msk.bf16.mxu1 %vm381_vm0, %v9241_v45  ;;  %v7502_v45 = vld [vmem:[%s7928_s22 + $0x8] sm:$0xff] }
 0x5ae   : > { %6868 = vmatmul.mubr.msk.bf16.gmra.mrb[4].mxu1 %vm381_vm0, %v9250_v21 }
 0x5af   : > { %6871 = vmatprep.mubr.msk.bf16.mxu1 %vm381_vm0, %v9255_v30 }
 0x5b6   : > { %6872 = vmatmul.mubr.msk.bf16.gmra.mrb[8].mxu1 %vm381_vm0, %v9264_v22 }
 0x5b7   : > { %6875 = vmatprep.mubr.msk.bf16.mxu1 %vm381_vm0, %v9269_v62 }
 0x5be   : > { %6876 = vmatmul.mubr.msk.bf16.gmra.mrb[12].mxu1 %vm381_vm0, %v9278_v50 }
 0x5bf   : > { %6879 = vmatprep.mubr.msk.bf16.mxu1 %vm381_vm0, %v9283_v24 }
 0x5c6   : > { %6880 = vmatmul.mubr.msk.bf16.gmra.mrb[16].mxu1 %vm381_vm0, %v9292_v23  ;;  %v7503_v23 = vld [vmem:[%s7928_s22 + $0x30] sm:$0xff] }
 0x5c7   : > { %6883 = vmatprep.mubr.msk.bf16.mxu1 %vm381_vm0, %v9297_v4 }
 0x5ce   : > { %6884 = vmatmul.mubr.msk.bf16.gmra.mrb[20].mxu1 %vm381_vm0, %v9306_v13 }
 0x5cf   : > { %6887 = vmatprep.mubr.msk.bf16.mxu1 %vm381_vm0, %v9311_v27  ;;  %v7504_v27 = vld [vmem:[%s7928_s22 + $0x20] sm:$0xff] }
 0x5d6   : > { %6888 = vmatmul.mubr.msk.bf16.gmra.mrb[24].mxu1 %vm381_vm0, %v9318_v44  ;;  %v7505_v44 = vld [vmem:[%s7928_s22 + $0x38] sm:$0xff] }
 0x5d7   : > { %6891 = vmatprep.mubr.msk.bf16.mxu1 %vm381_vm0, %v9425_v9  ;;  %v7510_v9 = vld [vmem:[%s7928_s22 + $0x48] sm:$0xff] }
 0x5de   : > { %6892 = vmatmul.mubr.msk.bf16.gmra.mrb[28].mxu1 %vm381_vm0, %v5230_v52  ;;  %v7514_v52 = vld [vmem:[%s7928_s22 + $0x68] sm:$0xff] }
 0x679   : > { %v6865_v7 = vpop.f32.mrb[0].mxu1 }
 0x67a   : > { %v5445_v28 = vadd.f32 %v6865_v7, %v9527_v0  ;;  %v5277_v29 = vpop.f32.mrb[1].mxu1 }
 0x67b   : > { %v5443_v31 = vadd.f32 %v9527_v0, %v5277_v29  ;;  %v6866_v59 = vpop.f32.mrb[2].mxu1 }
 0x67c   : > { %v5477_v63 = vadd.f32 %v7499_v37, %v5445_v28  ;;  %v5446_v18 = vadd.f32 %v6866_v59, %v9527_v0  ;;  %v5280_v11 = vpop.f32.mrb[3].mxu1 }
 0x67d   : > { %v5475_v61 = vadd.f32 %v7500_v17, %v5443_v31  ;;  %v5444_v10 = vadd.f32 %v9527_v0, %v5280_v11 }
 0x67e   : > { %5509 = vst.msk [vmem:[%s9537_s14 + $0x10] sm:$0xff] %vm381_vm0, %v5477_v63  ;;  %v5478_v14 = vadd.f32 %v7501_v57, %v5446_v18  ;;  %v7515_v63 = vld [vmem:[%s7928_s22 + $0x90] sm:$0xff] }
 0x67f   : > { %5507 = vst.msk [vmem:[%s9537_s14] sm:$0xff] %vm381_vm0, %v5475_v61  ;;  %v5476_v21 = vadd.f32 %v7502_v45, %v5444_v10  ;;  %v7516_v61 = vld [vmem:[%s7928_s22 + $0x80] sm:$0xff] }
 0x680   : > { %5510 = vst.msk [vmem:[%s9537_s14 + $0x18] sm:$0xff] %vm381_vm0, %v5478_v14  ;;  %v7517_v14 = vld [vmem:[%s7928_s22 + $0x98] sm:$0xff] }
 0x681   : > { %5508 = vst.msk [vmem:[%s9537_s14 + $0x8] sm:$0xff] %vm381_vm0, %v5476_v21  ;;  %v6869_v30 = vpop.f32.mrb[4].mxu1  ;;  %v7518_v21 = vld [vmem:[%s7928_s22 + $0x88] sm:$0xff] }
 0x682   : > { %v5449_v22 = vadd.f32 %v6869_v30, %v9527_v0  ;;  %v5293_v62 = vpop.f32.mrb[5].mxu1 }
 0x683   : > { %v5447_v50 = vadd.f32 %v9527_v0, %v5293_v62  ;;  %v6870_v24 = vpop.f32.mrb[6].mxu1 }
 0x684   : > { %v5481_v4 = vadd.f32 %v7503_v23, %v5449_v22  ;;  %v5450_v20 = vadd.f32 %v6870_v24, %v9527_v0  ;;  %v5296_v13 = vpop.f32.mrb[7].mxu1 }
 0x685   : > { %v5479_v15 = vadd.f32 %v7504_v27, %v5447_v50  ;;  %v5448_v1 = vadd.f32 %v9527_v0, %v5296_v13 }
 0x686   : > { %5513 = vst.msk [vmem:[%s9537_s14 + $0x30] sm:$0xff] %vm381_vm0, %v5481_v4  ;;  %v5482_v3 = vadd.f32 %v7505_v44, %v5450_v20  ;;  %v7519_v4 = vld [vmem:[%s7928_s22 + $0xb0] sm:$0xff] }
 0x687   : > { %5511 = vst.msk [vmem:[%s9537_s14 + $0x20] sm:$0xff] %vm381_vm0, %v5479_v15  ;;  %v5480_v46 = vadd.f32 %v7506_v48, %v5448_v1  ;;  %v7520_v15 = vld [vmem:[%s7928_s22 + $0xa0] sm:$0xff] }
 0x688   : > { %5514 = vst.msk [vmem:[%s9537_s14 + $0x38] sm:$0xff] %vm381_vm0, %v5482_v3  ;;  %v7521_v3 = vld [vmem:[%s7928_s22 + $0xb8] sm:$0xff] }
 0x689   : > { %5512 = vst.msk [vmem:[%s9537_s14 + $0x28] sm:$0xff] %vm381_vm0, %v5480_v46  ;;  %v6873_v33 = vpop.f32.mrb[8].mxu1  ;;  %v7522_v46 = vld [vmem:[%s7928_s22 + $0xa8] sm:$0xff] }
 0x68a   : > { %v5453_v19 = vadd.f32 %v6873_v33, %v9527_v0  ;;  %v5309_v60 = vpop.f32.mrb[9].mxu1 }
 0x68b   : > { %v5451_v58 = vadd.f32 %v9527_v0, %v5309_v60  ;;  %v6874_v8 = vpop.f32.mrb[10].mxu1 }
 0x68c   : > { %v5485_v51 = vadd.f32 %v7507_v36, %v5453_v19  ;;  %v5454_v32 = vadd.f32 %v6874_v8, %v9527_v0  ;;  %v5312_v39 = vpop.f32.mrb[11].mxu1 }
 0x68d   : > { %v5483_v35 = vadd.f32 %v7508_v25, %v5451_v58  ;;  %v5452_v40 = vadd.f32 %v9527_v0, %v5312_v39 }
 0x68e   : > { %5517 = vst.msk [vmem:[%s9537_s14 + $0x50] sm:$0xff] %vm381_vm0, %v5485_v51  ;;  %v5486_v43 = vadd.f32 %v7509_v26, %v5454_v32  ;;  %v7523_v51 = vld [vmem:[%s7928_s22 + $0xd0] sm:$0xff] }
 0x68f   : > { %5515 = vst.msk [vmem:[%s9537_s14 + $0x40] sm:$0xff] %vm381_vm0, %v5483_v35  ;;  %v5484_v42 = vadd.f32 %v7510_v9, %v5452_v40  ;;  %v7524_v35 = vld [vmem:[%s7928_s22 + $0xc0] sm:$0xff] }
 0x690   : > { %5518 = vst.msk [vmem:[%s9537_s14 + $0x58] sm:$0xff] %vm381_vm0, %v5486_v43  ;;  %v7525_v43 = vld [vmem:[%s7928_s22 + $0xd8] sm:$0xff] }
 0x691   : > { %5516 = vst.msk [vmem:[%s9537_s14 + $0x48] sm:$0xff] %vm381_vm0, %v5484_v42  ;;  %v6877_v49 = vpop.f32.mrb[12].mxu1  ;;  %v7526_v42 = vld [vmem:[%s7928_s22 + $0xc8] sm:$0xff] }
 0x692   : > { %v5457_v41 = vadd.f32 %v6877_v49, %v9527_v0  ;;  %v5325_v16 = vpop.f32.mrb[13].mxu1 }
 0x693   : > { %v5455_v55 = vadd.f32 %v9527_v0, %v5325_v16  ;;  %v6878_v38 = vpop.f32.mrb[14].mxu1 }
 0x694   : > { %v5489_v12 = vadd.f32 %v7511_v5, %v5457_v41  ;;  %v5458_v47 = vadd.f32 %v6878_v38, %v9527_v0  ;;  %v5328_v34 = vpop.f32.mrb[15].mxu1 }
 0x695   : > { %v5487_v53 = vadd.f32 %v7512_v54, %v5455_v55  ;;  %v5456_v6 = vadd.f32 %v9527_v0, %v5328_v34 }
 0x696   : > { %5521 = vst.msk [vmem:[%s9537_s14 + $0x70] sm:$0xff] %vm381_vm0, %v5489_v12  ;;  %v5490_v2 = vadd.f32 %v7513_v56, %v5458_v47  ;;  %v7527_v12 = vld [vmem:[%s7928_s22 + $0xf0] sm:$0xff] }
 0x697   : > { %5519 = vst.msk [vmem:[%s9537_s14 + $0x60] sm:$0xff] %vm381_vm0, %v5487_v53  ;;  %v5488_v7 = vadd.f32 %v7514_v52, %v5456_v6  ;;  %v7528_v53 = vld [vmem:[%s7928_s22 + $0xe0] sm:$0xff] }
 0x698   : > { %5522 = vst.msk [vmem:[%s9537_s14 + $0x78] sm:$0xff] %vm381_vm0, %v5490_v2  ;;  %v7529_v2 = vld [vmem:[%s7928_s22 + $0xf8] sm:$0xff] }
 0x699   : > { %5520 = vst.msk [vmem:[%s9537_s14 + $0x68] sm:$0xff] %vm381_vm0, %v5488_v7  ;;  %v6881_v28 = vpop.f32.mrb[16].mxu1  ;;  %v7530_v7 = vld [vmem:[%s7928_s22 + $0xe8] sm:$0xff] }
 0x69a   : > { %v5461_v29 = vadd.f32 %v6881_v28, %v9527_v0  ;;  %v5341_v31 = vpop.f32.mrb[17].mxu1 }
 0x69b   : > { %v5459_v59 = vadd.f32 %v9527_v0, %v5341_v31  ;;  %v6882_v37 = vpop.f32.mrb[18].mxu1 }
 0x69c   : > { %v5493_v18 = vadd.f32 %v7515_v63, %v5461_v29  ;;  %v5462_v11 = vadd.f32 %v6882_v37, %v9527_v0  ;;  %v5344_v17 = vpop.f32.mrb[19].mxu1 }
 0x69d   : > { %v5491_v10 = vadd.f32 %v7516_v61, %v5459_v59  ;;  %v5460_v57 = vadd.f32 %v9527_v0, %v5344_v17 }
 0x69e   : > { %5525 = vst.msk [vmem:[%s9537_s14 + $0x90] sm:$0xff] %vm381_vm0, %v5493_v18  ;;  %v5494_v45 = vadd.f32 %v7517_v14, %v5462_v11 }
 0x69f   : > { %5523 = vst.msk [vmem:[%s9537_s14 + $0x80] sm:$0xff] %vm381_vm0, %v5491_v10  ;;  %v5492_v30 = vadd.f32 %v7518_v21, %v5460_v57 }
 0x6a0   : > { %5526 = vst.msk [vmem:[%s9537_s14 + $0x98] sm:$0xff] %vm381_vm0, %v5494_v45 }
 0x6a1   : > { %5524 = vst.msk [vmem:[%s9537_s14 + $0x88] sm:$0xff] %vm381_vm0, %v5492_v30  ;;  %v6885_v22 = vpop.f32.mrb[20].mxu1 }
 0x6a2   : > { %v5465_v62 = vadd.f32 %v6885_v22, %v9527_v0  ;;  %v5357_v50 = vpop.f32.mrb[21].mxu1 }
 0x6a3   : > { %v5463_v24 = vadd.f32 %v9527_v0, %v5357_v50  ;;  %v6886_v23 = vpop.f32.mrb[22].mxu1 }
 0x6a4   : > { %v5497_v20 = vadd.f32 %v7519_v4, %v5465_v62  ;;  %v5466_v13 = vadd.f32 %v6886_v23, %v9527_v0  ;;  %v5360_v27 = vpop.f32.mrb[23].mxu1 }
 0x6a5   : > { %v5495_v1 = vadd.f32 %v7520_v15, %v5463_v24  ;;  %v5464_v44 = vadd.f32 %v9527_v0, %v5360_v27 }
 0x6a6   : > { %5529 = vst.msk [vmem:[%s9537_s14 + $0xb0] sm:$0xff] %vm381_vm0, %v5497_v20  ;;  %v5498_v48 = vadd.f32 %v7521_v3, %v5466_v13 }
 0x6a7   : > { %5527 = vst.msk [vmem:[%s9537_s14 + $0xa0] sm:$0xff] %vm381_vm0, %v5495_v1  ;;  %v5496_v33 = vadd.f32 %v7522_v46, %v5464_v44 }
 0x6a8   : > { %5530 = vst.msk [vmem:[%s9537_s14 + $0xb8] sm:$0xff] %vm381_vm0, %v5498_v48 }
 0x6a9   : > { %5528 = vst.msk [vmem:[%s9537_s14 + $0xa8] sm:$0xff] %vm381_vm0, %v5496_v33  ;;  %v6889_v19 = vpop.f32.mrb[24].mxu1 }
 0x6aa   : > { %v5469_v60 = vadd.f32 %v6889_v19, %v9527_v0  ;;  %v5373_v58 = vpop.f32.mrb[25].mxu1 }
 0x6ab   : > { %v5467_v8 = vadd.f32 %v9527_v0, %v5373_v58  ;;  %v6890_v36 = vpop.f32.mrb[26].mxu1 }
 0x6ac   : > { %v5501_v32 = vadd.f32 %v7523_v51, %v5469_v60  ;;  %v5470_v39 = vadd.f32 %v6890_v36, %v9527_v0  ;;  %v5376_v25 = vpop.f32.mrb[27].mxu1 }
 0x6ad   : > { %v5499_v40 = vadd.f32 %v7524_v35, %v5467_v8  ;;  %v5468_v26 = vadd.f32 %v9527_v0, %v5376_v25 }
 0x6ae   : > { %5533 = vst.msk [vmem:[%s9537_s14 + $0xd0] sm:$0xff] %vm381_vm0, %v5501_v32  ;;  %v5502_v9 = vadd.f32 %v7525_v43, %v5470_v39 }
 0x6af   : > { %5531 = vst.msk [vmem:[%s9537_s14 + $0xc0] sm:$0xff] %vm381_vm0, %v5499_v40  ;;  %v5500_v49 = vadd.f32 %v7526_v42, %v5468_v26 }
 0x6b0   : > { %5534 = vst.msk [vmem:[%s9537_s14 + $0xd8] sm:$0xff] %vm381_vm0, %v5502_v9 }
 0x6b1   : > { %5532 = vst.msk [vmem:[%s9537_s14 + $0xc8] sm:$0xff] %vm381_vm0, %v5500_v49  ;;  %v6893_v41 = vpop.f32.mrb[28].mxu1 }
 0x6b2   : > { %v5473_v16 = vadd.f32 %v6893_v41, %v9527_v0  ;;  %v5389_v55 = vpop.f32.mrb[29].mxu1 }
 0x6b3   : > { %v5471_v38 = vadd.f32 %v9527_v0, %v5389_v55  ;;  %v6894_v5 = vpop.f32.mrb[30].mxu1 }
 0x6b4   : > { %v5505_v47 = vadd.f32 %v7527_v12, %v5473_v16  ;;  %v5474_v34 = vadd.f32 %v6894_v5, %v9527_v0  ;;  %v5392_v54 = vpop.f32.mrb[31].mxu1 }
 0x6b5   : > { %v5503_v6 = vadd.f32 %v7528_v53, %v5471_v38  ;;  %v5472_v56 = vadd.f32 %v9527_v0, %v5392_v54 }
 0x6b6   : > { %5537 = vst.msk [vmem:[%s9537_s14 + $0xf0] sm:$0xff] %vm381_vm0, %v5505_v47  ;;  %v5506_v52 = vadd.f32 %v7529_v2, %v5474_v34 }
 0x6b7   : > { %5535 = vst.msk [vmem:[%s9537_s14 + $0xe0] sm:$0xff] %vm381_vm0, %v5503_v6  ;;  %v5504_v28 = vadd.f32 %v7530_v7, %v5472_v56 }
 0x6b8   : > { %5538 = vst.msk [vmem:[%s9537_s14 + $0xf8] sm:$0xff] %vm381_vm0, %v5506_v52 }
 0x6b9   : > { %5536 = vst.msk [vmem:[%s9537_s14 + $0xe8] sm:$0xff] %vm381_vm0, %v5504_v28 }
 0x6ba   : > { %7630 = shalt.err (!%p7627_p2)
}
 0x6bb   : > { %s7631_s22 = scalar_lea.hbm %s9659_s20, 4096  ;;  %s7635_s28 = scalar_lea.hbm %s9721_s9, 8192 }
 0x6bc   : > { %p7632_p13 = scmp.ne.s32.totalorder %s9659_s20, %s7631_s22  ;;  %p7636_p4 = scmp.lt.u32.totalorder %s9659_s20, %s9721_s9 }
 0x6bd   : > { %p7637_p5 = scmp.lt.u32.totalorder %s7635_s28, %s7631_s22  ;;  %p7639_p11 = scmp.lt.u32.totalorder %s7631_s22, %s9659_s20 }
 0x6be   : > { %p7633_p6 = pnand %p7632_p13, %p9737_p0 }
 0x6bf   : > { %p7638_p8 = por %p7637_p5, %p7636_p4 }
 0x6c0   : > { %p7634_p10 = pneg %p7633_p6 }
 0x6c1   : > { %p7640_p1 = por %p7639_p11, %p7638_p8 }
 0x6c3   : > { %p7641_p3 = pnand %p7640_p1, %p7634_p10 }
 0x6c5   : > { %7644 = shalt.err (!%p7641_p3)
}
 0x6c6   : > { %s7698_s25 = smov 128   ;;  %s7699_s18 = smov 8  }
 0x6c7   : > { %7417 = dma.vmem_to_hbm [thread:$0]  (%p9737_p0), %s9661_s16, 4096, %s9659_s20, %s5540_s21, %s7698_s25, %s7698_s25, %s7699_s18  }
 0x6c8 PF: > { %s9738_s29 = sld [smem:[#allocation14_spill]]  ;;  %s5568_s15 = sand.u32 1, %s7675_s30  }
 0x6c9   : > { %p9740_p9 = scmp.ge.s32.totalorder %s7687_s12, 2  ;;  %s5569_s22 = scalar_lea.sflag [#allocation6], %s5568_s15 }
 0x6ce   : > { %p9739_p7 = scmp.ne.s32.totalorder %s9738_s29, 0 }
 0x6d0   : > { %p7431_p12 = pnand %p9740_p9, %p9739_p7 }
 0x6d2   : > { %7670 = dma.done.wait (!%p7431_p12), %s5569_s22, 4096  }
 0x6d3   : > { %7672 = vsyncadd (!%p7431_p12), %s5569_s22, 4294963200  ;;  %p23_p2 = scmp.ge.s32.totalorder %s7860_s24, 4   ;;  %s9741_s30 = smov %s7679_s10 }
 0x6d4   : > { %s9742_s10 = smov %s7683_s11  ;;  %s9743_s11 = smov %s7876_s27 }
 0x6d5   : > { %s9744_s12 = smov %s7860_s24  ;;  %25 = sbr.rel (!%p23_p2) target bundleno = 6 (0x6), region = 127 }
 0x6dc   :  { %5574 = vsyncpa [#allocation5], 1 }
 0x6dd   :  { %5576 = vsyncpa [#allocation5 + $0x1], 1 }
 0x6de   :  { %5577 = vsyncpa [#allocation8], 1 }
 0x6df   :  { %5578 = vsyncpa [#allocation6], 1 }
 0x6e0   :  { %5580 = vsyncpa [#allocation6 + $0x1], 1 }

</bundles_post_ra>
